<compile_context>
chip_gen: v5e
topology: v5e:2x2
jax: 0.10.0
libtpu: 0.0.40
codegen_flags: <defaults>
</compile_context>

<pallas_src>
import numpy as np
import jax
import jax.numpy as jnp
from jax.experimental import pallas as pl
from jax.experimental.pallas import tpu as pltpu

# Stand-ins for the argparse args of the original script:
Z  = 64   # batch of ODE states (review: batch up so the MXU gets fed)
N  = 8    # output_dim
NU = 32   # args.nE = args.nS (hidden width)
D1 = 8    # args.D1
D2 = 4    # args.D2
# args.lE = args.lS = 1  ->  Linear -> Tanh -> Linear -> Tanh -> Linear(->1)

ZB_TILE = 32          # batch tile per grid step (multiple of 8)

# ---- packed-slab layout (lane dim = LANES, all row offsets 8-aligned) -------
LANES     = max(2 * NU, N * N)                 # 64
ROW_W1T   = 0                                  # (N, 2NU)   fused W1^T
ROW_B1    = ROW_W1T + N                        # (1, 2NU)
ROW_B2    = ROW_B1 + 1
ROW_WO    = ROW_B2 + 1
ROW_W2T   = ((ROW_WO + 1 + 7) // 8) * 8        # (2NU, 2NU) block-diag W2^T
ROW_W2    = ROW_W2T + 2 * NU                   # (2NU, 2NU) block-diag W2
ROW_W1B   = ROW_W2 + 2 * NU                    # (2NU, 2N)  block-diag W1 (lane-padded)
ROW_ZETA  = ROW_W1B + 2 * NU                   # (N*N, N*N) zeta flattened
ROW_XI    = ROW_ZETA + N * N                   # (N*N, N)   xi antisym flattened
ROW_SEG   = ROW_XI + N * N                     # (N*N, N)   segment-sum matrix
SLAB_ROWS = ((ROW_SEG + N * N + 7) // 8) * 8   # 400

_HI = jax.lax.Precision.HIGHEST


def _dot(a, b):
    return jnp.dot(a, b, preferred_element_type=jnp.float32, precision=_HI)


# ----------------------------- Pallas kernel --------------------------------
def odefunc_kernel(y_ref, slab_ref, bcast_ref, out_ref):
    y = y_ref[...]                                          # (ZB, N)
    zb = y.shape[0]
    NN = N * N

    # static views into the packed parameter slab (single DMA'd array)
    w1t   = slab_ref[ROW_W1T:ROW_W1T + N, :]                # (N, 2NU)
    b1    = slab_ref[ROW_B1:ROW_B1 + 1, :]                  # (1, 2NU)
    b2    = slab_ref[ROW_B2:ROW_B2 + 1, :]
    wo    = slab_ref[ROW_WO:ROW_WO + 1, :]
    w2t   = slab_ref[ROW_W2T:ROW_W2T + 2 * NU, :]           # (2NU, 2NU)
    w2    = slab_ref[ROW_W2:ROW_W2 + 2 * NU, :]             # (2NU, 2NU)
    w1b   = slab_ref[ROW_W1B:ROW_W1B + 2 * NU, :]           # (2NU, LANES), lanes 0:2N valid
    zeta2 = slab_ref[ROW_ZETA:ROW_ZETA + NN, :]             # (N*N, N*N)
    xi2t  = slab_ref[ROW_XI:ROW_XI + NN, 0:N]               # (N*N, N)
    seg   = slab_ref[ROW_SEG:ROW_SEG + NN, 0:N]             # (N*N, N)
    bcast = bcast_ref[...]                                  # (LANES, 4*N*N)

    # Fused energy/entropy MLP: forward + analytic d(sum)/dy in one pass.
    h1 = jnp.tanh(_dot(y, w1t) + b1)                        # (ZB, 2NU) = [h1E | h1S]
    h2 = jnp.tanh(_dot(h1, w2t) + b2)                       # (ZB, 2NU)
    g2 = (1.0 - h2 * h2) * wo                               # (ZB, 2NU)
    g1 = (1.0 - h1 * h1) * _dot(g2, w2)                     # (ZB, 2NU)
    dEdS = _dot(g1, w1b)                                    # (ZB, LANES) = [dE | dS | 0...]

    # All four one-hot broadcasts in ONE matmul:
    #   bc = [dE@rep | dE@tile | dS@rep | dS@tile]
    bc = _dot(dEdS, bcast)                                  # (ZB, 4*N*N)
    dE_rep = bc[:, 0 * NN:1 * NN]    # dE[z, k//N]
    dE_til = bc[:, 1 * NN:2 * NN]    # dE[z, k% N]
    dS_rep = bc[:, 2 * NN:3 * NN]
    dS_til = bc[:, 3 * NN:4 * NN]

    # Poisson(dE,dS) and Poisson(dS,dS) share xi2t -> one stacked matmul.
    pois_in = jnp.concatenate([dE_rep * dS_til,             # einsum('abc,zb,zc->za', xi, dE, dS)
                               dS_rep * dS_til],            # einsum(..., dS, dS)
                              axis=0)                       # (2ZB, N*N)
    pois = _dot(pois_in, xi2t)                              # (2ZB, N)

    # friction(dE,dS) and friction(dE,dE) share zeta2 and seg -> stacked matmuls.
    # g[z,(c,d)] = v[z,c]*u[z,d];  p = g @ zeta2 ; result[z,a] = sum_b p[z,(a,b)] * u[z,b]
    g = jnp.concatenate([dS_rep * dE_til,                   # friction(dE, dS)
                         dE_rep * dE_til],                  # friction(dE, dE)
                        axis=0)                             # (2ZB, N*N)
    p = _dot(g, zeta2)                                      # (2ZB, N*N)
    u_til = jnp.concatenate([dE_til, dE_til], axis=0)       # u[z, a*N+b] = dE[z, b]
    fric = _dot(p * u_til, seg)                             # (2ZB, N)

    out_ref[0, :, :] = pois[:zb] + fric[:zb]                # LdE + MdS  (forward output)
    out_ref[1, :, :] = pois[zb:]                            # LdS penalty
    out_ref[2, :, :] = fric[zb:]                            # MdE penalty


# ---------------- constant "parameter glue" (run ONCE, not per RHS call) ----
def prepare_odefunc_constants(params):
    (w1e, b1e, w2e, b2e, woe, _boe) = [np.asarray(a, np.float32) for a in params['energy']]
    (w1s, b1s, w2s, b2s, wos, _bos) = [np.asarray(a, np.float32) for a in params['entropy']]
    xi = np.asarray(params['poisson_xi'], np.float32)
    fL = np.asarray(params['friction_L'], np.float32)
    fD = np.asarray(params['friction_D'], np.float32)

    # antisymmetrize + flatten:  xi2t[b*N + c, a] = xi_antisym[a, b, c]
    xi_a = (xi - xi.transpose(0, 2, 1) + xi.transpose(1, 2, 0)
            - xi.transpose(1, 0, 2) + xi.transpose(2, 0, 1) - xi.transpose(2, 1, 0)) / 6.0
    xi2t = xi_a.transpose(1, 2, 0).reshape(N * N, N)

    # zeta flattened: zeta2[(a,b),(c,d)] = sum_{m,n} L_a[a,b,m] (fD fD^T)[m,n] L_a[c,d,n]
    l_anti = (fL - fL.transpose(1, 0, 2)) / 2.0
    l2a = l_anti.reshape(N * N, D1)
    zeta2 = l2a @ (fD @ fD.T) @ l2a.T                        # (N*N, N*N), symmetric

    # one-hot broadcast / segment-sum matrices
    k = np.arange(N * N)
    rep = (k // N == np.arange(N)[:, None]).astype(np.float32)   # (u@rep)[z,k] = u[z, k//N]
    til = (k %  N == np.arange(N)[:, None]).astype(np.float32)   # (u@til)[z,k] = u[z, k% N]
    seg = rep.T                                                  # sum over b at fixed a

    # ----- slab 1: fused MLP weights + reduction tensors, lane dim LANES -----
    slab = np.zeros((SLAB_ROWS, LANES), np.float32)
    slab[ROW_W1T:ROW_W1T + N, 0:NU]      = w1e.T
    slab[ROW_W1T:ROW_W1T + N, NU:2 * NU] = w1s.T
    slab[ROW_B1, 0:NU] = b1e;                slab[ROW_B1, NU:2 * NU] = b1s
    slab[ROW_B2, 0:NU] = b2e;                slab[ROW_B2, NU:2 * NU] = b2s
    slab[ROW_WO, 0:NU] = woe.reshape(-1);    slab[ROW_WO, NU:2 * NU] = wos.reshape(-1)
    slab[ROW_W2T:ROW_W2T + NU, 0:NU]                  = w2e.T
    slab[ROW_W2T + NU:ROW_W2T + 2 * NU, NU:2 * NU]    = w2s.T
    slab[ROW_W2:ROW_W2 + NU, 0:NU]                    = w2e
    slab[ROW_W2 + NU:ROW_W2 + 2 * NU, NU:2 * NU]      = w2s
    slab[ROW_W1B:ROW_W1B + NU, 0:N]                   = w1e          # (NU, N)
    slab[ROW_W1B + NU:ROW_W1B + 2 * NU, N:2 * N]      = w1s
    slab[ROW_ZETA:ROW_ZETA + N * N, 0:N * N]          = zeta2
    slab[ROW_XI:ROW_XI + N * N, 0:N]                  = xi2t
    slab[ROW_SEG:ROW_SEG + N * N, 0:N]                = seg

    # ----- slab 2: combined broadcast matrix, [dE|dS|0] @ bcast -> 4 products
    NN = N * N
    bcast = np.zeros((LANES, 4 * NN), np.float32)
    bcast[0:N,       0 * NN:1 * NN] = rep
    bcast[0:N,       1 * NN:2 * NN] = til
    bcast[N:2 * N,   2 * NN:3 * NN] = rep
    bcast[N:2 * N,   3 * NN:4 * NN] = til

    return jnp.asarray(slab), jnp.asarray(bcast)


# ----------------------------- per-call wrapper ------------------------------
@jax.jit
def odefunc_forward(t, y, consts):
    del t  # the time argument is unused by the PyTorch module too
    slab, bcast = consts
    Zb = y.shape[0]
    zb = ZB_TILE if (Zb % ZB_TILE == 0 and Zb > ZB_TILE) else Zb
    grid = (Zb // zb,)

    out3 = pl.pallas_call(
        odefunc_kernel,
        out_shape=jax.ShapeDtypeStruct((3, Zb, N), jnp.float32),
        grid=grid,
        in_specs=[
            pl.BlockSpec((zb, N), lambda i: (i, 0)),
            pl.BlockSpec((SLAB_ROWS, LANES), lambda i: (0, 0)),
            pl.BlockSpec((LANES, 4 * N * N), lambda i: (0, 0)),
        ],
        out_specs=pl.BlockSpec((3, zb, N), lambda i: (0, i, 0)),
        compiler_params=pltpu.CompilerParams(dimension_semantics=("parallel",)),
    )(y, slab, bcast)
    return out3[0], out3[1], out3[2]


# ------------------------- pure-JAX reference ------------------------------
def reference_forward(y, p):
    def mlp(yy, w1, b1, w2, b2, wo, bo):
        h1 = jnp.tanh(jnp.dot(yy, w1.T, precision=_HI) + b1)
        h2 = jnp.tanh(jnp.dot(h1, w2.T, precision=_HI) + b2)
        return jnp.dot(h2, wo.T, precision=_HI) + bo

    dE = jax.grad(lambda yy: mlp(yy, *p['energy']).sum())(y)
    dS = jax.grad(lambda yy: mlp(yy, *p['entropy']).sum())(y)

    xi = p['poisson_xi']
    xi_a = (xi
            - jnp.transpose(xi, (0, 2, 1))
            + jnp.transpose(xi, (1, 2, 0))
            - jnp.transpose(xi, (1, 0, 2))
            + jnp.transpose(xi, (2, 0, 1))
            - jnp.transpose(xi, (2, 1, 0))) / 6.0

    def poisson(u, v):
        return jnp.einsum('abc,zb,zc->za', xi_a, u, v, precision=_HI)

    Dm = jnp.dot(p['friction_D'], p['friction_D'].T, precision=_HI)
    L = (p['friction_L'] - jnp.transpose(p['friction_L'], (1, 0, 2))) / 2.0
    zeta = jnp.einsum('abm,mn,cdn->abcd', L, Dm, L, precision=_HI)

    def friction(u, v):
        return jnp.einsum('abmn,zb,zm,zn->za', zeta, u, v, u, precision=_HI)

    out = poisson(dE, dS) + friction(dE, dS)
    return out, poisson(dS, dS), friction(dE, dE)


# ------------------------- deterministic init ------------------------------
def init_params(key):
    ks = jax.random.split(key, 15)

    def linear(kw, kb, fan_in, fan_out):
        s = 1.0 / np.sqrt(fan_in)
        w = jax.random.uniform(kw, (fan_out, fan_in), jnp.float32, -s, s)
        b = jax.random.uniform(kb, (fan_out,), jnp.float32, -s, s)
        return w, b

    w1e, b1e = linear(ks[0], ks[1], N, NU)
    w2e, b2e = linear(ks[2], ks[3], NU, NU)
    woe, boe = linear(ks[4], ks[5], NU, 1)
    w1s, b1s = linear(ks[6], ks[7], N, NU)
    w2s, b2s = linear(ks[8], ks[9], NU, NU)
    wos, bos = linear(ks[10], ks[11], NU, 1)
    return {
        'energy':  (w1e, b1e, w2e, b2e, woe, boe),
        'entropy': (w1s, b1s, w2s, b2s, wos, bos),
        'friction_D': jax.random.normal(ks[12], (D1, D2), jnp.float32),
        'friction_L': jax.random.normal(ks[13], (N, N, D1), jnp.float32),
        'poisson_xi': jax.random.normal(ks[14], (N, N, N), jnp.float32),
    }


if __name__ == "__main__":
    key = jax.random.PRNGKey(0)
    kp, ky = jax.random.split(key)
    params = init_params(kp)
    y = jax.random.normal(ky, (Z, N), jnp.float32)
    t = jnp.float32(0.0)

    # Constant glue computed ONCE (outside the ODE integrator loop).
    consts = prepare_odefunc_constants(params)

    # TODO(synk): the PyTorch module's NFE counter / cached (LdS, MdE) penalties are
    # stateful; here the penalties are returned as extra outputs instead.
    out, lds, mde = jax.block_until_ready(odefunc_forward(t, y, consts))

    ref_out, ref_lds, ref_mde = reference_forward(y, params)
    np.testing.assert_allclose(np.asarray(out), np.asarray(ref_out), rtol=1e-3, atol=1e-3)
    np.testing.assert_allclose(np.asarray(lds), np.asarray(ref_lds), rtol=1e-3, atol=1e-3)
    np.testing.assert_allclose(np.asarray(mde), np.asarray(ref_mde), rtol=1e-3, atol=1e-3)

    print("KERNEL_OK")
</pallas_src>

<mosaic_0001>
module attributes {stable_mosaic.version = 11 : i64} {
  func.func @odefunc_kernel(%arg0: i32, %arg1: memref<32x8xf32, #tpu.memory_space<vmem>>, %arg2: memref<400x64xf32, #tpu.memory_space<vmem>>, %arg3: memref<64x256xf32, #tpu.memory_space<vmem>>, %arg4: memref<3x32x8xf32, #tpu.memory_space<vmem>>) attributes {dimension_semantics = [#tpu.dimension_semantics<parallel>], iteration_bounds = array<i64: 2>, scalar_prefetch = 0 : i64, scratch_operands = 0 : i64, tpu.core_type = #tpu.core_type<tc>, window_params = [{transform_indices = @transform_0, window_bounds = array<i64: 32, 8>}, {pipeline_mode = #tpu.pipeline_mode<synchronous>, transform_indices = @transform_1, window_bounds = array<i64: 400, 64>}, {pipeline_mode = #tpu.pipeline_mode<synchronous>, transform_indices = @transform_2, window_bounds = array<i64: 64, 256>}, {transform_indices = @transform_3, window_bounds = array<i64: 3, 32, 8>}]} {
    %c0 = arith.constant 0 : index
    %c0_0 = arith.constant 0 : index
    %0 = vector.load %arg1[%c0, %c0_0] : memref<32x8xf32, #tpu.memory_space<vmem>>, vector<32x8xf32>
    %c0_1 = arith.constant 0 : index
    %c0_2 = arith.constant 0 : index
    %1 = vector.load %arg2[%c0_1, %c0_2] : memref<400x64xf32, #tpu.memory_space<vmem>>, vector<8x64xf32>
    %c8 = arith.constant 8 : index
    %c0_3 = arith.constant 0 : index
    %2 = vector.load %arg2[%c8, %c0_3] : memref<400x64xf32, #tpu.memory_space<vmem>>, vector<1x64xf32>
    %c9 = arith.constant 9 : index
    %c0_4 = arith.constant 0 : index
    %3 = vector.load %arg2[%c9, %c0_4] : memref<400x64xf32, #tpu.memory_space<vmem>>, vector<1x64xf32>
    %c10 = arith.constant 10 : index
    %c0_5 = arith.constant 0 : index
    %4 = vector.load %arg2[%c10, %c0_5] : memref<400x64xf32, #tpu.memory_space<vmem>>, vector<1x64xf32>
    %c16 = arith.constant 16 : index
    %c0_6 = arith.constant 0 : index
    %5 = vector.load %arg2[%c16, %c0_6] : memref<400x64xf32, #tpu.memory_space<vmem>>, vector<64x64xf32>
    %c80 = arith.constant 80 : index
    %c0_7 = arith.constant 0 : index
    %6 = vector.load %arg2[%c80, %c0_7] : memref<400x64xf32, #tpu.memory_space<vmem>>, vector<64x64xf32>
    %c144 = arith.constant 144 : index
    %c0_8 = arith.constant 0 : index
    %7 = vector.load %arg2[%c144, %c0_8] : memref<400x64xf32, #tpu.memory_space<vmem>>, vector<64x64xf32>
    %c208 = arith.constant 208 : index
    %c0_9 = arith.constant 0 : index
    %8 = vector.load %arg2[%c208, %c0_9] : memref<400x64xf32, #tpu.memory_space<vmem>>, vector<64x64xf32>
    %c272 = arith.constant 272 : index
    %c0_10 = arith.constant 0 : index
    %9 = vector.load %arg2[%c272, %c0_10] : memref<400x64xf32, #tpu.memory_space<vmem>>, vector<64x8xf32>
    %c336 = arith.constant 336 : index
    %c0_11 = arith.constant 0 : index
    %10 = vector.load %arg2[%c336, %c0_11] : memref<400x64xf32, #tpu.memory_space<vmem>>, vector<64x8xf32>
    %c0_12 = arith.constant 0 : index
    %c0_13 = arith.constant 0 : index
    %11 = vector.load %arg3[%c0_12, %c0_13] : memref<64x256xf32, #tpu.memory_space<vmem>>, vector<64x256xf32>
    %cst = arith.constant dense<0.000000e+00> : vector<32x64xf32>
    %12 = tpu.matmul %0, %1, %cst {dimension_numbers = #tpu.dot_dimension_numbers<[1], [0], [0], [1], [0, 0, 1, 1], [], []>, precision = #tpu.contract_precision<fp32>} : vector<32x8xf32>, vector<8x64xf32>, vector<32x64xf32> -> vector<32x64xf32>
    %13 = vector.broadcast %2 : vector<1x64xf32> to vector<32x64xf32>
    %14 = arith.addf %12, %13 : vector<32x64xf32>
    %15 = math.tanh %14 : vector<32x64xf32>
    %cst_14 = arith.constant dense<0.000000e+00> : vector<32x64xf32>
    %16 = tpu.matmul %15, %5, %cst_14 {dimension_numbers = #tpu.dot_dimension_numbers<[1], [0], [0], [1], [0, 0, 1, 1], [], []>, precision = #tpu.contract_precision<fp32>} : vector<32x64xf32>, vector<64x64xf32>, vector<32x64xf32> -> vector<32x64xf32>
    %17 = vector.broadcast %3 : vector<1x64xf32> to vector<32x64xf32>
    %18 = arith.addf %16, %17 : vector<32x64xf32>
    %19 = math.tanh %18 : vector<32x64xf32>
    %20 = arith.mulf %19, %19 : vector<32x64xf32>
    %cst_15 = arith.constant 1.000000e+00 : f32
    %21 = vector.broadcast %cst_15 : f32 to vector<32x64xf32>
    %22 = arith.subf %21, %20 : vector<32x64xf32>
    %23 = vector.broadcast %4 : vector<1x64xf32> to vector<32x64xf32>
    %24 = arith.mulf %22, %23 : vector<32x64xf32>
    %25 = arith.mulf %15, %15 : vector<32x64xf32>
    %cst_16 = arith.constant 1.000000e+00 : f32
    %26 = vector.broadcast %cst_16 : f32 to vector<32x64xf32>
    %27 = arith.subf %26, %25 : vector<32x64xf32>
    %cst_17 = arith.constant dense<0.000000e+00> : vector<32x64xf32>
    %28 = tpu.matmul %24, %6, %cst_17 {dimension_numbers = #tpu.dot_dimension_numbers<[1], [0], [0], [1], [0, 0, 1, 1], [], []>, precision = #tpu.contract_precision<fp32>} : vector<32x64xf32>, vector<64x64xf32>, vector<32x64xf32> -> vector<32x64xf32>
    %29 = arith.mulf %27, %28 : vector<32x64xf32>
    %cst_18 = arith.constant dense<0.000000e+00> : vector<32x64xf32>
    %30 = tpu.matmul %29, %7, %cst_18 {dimension_numbers = #tpu.dot_dimension_numbers<[1], [0], [0], [1], [0, 0, 1, 1], [], []>, precision = #tpu.contract_precision<fp32>} : vector<32x64xf32>, vector<64x64xf32>, vector<32x64xf32> -> vector<32x64xf32>
    %cst_19 = arith.constant dense<0.000000e+00> : vector<32x256xf32>
    %31 = tpu.matmul %30, %11, %cst_19 {dimension_numbers = #tpu.dot_dimension_numbers<[1], [0], [0], [1], [0, 0, 1, 1], [], []>, precision = #tpu.contract_precision<fp32>} : vector<32x64xf32>, vector<64x256xf32>, vector<32x256xf32> -> vector<32x256xf32>
    %32 = vector.extract_strided_slice %31 {offsets = [0, 0], sizes = [32, 64], strides = [1, 1]} : vector<32x256xf32> to vector<32x64xf32>
    %33 = vector.extract_strided_slice %31 {offsets = [0, 64], sizes = [32, 64], strides = [1, 1]} : vector<32x256xf32> to vector<32x64xf32>
    %34 = vector.extract_strided_slice %31 {offsets = [0, 128], sizes = [32, 64], strides = [1, 1]} : vector<32x256xf32> to vector<32x64xf32>
    %35 = vector.extract_strided_slice %31 {offsets = [0, 192], sizes = [32, 64], strides = [1, 1]} : vector<32x256xf32> to vector<32x64xf32>
    %36 = arith.mulf %32, %35 : vector<32x64xf32>
    %37 = arith.mulf %34, %35 : vector<32x64xf32>
    %38 = tpu.concatenate %36, %37 in 0 : vector<32x64xf32>, vector<32x64xf32> -> vector<64x64xf32>
    %cst_20 = arith.constant dense<0.000000e+00> : vector<64x8xf32>
    %39 = tpu.matmul %38, %9, %cst_20 {dimension_numbers = #tpu.dot_dimension_numbers<[1], [0], [0], [1], [0, 0, 1, 1], [], []>, precision = #tpu.contract_precision<fp32>} : vector<64x64xf32>, vector<64x8xf32>, vector<64x8xf32> -> vector<64x8xf32>
    %40 = arith.mulf %34, %33 : vector<32x64xf32>
    %41 = arith.mulf %32, %33 : vector<32x64xf32>
    %42 = tpu.concatenate %40, %41 in 0 : vector<32x64xf32>, vector<32x64xf32> -> vector<64x64xf32>
    %cst_21 = arith.constant dense<0.000000e+00> : vector<64x64xf32>
    %43 = tpu.matmul %42, %8, %cst_21 {dimension_numbers = #tpu.dot_dimension_numbers<[1], [0], [0], [1], [0, 0, 1, 1], [], []>, precision = #tpu.contract_precision<fp32>} : vector<64x64xf32>, vector<64x64xf32>, vector<64x64xf32> -> vector<64x64xf32>
    %44 = tpu.concatenate %33, %33 in 0 : vector<32x64xf32>, vector<32x64xf32> -> vector<64x64xf32>
    %45 = arith.mulf %43, %44 : vector<64x64xf32>
    %cst_22 = arith.constant dense<0.000000e+00> : vector<64x8xf32>
    %46 = tpu.matmul %45, %10, %cst_22 {dimension_numbers = #tpu.dot_dimension_numbers<[1], [0], [0], [1], [0, 0, 1, 1], [], []>, precision = #tpu.contract_precision<fp32>} : vector<64x64xf32>, vector<64x8xf32>, vector<64x8xf32> -> vector<64x8xf32>
    %47 = vector.extract_strided_slice %39 {offsets = [0, 0], sizes = [32, 8], strides = [1, 1]} : vector<64x8xf32> to vector<32x8xf32>
    %48 = vector.extract_strided_slice %46 {offsets = [0, 0], sizes = [32, 8], strides = [1, 1]} : vector<64x8xf32> to vector<32x8xf32>
    %49 = arith.addf %47, %48 : vector<32x8xf32>
    %c0_23 = arith.constant 0 : index
    %c0_24 = arith.constant 0 : index
    %c0_25 = arith.constant 0 : index
    %50 = vector.load %arg4[%c0_23, %c0_24, %c0_25] : memref<3x32x8xf32, #tpu.memory_space<vmem>>, vector<1x32x8xf32>
    %51 = vector.shape_cast %50 : vector<1x32x8xf32> to vector<32x8xf32>
    %52 = vector.shape_cast %49 : vector<32x8xf32> to vector<1x32x8xf32>
    tpu.vector_store %arg4[%c0_23, %c0_24, %c0_25], %52 {strides = array<i32>} : memref<3x32x8xf32, #tpu.memory_space<vmem>>, vector<1x32x8xf32>,
    %53 = vector.extract_strided_slice %39 {offsets = [32, 0], sizes = [32, 8], strides = [1, 1]} : vector<64x8xf32> to vector<32x8xf32>
    %c1 = arith.constant 1 : index
    %c0_26 = arith.constant 0 : index
    %c0_27 = arith.constant 0 : index
    %54 = vector.load %arg4[%c1, %c0_26, %c0_27] : memref<3x32x8xf32, #tpu.memory_space<vmem>>, vector<1x32x8xf32>
    %55 = vector.shape_cast %54 : vector<1x32x8xf32> to vector<32x8xf32>
    %56 = vector.shape_cast %53 : vector<32x8xf32> to vector<1x32x8xf32>
    tpu.vector_store %arg4[%c1, %c0_26, %c0_27], %56 {strides = array<i32>} : memref<3x32x8xf32, #tpu.memory_space<vmem>>, vector<1x32x8xf32>,
    %57 = vector.extract_strided_slice %46 {offsets = [32, 0], sizes = [32, 8], strides = [1, 1]} : vector<64x8xf32> to vector<32x8xf32>
    %c2 = arith.constant 2 : index
    %c0_28 = arith.constant 0 : index
    %c0_29 = arith.constant 0 : index
    %58 = vector.load %arg4[%c2, %c0_28, %c0_29] : memref<3x32x8xf32, #tpu.memory_space<vmem>>, vector<1x32x8xf32>
    %59 = vector.shape_cast %58 : vector<1x32x8xf32> to vector<32x8xf32>
    %60 = vector.shape_cast %57 : vector<32x8xf32> to vector<1x32x8xf32>
    tpu.vector_store %arg4[%c2, %c0_28, %c0_29], %60 {strides = array<i32>} : memref<3x32x8xf32, #tpu.memory_space<vmem>>, vector<1x32x8xf32>,
    return
  }
  func.func @transform_0(%arg0: i32) -> (i32, i32) {
    %c0_i32 = arith.constant 0 : i32
    %c0_i32_0 = arith.constant 0 : i32
    return %arg0, %c0_i32 : i32, i32
  }
  func.func @transform_1(%arg0: i32) -> (i32, i32) {
    %c0_i32 = arith.constant 0 : i32
    %c0_i32_0 = arith.constant 0 : i32
    %c0_i32_1 = arith.constant 0 : i32
    return %c0_i32, %c0_i32_0 : i32, i32
  }
  func.func @transform_2(%arg0: i32) -> (i32, i32) {
    %c0_i32 = arith.constant 0 : i32
    %c0_i32_0 = arith.constant 0 : i32
    %c0_i32_1 = arith.constant 0 : i32
    return %c0_i32, %c0_i32_0 : i32, i32
  }
  func.func @transform_3(%arg0: i32) -> (i32, i32, i32) {
    %c0_i32 = arith.constant 0 : i32
    %c0_i32_0 = arith.constant 0 : i32
    %c0_i32_1 = arith.constant 0 : i32
    return %c0_i32, %arg0, %c0_i32_0 : i32, i32, i32
  }
}

</mosaic_0001>

<bundles_post_ra>
// kernel: odefunc_forward.1
= control target key start
LH: loop header
LB: loop body
LE: loop exit
PB: predicated region body
PF: predicated region fallthrough
CT: control target
= control target key end

     0   :  { %s3981_s12 = smov 0   ;;  %s3983_s13 = smov 0   ;;  %s5523_s0 = inlined_call_operand.vmem [shape: f32[64,8], index: 0, kind: input, shape index: {}]   ;;  %s5524_s1 = inlined_call_operand.vmem [shape: f32[400,64], index: 1, kind: input, shape index: {}]   ;;  %s5525_s2 = inlined_call_operand.vmem [shape: f32[64,256], index: 2, kind: input, shape index: {}]   ;;  %s5526_s3 = inlined_call_operand.vmem [shape: f32[3,64,8], index: 3, kind: output, shape index: {}]  }
   0x1   :  { %s3985_s14 = smov 0  }
   0x2 LB: > { %s3994_s15 = sadd.s32 4294967295, %s3958_s14   ;;  %s3996_s16 = sadd.s32 1, %s3958_s14   ;;  %s3958_s14 = sphi %s3985_s14, %s5568_s14   ;;  %s3954_s13 = sphi %s3983_s13, %s5567_s13   ;;  %s3950_s12 = sphi %s3981_s12, %s5566_s12  }
   0x3   : > { %s85_s17 = ssub.s32 %s3958_s14, %s3996_s16  ;;  %s88_s18 = sadd.s32 1, %s3954_s13 }
   0x4   : > { %p86_p0 = scmp.eq.s32.totalorder %s85_s17, 0  ;;  %p98_p1 = scmp.ne.s32.totalorder %s3954_s13, %s3950_s12 }
   0x5   : > { %p99_p2 = scmp.eq.s32.totalorder %s3994_s15, 1  ;;  %p3875_p3 = scmp.ge.s32.totalorder %s3958_s14, 1 }
   0x6   : > { %s4004_s19 = scalar_select %p86_p0, %s3954_s13, %s88_s18  }
   0x7   : > { %p4006_p4 = por %p99_p2, %p98_p1  ;;  %p138_p5 = scmp.lt.s32.totalorder %s3958_s14, 3 }
   0x9   : > { %p139_p6 = pnand %p3875_p3, %p138_p5 }
   0xb   : > { %142 = sbr.rel (%p139_p6) target bundleno = 1630 (0x65e), region = 32 }
  0x10   : > { %v172_v0 = vld [vmem:[%s5524_s1] sm:$0xff]  ;;  %s3876_s23 = sshll.u32 %s3994_s15, 2  ;;  %vm241_vm0 = vcmask 64512   ;;  %v183_v35 = vld [vmem:[%s5524_s1 + $0x48] sm:$0xff]  ;;  %v181_v40 = vld [vmem:[%s5524_s1 + $0x38] sm:$0xff]  ;;  %vm498_vm1 = vcmask 523264  }
  0x11   : > { %v269_v1 = vand.u32 4294901760, %v172_v0  ;;  %p162_p7 = scmp.lt.s32.totalorder %s3876_s23, 7  ;;  %v4026_v36 = vand.u32 4294901760, %v183_v35  ;;  %v182_v37 = vld [vmem:[%s5524_s1 + $0x40] sm:$0xff]  ;;  %v4046_v43 = vand.u32 4294901760, %v181_v40  ;;  %v180_v44 = vld [vmem:[%s5524_s1 + $0x30] sm:$0xff] }
  0x12   : > { %v4035_v39 = vand.u32 4294901760, %v182_v37  ;;  %v4063_v49 = vand.u32 4294901760, %v180_v44  ;;  %v179_v51 = vld [vmem:[%s5524_s1 + $0x28] sm:$0xff]  ;;  %v178_v57 = vld [vmem:[%s5524_s1 + $0x20] sm:$0xff]  ;;  %v177_v63 = vld [vmem:[%s5524_s1 + $0x18] sm:$0xff]  ;;  %s3960_s30 = smov 64  }
  0x13   : > { %270 = vmatpush.msra.mxu2 %v269_v1  ;;  %s5570_s23 = smov (!%p162_p7, %s3876_s23), 7  ;;  %v320_v2 = vsub.f32 %v172_v0, %v269_v1  ;;  %475 = vmatpush.msra.mxu1 %v269_v1  ;;  %v4033_v38 = vsub.f32 %v183_v35, %v4026_v36  ;;  %v4061_v48 = vsub.f32 %v181_v40, %v4046_v43  ;;  %v4079_v56 = vand.u32 4294901760, %v179_v51  ;;  %s158_s4 = sand.u32 1, %s3950_s12  }
  0x14   : > { %s3877_s24 = sshll.u32 %s5570_s23, 3  ;;  %v4044_v42 = vsub.f32 %v182_v37, %v4035_v39  ;;  %v595_v55 = vsub.f32 %v180_v44, %v4063_v49  ;;  %v4086_v61 = vand.u32 4294901760, %v178_v57  ;;  %s3891_s7 = smul.u32 96, %s158_s4 }
  0x15   : > { %359 = vmatpush.msrb.mxu2 %v320_v2  ;;  %v321_v3 = vand.u32 4294901760, %v320_v2  ;;  %s165_s27 = scalar_lea.vmem %s5523_s0, %s3877_s24  ;;  %703 = vmatpush.msrb.mxu1 %v4026_v36  ;;  %v578_v41 = vand.u32 4294901760, %v4033_v38  ;;  %v590_v54 = vand.u32 4294901760, %v4061_v48  ;;  %v601_v62 = vsub.f32 %v179_v51, %v4079_v56  ;;  %s3890_s14 = sshll.u32 (%p4006_p4), %s3994_s15, 5 }
  0x16   : > { %v168_v4 = vld [vmem:[%s165_s27] sm:$0xff]  ;;  %v169_v6 = vld [vmem:[%s165_s27 + $0x8] sm:$0xff]  ;;  %v170_v12 = vld [vmem:[%s165_s27 + $0x10] sm:$0xff]  ;;  %v584_v47 = vand.u32 4294901760, %v4044_v42  ;;  %v596_v60 = vand.u32 4294901760, %v595_v55  ;;  %s5320_s11 = scalar_lea.vmem [#allocation2], %s3891_s7  ;;  %s3743_s21 = scalar_lea.vmem (%p4006_p4), %s5526_s3, %s3890_s14 }
  0x17   : > { %v322_v5 = vsub.f32 %v320_v2, %v321_v3  ;;  %441 = vmatpush.msra.mxu0 %v321_v3  ;;  %v243_v7 = vsel %vm241_vm0, %v168_v4, 0  ;;  %v246_v8 = vsel %vm241_vm0, %v169_v6, 0  ;;  %v249_v15 = vsel %vm241_vm0, %v170_v12, 0  ;;  %v171_v21 = vld [vmem:[%s165_s27 + $0x18] sm:$0xff]  ;;  %705 = vmatpush.msrb.mxu1 %v4035_v39 }
  0x18   : > { %v271_v9 = vand.u32 4294901760, %v243_v7  ;;  %v279_v11 = vand.u32 4294901760, %v246_v8  ;;  %v287_v19 = vand.u32 4294901760, %v249_v15  ;;  %v252_v24 = vsel %vm241_vm0, %v171_v21, 0 }
  0x19   : > { %v323_v10 = vand.u32 4294901760, %v322_v5  ;;  %v295_v27 = vand.u32 4294901760, %v252_v24  ;;  %651 = vmatpush.msrb.mxu0 %v4033_v38  ;;  %v579_v46 = vsub.f32 %v4033_v38, %v578_v41  ;;  %707 = vmatpush.msrb.mxu1 %v4046_v43  ;;  %v585_v53 = vsub.f32 %v4044_v42, %v584_v47  ;;  %v176_v5 = vld [vmem:[%s5524_s1 + $0x10] sm:$0xff] }
  0x1a   : > { %v272_v13 = vsub.f32 %v243_v7, %v271_v9  ;;  %v280_v14 = vsub.f32 %v246_v8, %v279_v11  ;;  %443 = vmatmul.f32.vlgmr.msra.gmra.mxu0 %v271_v9  ;;  %477 = vmatmul.f32.vlgmr.msra.gmra.mxu1 %v271_v9  ;;  %v288_v23 = vsub.f32 %v249_v15, %v287_v19  ;;  %v531_v3 = vand.u32 4294901760, %v177_v63 }
  0x1b   : > { %324 = vmatpush.msra.mxu3 %v323_v10  ;;  %v296_v29 = vsub.f32 %v252_v24, %v295_v27  ;;  %654 = vmatpush.msrb.mxu0 %v4044_v42  ;;  %v580_v52 = vand.u32 4294901760, %v579_v46  ;;  %v586_v58 = vand.u32 4294901760, %v585_v53  ;;  %v591_v59 = vsub.f32 %v4061_v48, %v590_v54 }
  0x1c   : > { %326 = vmatmul.f32.vlgmr.msra.gmra.mxu3 %v271_v9  ;;  %v273_v16 = vand.u32 4294901760, %v272_v13  ;;  %v281_v18 = vand.u32 4294901760, %v280_v14  ;;  %v289_v26 = vand.u32 4294901760, %v288_v23  ;;  %709 = vmatpush.msrb.mxu1 %v4063_v49  ;;  %v607_v2 = vsub.f32 %v178_v57, %v4086_v61 }
  0x1d   : > { %397 = vmatpush.msrb.mxu3 %v269_v1  ;;  %v297_v31 = vand.u32 4294901760, %v296_v29  ;;  %657 = vmatpush.msrb.mxu0 %v4061_v48  ;;  %v592_v0 = vand.u32 4294901760, %v591_v59  ;;  %v597_v1 = vsub.f32 %v595_v55, %v596_v60  ;;  %v602_v4 = vand.u32 4294901760, %v601_v62 }
  0x1e   : > { %v274_v17 = vsub.f32 %v272_v13, %v273_v16  ;;  %v282_v22 = vsub.f32 %v280_v14, %v281_v18  ;;  %v290_v28 = vsub.f32 %v288_v23, %v289_v26  ;;  %711 = vmatpush.msrb.mxu1 %v4079_v56  ;;  %v608_v8 = vand.u32 4294901760, %v607_v2 }
  0x1f   : > { %v298_v32 = vsub.f32 %v296_v29, %v297_v31  ;;  %581 = vmatpush.msra.mxu3 %v580_v52  ;;  %660 = vmatpush.msrb.mxu0 %v595_v55  ;;  %v598_v7 = vand.u32 4294901760, %v597_v1  ;;  %v613_v9 = vsub.f32 %v177_v63, %v531_v3  ;;  %v533_v10 = vand.u32 4294901760, %v176_v5 }
  0x20   : > { %v275_v20 = vand.u32 4294901760, %v274_v17  ;;  %v283_v25 = vand.u32 4294901760, %v282_v22  ;;  %v291_v30 = vand.u32 4294901760, %v290_v28  ;;  %713 = vmatpush.msrb.mxu1 %v4086_v61  ;;  %v603_v12 = vsub.f32 %v601_v62, %v602_v4 }
  0x21   : > { %v299_v33 = vand.u32 4294901760, %v298_v32  ;;  %587 = vmatpush.msra.mxu3 %v586_v58  ;;  %663 = vmatpush.msrb.mxu0 %v601_v62  ;;  %v619_v15 = vsub.f32 %v176_v5, %v533_v10 }
  0x22   : > { %276 = vmatmul.f32.vlgmr.msra.gmra.mxu2 %v275_v20  ;;  %447 = vmatmul.f32.gmra.mxu0 %v279_v11 }
  0x23   : > { %481 = vmatmul.f32.gmra.mxu1 %v279_v11  ;;  %520 = vmatpush.msra.mxu2 %v4026_v36 }
  0x24   : > { %330 = vmatmul.f32.gmra.mxu3 %v279_v11  ;;  %666 = vmatpush.msrb.mxu0 %v607_v2 }
  0x25   : > { %522 = vmatpush.msra.mxu2 %v4035_v39  ;;  %593 = vmatpush.msra.mxu3 %v592_v0 }
  0x26   : > { %715 = vmatpush.msrb.mxu1 %v531_v3  ;;  %669 = vmatpush.msrb.mxu0 %v613_v9 }
  0x27   : > { %524 = vmatpush.msra.mxu2 %v4046_v43  ;;  %599 = vmatpush.msra.mxu3 %v598_v7 }
  0x28   : > { %717 = vmatpush.msrb.mxu1 %v533_v10  ;;  %672 = vmatpush.msrb.mxu0 %v619_v15 }
  0x29   : > { %526 = vmatpush.msra.mxu2 %v4063_v49 }
  0x2a   : > { %284 = vmatmul.f32.gmra.mxu2 %v283_v25  ;;  %451 = vmatmul.f32.gmra.mxu0 %v287_v19  ;;  %v3917_v25 = vld [vmem:[%s5524_s1 + $0x8] ss:$0 sm:$0xff] }
  0x2b   : > { %485 = vmatmul.f32.gmra.mxu1 %v287_v19  ;;  %528 = vmatpush.msra.mxu2 %v4079_v56 }
  0x2c   : > { %334 = vmatmul.f32.gmra.mxu3 %v287_v19  ;;  %v620_v19 = vand.u32 4294901760, %v619_v15 }
  0x2d   : > { %530 = vmatpush.msra.mxu2 %v4086_v61 }
  0x2e   : > { %v621_v21 = vsub.f32 %v619_v15, %v620_v19 }
  0x2f   : > { %532 = vmatpush.msra.mxu2 %v531_v3 }
  0x31   : > { %534 = vmatpush.msra.mxu2 %v533_v10 }
  0x32   : > { %292 = vmatmul.f32.gmra.mxu2 %v291_v30  ;;  %455 = vmatmul.f32.gmra.mxu0 %v295_v27 }
  0x33   : > { %489 = vmatmul.f32.gmra.mxu1 %v295_v27 }
  0x34   : > { %338 = vmatmul.f32.gmra.mxu3 %v295_v27 }
  0x3a   : > { %300 = vmatmul.f32.gmra.mxu2 %v299_v33 }
  0x3c   : > { %401 = vmatmul.f32.vlgmr.msrb.gmra.mxu3 %v273_v16  ;;  %v604_v16 = vand.u32 4294901760, %v603_v12 }
  0x3e   : > { %605 = vmatpush.msra.mxu3 %v604_v16 }
  0x42   : > { %362 = vmatmul.f32.vlgmr.msrb.gmra.mxu2 %v272_v13  ;;  %v609_v13 = vsub.f32 %v607_v2, %v608_v8 }
  0x43   : > { %754 = vmatpush.msrb.mxu2 %v578_v41 }
  0x44   : > { %407 = vmatmul.f32.gmra.mxu3 %v281_v18  ;;  %v610_v17 = vand.u32 4294901760, %v609_v13 }
  0x45   : > { %758 = vmatpush.msrb.mxu2 %v584_v47 }
  0x46   : > { %611 = vmatpush.msra.mxu3 %v610_v17 }
  0x47   : > { %762 = vmatpush.msrb.mxu2 %v590_v54 }
  0x49   : > { %766 = vmatpush.msrb.mxu2 %v596_v60 }
  0x4a   : > { %367 = vmatmul.f32.gmra.mxu2 %v280_v14  ;;  %v614_v14 = vand.u32 4294901760, %v613_v9 }
  0x4b   : > { %770 = vmatpush.msrb.mxu2 %v602_v4 }
  0x4c   : > { %413 = vmatmul.f32.gmra.mxu3 %v289_v26  ;;  %v615_v18 = vsub.f32 %v613_v9, %v614_v14 }
  0x4d   : > { %774 = vmatpush.msrb.mxu2 %v608_v8 }
  0x4e   : > { %v616_v20 = vand.u32 4294901760, %v615_v18 }
  0x4f   : > { %778 = vmatpush.msrb.mxu2 %v614_v14 }
  0x50   : > { %617 = vmatpush.msra.mxu3 %v616_v20 }
  0x51   : > { %782 = vmatpush.msrb.mxu2 %v620_v19 }
  0x52   : > { %372 = vmatmul.f32.gmra.mxu2 %v288_v23  ;;  %v622_v23 = vand.u32 4294901760, %v621_v21 }
  0x54   : > { %419 = vmatmul.f32.gmra.mxu3 %v297_v31 }
  0x55   : > { %623 = vmatpush.msra.mxu3 %v622_v23 }
  0x57   : > { %809 = vmatpush.msrb.mxu3 %v4026_v36 }
  0x59   : > { %811 = vmatpush.msrb.mxu3 %v4035_v39 }
  0x5a   : > { %377 = vmatmul.f32.gmra.mxu2 %v296_v29 }
  0x5b   : > { %813 = vmatpush.msrb.mxu3 %v4046_v43 }
  0x5d   : > { %815 = vmatpush.msrb.mxu3 %v4063_v49 }
  0x5f   : > { %817 = vmatpush.msrb.mxu3 %v4079_v56 }
  0x61   : > { %819 = vmatpush.msrb.mxu3 %v4086_v61 }
  0x63   : > { %821 = vmatpush.msrb.mxu3 %v531_v3 }
  0x65   : > { %823 = vmatpush.msrb.mxu3 %v533_v10 }
  0x97   : > { %v444_v29 = vpop.f32.mrf.mxu0  ;;  %v478_v30 = vpop.f32.mrf.mxu1 }
  0x9f   : > { %v4021_v34 = vpop.f32.mrf.mxu3  ;;  %v448_v39 = vpop.f32.mrf.mxu0 }
  0xa0   : > { %v482_v43 = vpop.f32.mrf.mxu1 }
  0xa5   : > { %v4053_v45 = vpop.f32.mrf.mxu2 }
  0xa6   : > { %v278_v28 = vadd.f32 %v3917_v25, %v4053_v45 }
  0xa7   : > { %v4066_v50 = vpop.f32.mrf.mxu3 }
  0xa8   : > { %v328_v31 = vadd.f32 %v4021_v34, %v278_v28  ;;  %v486_v56 = vpop.f32.mrf.mxu1 }
  0xad   : > { %v285_v6 = vpop.f32.mrf.mxu2 }
  0xae   : > { %v286_v35 = vadd.f32 %v3917_v25, %v285_v6 }
  0xaf   : > { %v4100_v11 = vpop.f32.mrf.mxu3 }
  0xb0   : > { %v332_v40 = vadd.f32 %v4066_v50, %v286_v35  ;;  %v452_v50 = vpop.f32.mrf.mxu0  ;;  %v190_v35 = vld [vmem:[%s5524_s1 + $0x80] sm:$0xff] }
  0xb5   : > { %v293_v22 = vpop.f32.mrf.mxu2 }
  0xb6   : > { %v294_v45 = vadd.f32 %v3917_v25, %v293_v22 }
  0xb7   : > { %v339_v24 = vpop.f32.mrf.mxu3 }
  0xb8   : > { %v336_v49 = vadd.f32 %v4100_v11, %v294_v45  ;;  %v456_v8 = vpop.f32.mrf.mxu0  ;;  %v490_v11 = vpop.f32.mrf.mxu1 }
  0xbd   : > { %v301_v26 = vpop.f32.mrf.mxu2 }
  0xbe   : > { %v302_v57 = vadd.f32 %v3917_v25, %v301_v26 }
  0xbf   : > { %v402_v27 = vpop.f32.mrf.mxu3 }
  0xc0   : > { %v340_v63 = vadd.f32 %v339_v24, %v302_v57 }
  0xc5   : > { %v363_v32 = vpop.f32.mrf.mxu2 }
  0xc6   : > { %v364_v33 = vadd.f32 %v363_v32, %v328_v31  ;;  %v191_v32 = vld [vmem:[%s5524_s1 + $0x88] sm:$0xff] }
  0xc7   : > { %v408_v37 = vpop.f32.mrf.mxu3 }
  0xc8   : > { %v403_v36 = vadd.f32 %v402_v27, %v364_v33  ;;  %v4140_v33 = vand.u32 4294901760, %v191_v32 }
  0xca   : > { %v445_v38 = vadd.f32 %v444_v29, %v403_v36  ;;  %887 = vmatpush.msra.mxu0 %v4140_v33  ;;  %v4147_v36 = vsub.f32 %v191_v32, %v4140_v33 }
  0xcc   : > { %v479_v41 = vadd.f32 %v478_v30, %v445_v38  ;;  %v189_v38 = vld [vmem:[%s5524_s1 + $0x78] sm:$0xff] }
  0xcd   : > { %v368_v42 = vpop.f32.mrf.mxu2 }
  0xce   : > { %3920 = vtanh.f32 %v479_v41  ;;  %v369_v44 = vadd.f32 %v368_v42, %v332_v40  ;;  %v945_v41 = vand.u32 4294901760, %v4147_v36 }
  0xcf   : > { %v414_v34 = vpop.f32.mrf.mxu3 }
  0xd0   : > { %v409_v46 = vadd.f32 %v408_v37, %v369_v44  ;;  %v4149_v37 = vand.u32 4294901760, %v190_v35  ;;  %v188_v44 = vld [vmem:[%s5524_s1 + $0x70] sm:$0xff]  ;;  %v946_v45 = vsub.f32 %v4147_v36, %v945_v41 }
  0xd2   : > { %v449_v47 = vadd.f32 %v448_v39, %v409_v46  ;;  %889 = vmatpush.msra.mxu0 %v4149_v37  ;;  %v4162_v42 = vsub.f32 %v190_v35, %v4149_v37 }
  0xd4   : > { %v4118_v48 = vpop.eup %3920  ;;  %v483_v51 = vadd.f32 %v482_v43, %v449_v47  ;;  %v4164_v43 = vand.u32 4294901760, %v189_v38  ;;  %v951_v46 = vand.u32 4294901760, %v4162_v42 }
  0xd5   : > { %v373_v52 = vpop.f32.mrf.mxu2  ;;  %v500_v53 = vsel %vm498_vm1, %v4118_v48, 0 }
  0xd6   : > { %3922 = vtanh.f32 %v483_v51  ;;  %v374_v54 = vadd.f32 %v373_v52, %v336_v49  ;;  %v535_v55 = vand.u32 4294901760, %v500_v53  ;;  %891 = vmatpush.msra.mxu0 %v4164_v43  ;;  %v4177_v47 = vsub.f32 %v189_v38, %v4164_v43  ;;  %v187_v49 = vld [vmem:[%s5524_s1 + $0x68] sm:$0xff] }
  0xd7   : > { %v420_v3 = vpop.f32.mrf.mxu3  ;;  %v947_v51 = vand.u32 4294901760, %v946_v45  ;;  %v952_v52 = vsub.f32 %v4162_v42, %v951_v46 }
  0xd8   : > { %v415_v58 = vadd.f32 %v414_v34, %v374_v54  ;;  %625 = vmatmul.f32.vlgmr.msra.gmra.mxu3 %v535_v55  ;;  %v536_v59 = vsub.f32 %v500_v53, %v535_v55  ;;  %v4179_v34 = vand.u32 4294901760, %v188_v44  ;;  %v957_v53 = vand.u32 4294901760, %v4177_v47 }
  0xd9   : > { %1070 = vmatpush.msra.mxu3 %v4140_v33  ;;  %v4193_v54 = vand.u32 4294901760, %v187_v49  ;;  %948 = vmatpush.msra.mxu1 %v947_v51 }
  0xda   : > { %v453_v60 = vadd.f32 %v452_v50, %v415_v58  ;;  %675 = vmatmul.f32.vlgmr.msrb.gmra.mxu0 %v536_v59  ;;  %v537_v61 = vand.u32 4294901760, %v536_v59  ;;  %v962_v50 = vsub.f32 %v188_v44, %v4179_v34  ;;  %v958_v57 = vsub.f32 %v4177_v47, %v957_v53 }
  0xdb   : > { %1072 = vmatpush.msra.mxu3 %v4149_v37  ;;  %893 = vmatpush.msra.mxu0 %v4179_v34 }
  0xdc   : > { %v4123_v62 = vpop.eup %3922  ;;  %v487_v0 = vadd.f32 %v486_v56, %v453_v60  ;;  %v538_v1 = vsub.f32 %v536_v59, %v537_v61  ;;  %721 = vmatmul.f32.vlgmr.msrb.gmra.mxu1 %v537_v61  ;;  %v953_v56 = vand.u32 4294901760, %v952_v52  ;;  %v963_v58 = vand.u32 4294901760, %v962_v50  ;;  %v185_v61 = vld [vmem:[%s5524_s1 + $0x58] sm:$0xff] }
  0xdd   : > { %v378_v2 = vpop.f32.mrf.mxu2  ;;  %v503_v4 = vsel %vm498_vm1, %v4123_v62, 0  ;;  %1074 = vmatpush.msra.mxu3 %v4164_v43  ;;  %895 = vmatpush.msra.mxu0 %v4193_v54  ;;  %v968_v60 = vsub.f32 %v187_v49, %v4193_v54 }
  0xde   : > { %3924 = vtanh.f32 %v487_v0  ;;  %v539_v5 = vand.u32 4294901760, %v538_v1  ;;  %v379_v6 = vadd.f32 %v378_v2, %v340_v63  ;;  %v543_v7 = vand.u32 4294901760, %v503_v4  ;;  %954 = vmatpush.msra.mxu1 %v953_v56 }
  0xdf   : > { %1076 = vmatpush.msra.mxu3 %v4179_v34  ;;  %v959_v1 = vand.u32 4294901760, %v958_v57  ;;  %v964_v2 = vsub.f32 %v962_v50, %v963_v58  ;;  %v3919_v57 = vld [vmem:[%s5524_s1 + $0xa] ss:$0 sm:$0xff] }
  0xe0   : > { %v421_v9 = vadd.f32 %v420_v3, %v379_v6  ;;  %540 = vmatmul.f32.vlgmr.msra.gmra.mxu2 %v539_v5  ;;  %629 = vmatmul.f32.gmra.mxu3 %v543_v7  ;;  %v544_v10 = vsub.f32 %v503_v4, %v543_v7  ;;  %v4211_v4 = vand.u32 4294901760, %v185_v61  ;;  %v969_v5 = vand.u32 4294901760, %v968_v60  ;;  %v184_v6 = vld [vmem:[%s5524_s1 + $0x50] sm:$0xff] }
  0xe1   : > { %1018 = vmatpush.msra.mxu2 %v4147_v36  ;;  %1078 = vmatpush.msra.mxu3 %v4193_v54 }
  0xe2   : > { %v457_v12 = vadd.f32 %v456_v8, %v421_v9  ;;  %680 = vmatmul.f32.gmra.mxu0 %v544_v10  ;;  %v545_v13 = vand.u32 4294901760, %v544_v10  ;;  %960 = vmatpush.msra.mxu1 %v959_v1  ;;  %v980_v9 = vsub.f32 %v185_v61, %v4211_v4 }
  0xe3   : > { %1021 = vmatpush.msra.mxu2 %v4162_v42 }
  0xe4   : > { %v4127_v14 = vpop.eup %3924  ;;  %v491_v15 = vadd.f32 %v490_v11, %v457_v12  ;;  %727 = vmatmul.f32.gmra.mxu1 %v545_v13  ;;  %v546_v16 = vsub.f32 %v544_v10, %v545_v13  ;;  %v900_v10 = vand.u32 4294901760, %v184_v6  ;;  %v970_v11 = vsub.f32 %v968_v60, %v969_v5 }
  0xe5   : > { %v506_v17 = vsel %vm498_vm1, %v4127_v14, 0  ;;  %1024 = vmatpush.msra.mxu2 %v4177_v47  ;;  %v981_v13 = vand.u32 4294901760, %v980_v9 }
  0xe6   : > { %3926 = vtanh.f32 %v491_v15  ;;  %v547_v18 = vand.u32 4294901760, %v546_v16  ;;  %v551_v19 = vand.u32 4294901760, %v506_v17  ;;  %v986_v15 = vsub.f32 %v184_v6, %v900_v10 }
  0xe7   : > { %1027 = vmatpush.msra.mxu2 %v962_v50  ;;  %v971_v16 = vand.u32 4294901760, %v970_v11 }
  0xe8   : > { %548 = vmatmul.f32.gmra.mxu2 %v547_v18  ;;  %633 = vmatmul.f32.gmra.mxu3 %v551_v19  ;;  %v552_v20 = vsub.f32 %v506_v17, %v551_v19  ;;  %v982_v18 = vsub.f32 %v980_v9, %v981_v13 }
  0xe9   : > { %1030 = vmatpush.msra.mxu2 %v968_v60 }
  0xea   : > { %685 = vmatmul.f32.gmra.mxu0 %v552_v20  ;;  %v553_v21 = vand.u32 4294901760, %v552_v20 }
  0xec   : > { %v4131_v22 = vpop.eup %3926  ;;  %733 = vmatmul.f32.gmra.mxu1 %v553_v21  ;;  %v554_v23 = vsub.f32 %v552_v20, %v553_v21  ;;  %v3918_v20 = vld [vmem:[%s5524_s1 + $0x9] ss:$0 sm:$0xff] }
  0xed   : > { %v509_v24 = vsel %vm498_vm1, %v4131_v22, 0 }
  0xee   : > { %v555_v25 = vand.u32 4294901760, %v554_v23  ;;  %v559_v26 = vand.u32 4294901760, %v509_v24  ;;  %v983_v23 = vand.u32 4294901760, %v982_v18 }
  0xf0   : > { %556 = vmatmul.f32.gmra.mxu2 %v555_v25  ;;  %637 = vmatmul.f32.gmra.mxu3 %v559_v26  ;;  %v560_v27 = vsub.f32 %v509_v24, %v559_v26 }
  0xf2   : > { %690 = vmatmul.f32.gmra.mxu0 %v560_v27  ;;  %v561_v28 = vand.u32 4294901760, %v560_v27 }
  0xf4   : > { %739 = vmatmul.f32.gmra.mxu1 %v561_v28  ;;  %v562_v29 = vsub.f32 %v560_v27, %v561_v28 }
  0xf6   : > { %v563_v30 = vand.u32 4294901760, %v562_v29 }
  0xf8   : > { %564 = vmatmul.f32.gmra.mxu2 %v563_v30  ;;  %825 = vmatmul.f32.vlgmr.msrb.gmra.mxu3 %v535_v55 }
 0x100   : > { %784 = vmatmul.f32.vlgmr.msrb.gmra.mxu2 %v535_v55  ;;  %829 = vmatmul.f32.gmra.mxu3 %v543_v7  ;;  %v186_v55 = vld [vmem:[%s5524_s1 + $0x60] sm:$0xff] }
 0x101   : > { %v4200_v59 = vand.u32 4294901760, %v186_v55 }
 0x103   : > { %v974_v3 = vsub.f32 %v186_v55, %v4200_v59  ;;  %897 = vmatpush.msra.mxu0 %v4200_v59  ;;  %1080 = vmatpush.msra.mxu3 %v4200_v59 }
 0x105   : > { %v975_v8 = vand.u32 4294901760, %v974_v3  ;;  %1033 = vmatpush.msra.mxu2 %v974_v3  ;;  %899 = vmatpush.msra.mxu0 %v4211_v4 }
 0x106   : > { %1082 = vmatpush.msra.mxu3 %v4211_v4 }
 0x107   : > { %v976_v12 = vsub.f32 %v974_v3, %v975_v8  ;;  %1036 = vmatpush.msra.mxu2 %v980_v9  ;;  %901 = vmatpush.msra.mxu0 %v900_v10 }
 0x108   : > { %788 = vmatmul.f32.gmra.mxu2 %v543_v7  ;;  %833 = vmatmul.f32.gmra.mxu3 %v551_v19  ;;  %v965_v7 = vand.u32 4294901760, %v964_v2 }
 0x109   : > { %v977_v17 = vand.u32 4294901760, %v976_v12  ;;  %1084 = vmatpush.msra.mxu3 %v900_v10  ;;  %1121 = vmatpush.msrb.mxu0 %v945_v41 }
 0x10a   : > { %966 = vmatpush.msra.mxu1 %v965_v7  ;;  %1039 = vmatpush.msra.mxu2 %v986_v15 }
 0x10b   : > { %1125 = vmatpush.msrb.mxu0 %v951_v46 }
 0x10c   : > { %972 = vmatpush.msra.mxu1 %v971_v16 }
 0x10d   : > { %1129 = vmatpush.msrb.mxu0 %v957_v53 }
 0x10e   : > { %978 = vmatpush.msra.mxu1 %v977_v17 }
 0x10f   : > { %1133 = vmatpush.msrb.mxu0 %v963_v58 }
 0x110   : > { %792 = vmatmul.f32.gmra.mxu2 %v551_v19  ;;  %837 = vmatmul.f32.gmra.mxu3 %v559_v26  ;;  %v987_v19 = vand.u32 4294901760, %v986_v15 }
 0x111   : > { %984 = vmatpush.msra.mxu1 %v983_v23  ;;  %1137 = vmatpush.msrb.mxu0 %v969_v5 }
 0x112   : > { %v988_v24 = vsub.f32 %v986_v15, %v987_v19 }
 0x113   : > { %1141 = vmatpush.msrb.mxu0 %v975_v8 }
 0x115   : > { %1145 = vmatpush.msrb.mxu0 %v981_v13 }
 0x117   : > { %1149 = vmatpush.msrb.mxu0 %v987_v19 }
 0x118   : > { %796 = vmatmul.f32.gmra.mxu2 %v559_v26  ;;  %v989_v26 = vand.u32 4294901760, %v988_v24 }
 0x11a   : > { %990 = vmatpush.msra.mxu1 %v989_v26 }
 0x11c   : > { %1176 = vmatpush.msrb.mxu1 %v4140_v33 }
 0x11e   : > { %1178 = vmatpush.msrb.mxu1 %v4149_v37 }
 0x120   : > { %1180 = vmatpush.msrb.mxu1 %v4164_v43 }
 0x122   : > { %1182 = vmatpush.msrb.mxu1 %v4179_v34 }
 0x124   : > { %1184 = vmatpush.msrb.mxu1 %v4193_v54 }
 0x126   : > { %1186 = vmatpush.msrb.mxu1 %v4200_v59 }
 0x128   : > { %1188 = vmatpush.msrb.mxu1 %v4211_v4 }
 0x12a   : > { %1190 = vmatpush.msrb.mxu1 %v900_v10 }
 0x157   : > { %v676_v28 = vpop.f32.mrf.mxu0 }
 0x159   : > { %v722_v30 = vpop.f32.mrf.mxu1 }
 0x15b   : > { %v4135_v31 = vpop.f32.mrf.mxu3 }
 0x161   : > { %v728_v42 = vpop.f32.mrf.mxu1 }
 0x163   : > { %v4155_v39 = vpop.f32.mrf.mxu2  ;;  %v4157_v40 = vpop.f32.mrf.mxu3 }
 0x164   : > { %v542_v27 = vadd.f32 %v3918_v20, %v4155_v39  ;;  %v681_v39 = vpop.f32.mrf.mxu0 }
 0x166   : > { %v627_v29 = vadd.f32 %v4135_v31, %v542_v27 }
 0x168   : > { %v677_v36 = vadd.f32 %v676_v28, %v627_v29 }
 0x169   : > { %v734_v55 = vpop.f32.mrf.mxu1 }
 0x16a   : > { %v723_v31 = vadd.f32 %v722_v30, %v677_v36 }
 0x16b   : > { %v549_v63 = vpop.f32.mrf.mxu2  ;;  %v4208_v0 = vpop.f32.mrf.mxu3 }
 0x16c   : > { %v550_v35 = vadd.f32 %v3918_v20, %v549_v63  ;;  %v686_v49 = vpop.f32.mrf.mxu0 }
 0x16e   : > { %v631_v33 = vadd.f32 %v4157_v40, %v550_v35 }
 0x170   : > { %v682_v45 = vadd.f32 %v681_v39, %v631_v33 }
 0x171   : > { %v740_v10 = vpop.f32.mrf.mxu1 }
 0x172   : > { %v729_v34 = vadd.f32 %v728_v42, %v682_v45 }
 0x173   : > { %v557_v21 = vpop.f32.mrf.mxu2  ;;  %v638_v25 = vpop.f32.mrf.mxu3 }
 0x174   : > { %v558_v43 = vadd.f32 %v3918_v20, %v557_v21  ;;  %v691_v2 = vpop.f32.mrf.mxu0 }
 0x176   : > { %v635_v47 = vadd.f32 %v4208_v0, %v558_v43 }
 0x178   : > { %v687_v54 = vadd.f32 %v686_v49, %v635_v47 }
 0x17a   : > { %v735_v60 = vadd.f32 %v734_v55, %v687_v54  ;;  %v197_v55 = vld [vmem:[%s5524_s1 + $0xb8] sm:$0xff] }
 0x17b   : > { %v565_v32 = vpop.f32.mrf.mxu2  ;;  %v826_v38 = vpop.f32.mrf.mxu3 }
 0x17c   : > { %v566_v53 = vadd.f32 %v3918_v20, %v565_v32 }
 0x17e   : > { %v639_v59 = vadd.f32 %v638_v25, %v566_v53  ;;  %v198_v53 = vld [vmem:[%s5524_s1 + $0xc0] sm:$0xff] }
 0x17f   : > { %v4258_v54 = vand.u32 4294901760, %v198_v53 }
 0x180   : > { %v692_v7 = vadd.f32 %v691_v2, %v639_v59  ;;  %v196_v59 = vld [vmem:[%s5524_s1 + $0xb0] sm:$0xff]  ;;  %v195_v2 = vld [vmem:[%s5524_s1 + $0xa8] sm:$0xff] }
 0x182   : > { %v741_v12 = vadd.f32 %v740_v10, %v692_v7  ;;  %v4300_v7 = vand.u32 4294901760, %v195_v2 }
 0x183   : > { %v785_v41 = vpop.f32.mrf.mxu2  ;;  %v830_v46 = vpop.f32.mrf.mxu3 }
 0x184   : > { %v786_v37 = vadd.f32 %v785_v41, %v723_v31 }
 0x186   : > { %v827_v44 = vadd.f32 %v826_v38, %v786_v37 }
 0x188   : > { %3928 = vtanh.f32 %v827_v44 }
 0x18b   : > { %v789_v51 = vpop.f32.mrf.mxu2  ;;  %v834_v63 = vpop.f32.mrf.mxu3 }
 0x18c   : > { %v790_v40 = vadd.f32 %v789_v51, %v729_v34 }
 0x18e   : > { %v3929_v52 = vpop.eup %3928  ;;  %v831_v50 = vadd.f32 %v830_v46, %v790_v40  ;;  %v199_v40 = vld [vmem:[%s5524_s1 + $0xc8] sm:$0xff] }
 0x18f   : > { %v845_v56 = vmul.f32 %v3929_v52, %v3929_v52  ;;  %v4249_v52 = vand.u32 4294901760, %v199_v40 }
 0x190   : > { %3930 = vtanh.f32 %v831_v50 }
 0x191   : > { %v849_v58 = vsub.f32 1.0, %v845_v56  ;;  %1233 = vmatpush.msrb.mxu2 %v4249_v52  ;;  %v4256_v50 = vsub.f32 %v199_v40, %v4249_v52 }
 0x193   : > { %v854_v61 = vmul.f32 %v3919_v57, %v849_v58  ;;  %v793_v0 = vpop.f32.mrf.mxu2  ;;  %v838_v19 = vpop.f32.mrf.mxu3  ;;  %v1291_v56 = vand.u32 4294901760, %v4256_v50  ;;  %1235 = vmatpush.msrb.mxu2 %v4258_v54  ;;  %v4269_v58 = vand.u32 4294901760, %v197_v55 }
 0x194   : > { %v794_v1 = vadd.f32 %v793_v0, %v735_v60 }
 0x195   : > { %v867_v3 = vsel %vm498_vm1, %v854_v61, 0  ;;  %v1292_v61 = vsub.f32 %v4256_v50, %v1291_v56  ;;  %1237 = vmatpush.msrb.mxu2 %v4269_v58  ;;  %v4284_v0 = vsub.f32 %v197_v55, %v4269_v58 }
 0x196   : > { %v3931_v4 = vpop.eup %3930  ;;  %v835_v5 = vadd.f32 %v834_v63, %v794_v1  ;;  %v902_v6 = vand.u32 4294901760, %v867_v3  ;;  %v4286_v1 = vand.u32 4294901760, %v196_v59 }
 0x197   : > { %v846_v8 = vmul.f32 %v3931_v4, %v3931_v4 }
 0x198   : > { %3932 = vtanh.f32 %v835_v5  ;;  %992 = vmatmul.f32.vlgmr.msra.gmra.mxu1 %v902_v6  ;;  %v903_v9 = vsub.f32 %v867_v3, %v902_v6  ;;  %v1293_v3 = vand.u32 4294901760, %v1292_v61  ;;  %v1303_v5 = vand.u32 4294901760, %v4284_v0  ;;  %1239 = vmatpush.msrb.mxu2 %v4286_v1 }
 0x199   : > { %v850_v11 = vsub.f32 1.0, %v846_v8  ;;  %1416 = vmatpush.msra.mxu1 %v4249_v52  ;;  %v194_v8 = vld [vmem:[%s5524_s1 + $0xa0] sm:$0xff] }
 0x19a   : > { %1042 = vmatmul.f32.vlgmr.msra.gmra.mxu2 %v903_v9  ;;  %v904_v13 = vand.u32 4294901760, %v903_v9  ;;  %1294 = vmatpush.msrb.mxu3 %v1293_v3  ;;  %v1304_v10 = vsub.f32 %v4284_v0, %v1303_v5  ;;  %v859_v3 = vmul.f32 %v4123_v62, %v4123_v62 }
 0x19b   : > { %v855_v15 = vmul.f32 %v3919_v57, %v850_v11  ;;  %v797_v16 = vpop.f32.mrf.mxu2  ;;  %1418 = vmatpush.msra.mxu1 %v4258_v54  ;;  %1241 = vmatpush.msrb.mxu2 %v4300_v7 }
 0x19c   : > { %v798_v17 = vadd.f32 %v797_v16, %v741_v12  ;;  %1088 = vmatmul.f32.vlgmr.msra.gmra.mxu3 %v904_v13  ;;  %v905_v18 = vsub.f32 %v903_v9, %v904_v13  ;;  %v1242_v12 = vand.u32 4294901760, %v194_v8  ;;  %v1314_v13 = vsub.f32 %v195_v2, %v4300_v7 }
 0x19d   : > { %v870_v20 = vsel %vm498_vm1, %v855_v15, 0  ;;  %1420 = vmatpush.msra.mxu1 %v4269_v58  ;;  %v193_v15 = vld [vmem:[%s5524_s1 + $0x98] sm:$0xff]  ;;  %v1305_v16 = vand.u32 4294901760, %v1304_v10 }
 0x19e   : > { %v3933_v21 = vpop.eup %3932  ;;  %v839_v23 = vadd.f32 %v838_v19, %v798_v17  ;;  %v906_v24 = vand.u32 4294901760, %v905_v18  ;;  %v910_v25 = vand.u32 4294901760, %v870_v20  ;;  %v1320_v18 = vsub.f32 %v194_v8, %v1242_v12  ;;  %1243 = vmatpush.msrb.mxu2 %v1242_v12 }
 0x19f   : > { %v847_v26 = vmul.f32 %v3933_v21, %v3933_v21  ;;  %1422 = vmatpush.msra.mxu1 %v4286_v1  ;;  %v1244_v19 = vand.u32 4294901760, %v193_v15  ;;  %v192_v21 = vld [vmem:[%s5524_s1 + $0x90] sm:$0xff] }
 0x1a0   : > { %3934 = vtanh.f32 %v839_v23  ;;  %907 = vmatmul.f32.vlgmr.msra.gmra.mxu0 %v906_v24  ;;  %996 = vmatmul.f32.gmra.mxu1 %v910_v25  ;;  %v911_v27 = vsub.f32 %v870_v20, %v910_v25  ;;  %v1315_v20 = vand.u32 4294901760, %v1314_v13 }
 0x1a1   : > { %v851_v28 = vsub.f32 1.0, %v847_v26  ;;  %1364 = vmatpush.msra.mxu0 %v4256_v50  ;;  %1424 = vmatpush.msra.mxu1 %v4300_v7  ;;  %v1321_v26 = vand.u32 4294901760, %v1320_v18 }
 0x1a2   : > { %1047 = vmatmul.f32.gmra.mxu2 %v911_v27  ;;  %v912_v29 = vand.u32 4294901760, %v911_v27 }
 0x1a3   : > { %v856_v30 = vmul.f32 %v3919_v57, %v851_v28  ;;  %v1246_v28 = vand.u32 4294901760, %v192_v21  ;;  %1426 = vmatpush.msra.mxu1 %v1242_v12  ;;  %1245 = vmatpush.msrb.mxu2 %v1244_v19 }
 0x1a4   : > { %1094 = vmatmul.f32.gmra.mxu3 %v912_v29  ;;  %v913_v32 = vsub.f32 %v911_v27, %v912_v29  ;;  %v1326_v27 = vsub.f32 %v193_v15, %v1244_v19  ;;  %v1316_v29 = vsub.f32 %v1314_v13, %v1315_v20 }
 0x1a5   : > { %v873_v35 = vsel %vm498_vm1, %v856_v30, 0  ;;  %v1322_v30 = vsub.f32 %v1320_v18, %v1321_v26  ;;  %1428 = vmatpush.msra.mxu1 %v1244_v19  ;;  %1247 = vmatpush.msrb.mxu2 %v1246_v28 }
 0x1a6   : > { %v3935_v36 = vpop.eup %3934  ;;  %v914_v38 = vand.u32 4294901760, %v913_v32  ;;  %v918_v39 = vand.u32 4294901760, %v873_v35  ;;  %v1327_v32 = vand.u32 4294901760, %v1326_v27 }
 0x1a7   : > { %v848_v33 = vmul.f32 %v3935_v36, %v3935_v36  ;;  %v1317_v36 = vand.u32 4294901760, %v1316_v29  ;;  %1430 = vmatpush.msra.mxu1 %v1246_v28  ;;  %1467 = vmatpush.msra.mxu2 %v1291_v56 }
 0x1a8   : > { %915 = vmatmul.f32.gmra.mxu0 %v914_v38  ;;  %1000 = vmatmul.f32.gmra.mxu1 %v918_v39  ;;  %v919_v31 = vsub.f32 %v873_v35, %v918_v39  ;;  %v1332_v35 = vsub.f32 %v192_v21, %v1246_v28  ;;  %v1323_v38 = vand.u32 4294901760, %v1322_v30 }
 0x1a9   : > { %v852_v41 = vsub.f32 1.0, %v848_v33 }
 0x1aa   : > { %1052 = vmatmul.f32.gmra.mxu2 %v919_v31  ;;  %v920_v37 = vand.u32 4294901760, %v919_v31  ;;  %v1333_v33 = vand.u32 4294901760, %v1332_v35 }
 0x1ab   : > { %v857_v42 = vmul.f32 %v3919_v57, %v852_v41  ;;  %v4267_v57 = vsub.f32 %v198_v53, %v4258_v54 }
 0x1ac   : > { %1100 = vmatmul.f32.gmra.mxu3 %v920_v37  ;;  %v921_v43 = vsub.f32 %v919_v31, %v920_v37  ;;  %v1334_v41 = vsub.f32 %v1332_v35, %v1333_v33 }
 0x1ad   : > { %v876_v44 = vsel %vm498_vm1, %v857_v42, 0  ;;  %v1297_v63 = vand.u32 4294901760, %v4267_v57  ;;  %1367 = vmatpush.msra.mxu0 %v4267_v57 }
 0x1ae   : > { %v922_v45 = vand.u32 4294901760, %v921_v43  ;;  %v926_v46 = vand.u32 4294901760, %v876_v44  ;;  %v1335_v43 = vand.u32 4294901760, %v1334_v41 }
 0x1af   : > { %v1298_v4 = vsub.f32 %v4267_v57, %v1297_v63  ;;  %1370 = vmatpush.msra.mxu0 %v4284_v0  ;;  %1471 = vmatpush.msra.mxu2 %v1297_v63 }
 0x1b0   : > { %923 = vmatmul.f32.gmra.mxu0 %v922_v45  ;;  %1004 = vmatmul.f32.gmra.mxu1 %v926_v46  ;;  %v927_v47 = vsub.f32 %v876_v44, %v926_v46 }
 0x1b1   : > { %v1299_v9 = vand.u32 4294901760, %v1298_v4  ;;  %1475 = vmatpush.msra.mxu2 %v1303_v5 }
 0x1b2   : > { %1057 = vmatmul.f32.gmra.mxu2 %v927_v47  ;;  %v928_v34 = vand.u32 4294901760, %v927_v47 }
 0x1b3   : > { %1300 = vmatpush.msrb.mxu3 %v1299_v9  ;;  %v863_v9 = vsub.f32 1.0, %v859_v3 }
 0x1b4   : > { %1106 = vmatmul.f32.gmra.mxu3 %v928_v34  ;;  %v929_v49 = vsub.f32 %v927_v47, %v928_v34 }
 0x1b5   : > { %1306 = vmatpush.msrb.mxu3 %v1305_v16 }
 0x1b6   : > { %v930_v51 = vand.u32 4294901760, %v929_v49 }
 0x1b8   : > { %931 = vmatmul.f32.gmra.mxu0 %v930_v51  ;;  %1192 = vmatmul.f32.vlgmr.msrb.gmra.mxu1 %v902_v6 }
 0x1c0   : > { %1151 = vmatmul.f32.vlgmr.msrb.gmra.mxu0 %v902_v6  ;;  %1196 = vmatmul.f32.gmra.mxu1 %v910_v25  ;;  %v1308_v6 = vsub.f32 %v196_v59, %v4286_v1 }
 0x1c2   : > { %v1309_v11 = vand.u32 4294901760, %v1308_v6  ;;  %1373 = vmatpush.msra.mxu0 %v1308_v6 }
 0x1c4   : > { %v1310_v17 = vsub.f32 %v1308_v6, %v1309_v11  ;;  %1376 = vmatpush.msra.mxu0 %v1314_v13  ;;  %1479 = vmatpush.msra.mxu2 %v1309_v11 }
 0x1c6   : > { %1379 = vmatpush.msra.mxu0 %v1320_v18  ;;  %1483 = vmatpush.msra.mxu2 %v1315_v20  ;;  %v860_v18 = vmul.f32 %v4127_v14, %v4127_v14 }
 0x1c8   : > { %1155 = vmatmul.f32.gmra.mxu0 %v910_v25  ;;  %1200 = vmatmul.f32.gmra.mxu1 %v918_v39  ;;  %v1311_v25 = vand.u32 4294901760, %v1310_v17 }
 0x1c9   : > { %1382 = vmatpush.msra.mxu0 %v1326_v27  ;;  %1487 = vmatpush.msra.mxu2 %v1321_v26 }
 0x1ca   : > { %1312 = vmatpush.msrb.mxu3 %v1311_v25 }
 0x1cb   : > { %1385 = vmatpush.msra.mxu0 %v1332_v35  ;;  %1491 = vmatpush.msra.mxu2 %v1327_v32 }
 0x1cc   : > { %1318 = vmatpush.msrb.mxu3 %v1317_v36 }
 0x1cd   : > { %1495 = vmatpush.msra.mxu2 %v1333_v33 }
 0x1ce   : > { %1324 = vmatpush.msrb.mxu3 %v1323_v38 }
 0x1d0   : > { %1159 = vmatmul.f32.gmra.mxu0 %v918_v39  ;;  %1204 = vmatmul.f32.gmra.mxu1 %v926_v46  ;;  %v1328_v39 = vsub.f32 %v1326_v27, %v1327_v32 }
 0x1d2   : > { %v1329_v31 = vand.u32 4294901760, %v1328_v39  ;;  %v861_v39 = vmul.f32 %v4131_v22, %v4131_v22 }
 0x1d4   : > { %1330 = vmatpush.msrb.mxu3 %v1329_v31 }
 0x1d6   : > { %1336 = vmatpush.msrb.mxu3 %v1335_v43 }
 0x1d8   : > { %1163 = vmatmul.f32.gmra.mxu0 %v926_v46  ;;  %1522 = vmatpush.msra.mxu3 %v4249_v52 }
 0x1da   : > { %1524 = vmatpush.msra.mxu3 %v4258_v54  ;;  %v858_v54 = vmul.f32 %v4118_v48, %v4118_v48 }
 0x1dc   : > { %1526 = vmatpush.msra.mxu3 %v4269_v58  ;;  %v862_v59 = vsub.f32 1.0, %v858_v54  ;;  %v238_v54 = vld [vmem:[%s5525_s2 + $0x70] sm:$0xff] }
 0x1de   : > { %1528 = vmatpush.msra.mxu3 %v4286_v1 }
 0x1e0   : > { %1530 = vmatpush.msra.mxu3 %v4300_v7 }
 0x1e2   : > { %1532 = vmatpush.msra.mxu3 %v1242_v12 }
 0x1e4   : > { %1534 = vmatpush.msra.mxu3 %v1244_v19 }
 0x1e6   : > { %1536 = vmatpush.msra.mxu3 %v1246_v28  ;;  %v864_v28 = vsub.f32 1.0, %v860_v18 }
 0x215   : > { %v4276_v60 = vpop.f32.mrf.mxu1 }
 0x21d   : > { %v908_v23 = vpop.f32.mrf.mxu0  ;;  %v997_v24 = vpop.f32.mrf.mxu1 }
 0x21e   : > { %v1043_v46 = vpop.f32.mrf.mxu2  ;;  %v994_v47 = vadd.f32 %v4276_v60, %v908_v23 }
 0x21f   : > { %v1089_v34 = vpop.f32.mrf.mxu3 }
 0x220   : > { %v1044_v51 = vadd.f32 %v1043_v46, %v994_v47 }
 0x222   : > { %v1090_v53 = vadd.f32 %v1089_v34, %v1044_v51 }
 0x225   : > { %v916_v37 = vpop.f32.mrf.mxu0  ;;  %v1001_v42 = vpop.f32.mrf.mxu1 }
 0x226   : > { %v1048_v52 = vpop.f32.mrf.mxu2  ;;  %v998_v50 = vadd.f32 %v997_v24, %v916_v37 }
 0x227   : > { %v1095_v57 = vpop.f32.mrf.mxu3 }
 0x228   : > { %v1049_v58 = vadd.f32 %v1048_v52, %v998_v50 }
 0x22a   : > { %v1096_v0 = vadd.f32 %v1095_v57, %v1049_v58  ;;  %v236_v57 = vld [vmem:[%s5525_s2 + $0x60] sm:$0xff] }
 0x22b   : > { %v4357_v58 = vand.u32 4294901760, %v236_v57 }
 0x22d   : > { %v924_v44 = vpop.f32.mrf.mxu0  ;;  %v1005_v45 = vpop.f32.mrf.mxu1 }
 0x22e   : > { %v1002_v1 = vadd.f32 %v1001_v42, %v924_v44  ;;  %v1053_v4 = vpop.f32.mrf.mxu2  ;;  %v865_v44 = vsub.f32 1.0, %v861_v39 }
 0x22f   : > { %v1101_v11 = vpop.f32.mrf.mxu3 }
 0x230   : > { %v1054_v8 = vadd.f32 %v1053_v4, %v1002_v1  ;;  %v232_v1 = vld [vmem:[%s5525_s2 + $0x40] sm:$0xff] }
 0x231   : > { %v4383_v4 = vand.u32 4294901760, %v232_v1 }
 0x232   : > { %v1102_v16 = vadd.f32 %v1101_v11, %v1054_v8  ;;  %v228_v11 = vld [vmem:[%s5525_s2 + $0x20] sm:$0xff] }
 0x235   : > { %v932_v49 = vpop.f32.mrf.mxu0  ;;  %v1193_v40 = vpop.f32.mrf.mxu1 }
 0x236   : > { %v1006_v62 = vadd.f32 %v1005_v45, %v932_v49  ;;  %v1058_v25 = vpop.f32.mrf.mxu2 }
 0x237   : > { %v1107_v35 = vpop.f32.mrf.mxu3 }
 0x238   : > { %v1059_v27 = vadd.f32 %v1058_v25, %v1006_v62  ;;  %v4408_v62 = vand.u32 4294901760, %v228_v11 }
 0x23a   : > { %v1108_v38 = vadd.f32 %v1107_v35, %v1059_v27 }
 0x23d   : > { %v1152_v55 = vpop.f32.mrf.mxu0  ;;  %v1197_v60 = vpop.f32.mrf.mxu1 }
 0x23e   : > { %v1153_v56 = vadd.f32 %v1152_v55, %v1090_v53  ;;  %v4347_v55 = vand.u32 4294901760, %v238_v54 }
 0x240   : > { %v1194_v61 = vadd.f32 %v1193_v40, %v1153_v56  ;;  %v4350_v56 = vsub.f32 %v238_v54, %v4347_v55  ;;  %1575 = vmatpush.msrb.mxu0 %v4347_v55 }
 0x242   : > { %v1208_v63 = vmul.f32 %v1194_v61, %v862_v59  ;;  %v1633_v59 = vand.u32 4294901760, %v4350_v56  ;;  %v234_v61 = vld [vmem:[%s5525_s2 + $0x50] sm:$0xff]  ;;  %1577 = vmatpush.msrb.mxu0 %v4357_v58 }
 0x244   : > { %v1213_v2 = vsel %vm498_vm1, %v1208_v63, 0  ;;  %v4365_v63 = vsub.f32 %v236_v57, %v4357_v58 }
 0x245   : > { %v1156_v5 = vpop.f32.mrf.mxu0  ;;  %v4331_v6 = vand.u32 4294901760, %v1213_v2  ;;  %v1201_v19 = vpop.f32.mrf.mxu1 }
 0x246   : > { %v1157_v48 = vadd.f32 %v1156_v5, %v1096_v0  ;;  %v1634_v0 = vsub.f32 %v4350_v56, %v1633_v59 }
 0x247   : > { %1338 = vmatmul.f32.vlgmr.msrb.gmra.mxu3 %v4331_v6  ;;  %v1249_v7 = vsub.f32 %v1213_v2, %v4331_v6  ;;  %v1639_v2 = vand.u32 4294901760, %v4365_v63 }
 0x248   : > { %v1198_v10 = vadd.f32 %v1197_v60, %v1157_v48  ;;  %1758 = vmatpush.msrb.mxu3 %v4347_v55  ;;  %v4369_v60 = vand.u32 4294901760, %v234_v61  ;;  %v1635_v5 = vand.u32 4294901760, %v1634_v0 }
 0x249   : > { %1388 = vmatmul.f32.vlgmr.msra.gmra.mxu0 %v1249_v7  ;;  %v1250_v12 = vand.u32 4294901760, %v1249_v7 }
 0x24a   : > { %v1209_v13 = vmul.f32 %v1198_v10, %v863_v9  ;;  %1760 = vmatpush.msrb.mxu3 %v4357_v58  ;;  %v4380_v3 = vsub.f32 %v234_v61, %v4369_v60  ;;  %1579 = vmatpush.msrb.mxu0 %v4369_v60  ;;  %v1650_v9 = vsub.f32 %v232_v1, %v4383_v4  ;;  %v231_v1 = vld [vmem:[%s5525_s2 + $0x38] sm:$0xff] }
 0x24b   : > { %1434 = vmatmul.f32.vlgmr.msra.gmra.mxu1 %v1250_v12  ;;  %v1251_v15 = vsub.f32 %v1249_v7, %v1250_v12  ;;  %v1640_v7 = vsub.f32 %v4365_v63, %v1639_v2 }
 0x24c   : > { %v1216_v17 = vsel %vm498_vm1, %v1209_v13, 0  ;;  %1762 = vmatpush.msrb.mxu3 %v4369_v60  ;;  %v1645_v8 = vand.u32 4294901760, %v4380_v3  ;;  %1581 = vmatpush.msrb.mxu0 %v4383_v4 }
 0x24d   : > { %v1160_v20 = vpop.f32.mrf.mxu0  ;;  %v1252_v21 = vand.u32 4294901760, %v1251_v15  ;;  %v1256_v23 = vand.u32 4294901760, %v1216_v17  ;;  %v1205_v42 = vpop.f32.mrf.mxu1  ;;  %1636 = vmatpush.msrb.mxu1 %v1635_v5  ;;  %v1641_v12 = vand.u32 4294901760, %v1640_v7  ;;  %v1651_v15 = vand.u32 4294901760, %v1650_v9  ;;  %v229_v7 = vld [vmem:[%s5525_s2 + $0x28] sm:$0xff] }
 0x24e   : > { %v1161_v24 = vadd.f32 %v1160_v20, %v1102_v16  ;;  %1764 = vmatpush.msrb.mxu3 %v4383_v4  ;;  %v1646_v13 = vsub.f32 %v4380_v3, %v1645_v8 }
 0x24f   : > { %1253 = vmatmul.f32.vlgmr.msrb.gmra.mxu2 %v1252_v21  ;;  %1342 = vmatmul.f32.gmra.mxu3 %v1256_v23  ;;  %v1257_v26 = vsub.f32 %v1216_v17, %v1256_v23  ;;  %v226_v17 = vld [vmem:[%s5525_s2 + $0x10] sm:$0xff] }
 0x250   : > { %v1202_v29 = vadd.f32 %v1201_v19, %v1161_v24  ;;  %1706 = vmatpush.msrb.mxu2 %v4350_v56  ;;  %1642 = vmatpush.msrb.mxu1 %v1641_v12  ;;  %v1647_v18 = vand.u32 4294901760, %v1646_v13  ;;  %v1652_v19 = vsub.f32 %v1650_v9, %v1651_v15  ;;  %v1586_v21 = vand.u32 4294901760, %v226_v17  ;;  %v224_v24 = vld [vmem:[%s5525_s2] sm:$0xff] }
 0x251   : > { %1393 = vmatmul.f32.gmra.mxu0 %v1257_v26  ;;  %v1258_v30 = vand.u32 4294901760, %v1257_v26  ;;  %v4497_v12 = vand.u32 4294901760, %v229_v7 }
 0x252   : > { %v1210_v32 = vmul.f32 %v1202_v29, %v864_v28  ;;  %1709 = vmatpush.msrb.mxu2 %v4365_v63  ;;  %1648 = vmatpush.msrb.mxu1 %v1647_v18  ;;  %v1653_v25 = vand.u32 4294901760, %v1652_v19  ;;  %v1668_v27 = vsub.f32 %v226_v17, %v1586_v21  ;;  %v1588_v28 = vand.u32 4294901760, %v224_v24 }
 0x253   : > { %1440 = vmatmul.f32.gmra.mxu1 %v1258_v30  ;;  %v1259_v36 = vsub.f32 %v1257_v26, %v1258_v30 }
 0x254   : > { %v1219_v14 = vsel %vm498_vm1, %v1210_v32, 0  ;;  %1712 = vmatpush.msrb.mxu2 %v4380_v3  ;;  %1654 = vmatpush.msrb.mxu1 %v1653_v25  ;;  %v225_v25 = vld [vmem:[%s5525_s2 + $0x8] sm:$0xff] }
 0x255   : > { %v1164_v33 = vpop.f32.mrf.mxu0  ;;  %v1260_v31 = vand.u32 4294901760, %v1259_v36  ;;  %v1264_v41 = vand.u32 4294901760, %v1219_v14  ;;  %v1669_v36 = vand.u32 4294901760, %v1668_v27 }
 0x256   : > { %v1165_v37 = vadd.f32 %v1164_v33, %v1108_v38  ;;  %1715 = vmatpush.msrb.mxu2 %v1650_v9  ;;  %v1674_v38 = vsub.f32 %v224_v24, %v1588_v28 }
 0x257   : > { %1261 = vmatmul.f32.gmra.mxu2 %v1260_v31  ;;  %1346 = vmatmul.f32.gmra.mxu3 %v1264_v41  ;;  %v1265_v43 = vsub.f32 %v1219_v14, %v1264_v41  ;;  %v1670_v39 = vsub.f32 %v1668_v27, %v1669_v36 }
 0x258   : > { %v1206_v45 = vadd.f32 %v1205_v42, %v1165_v37  ;;  %v1675_v33 = vand.u32 4294901760, %v1674_v38 }
 0x259   : > { %1398 = vmatmul.f32.gmra.mxu0 %v1265_v43  ;;  %v1266_v46 = vand.u32 4294901760, %v1265_v43 }
 0x25a   : > { %v1211_v47 = vmul.f32 %v1206_v45, %v865_v44  ;;  %v1676_v37 = vsub.f32 %v1674_v38, %v1675_v33 }
 0x25b   : > { %1446 = vmatmul.f32.gmra.mxu1 %v1266_v46  ;;  %v1267_v34 = vsub.f32 %v1265_v43, %v1266_v46  ;;  %v239_v46 = vld [vmem:[%s5525_s2 + $0x78] sm:$0xff] }
 0x25c   : > { %v1222_v49 = vsel %vm498_vm1, %v1211_v47, 0  ;;  %v1677_v42 = vand.u32 4294901760, %v1676_v37  ;;  %v4436_v47 = vand.u32 4294901760, %v239_v46 }
 0x25d   : > { %v1268_v51 = vand.u32 4294901760, %v1267_v34  ;;  %v1272_v40 = vand.u32 4294901760, %v1222_v49 }
 0x25f   : > { %1269 = vmatmul.f32.gmra.mxu2 %v1268_v51  ;;  %1350 = vmatmul.f32.gmra.mxu3 %v1272_v40  ;;  %v1273_v22 = vsub.f32 %v1222_v49, %v1272_v40  ;;  %v4443_v51 = vsub.f32 %v239_v46, %v4436_v47 }
 0x261   : > { %1403 = vmatmul.f32.gmra.mxu0 %v1273_v22  ;;  %v1274_v52 = vand.u32 4294901760, %v1273_v22 }
 0x263   : > { %1452 = vmatmul.f32.gmra.mxu1 %v1274_v52  ;;  %v1275_v53 = vsub.f32 %v1273_v22, %v1274_v52 }
 0x265   : > { %v1276_v50 = vand.u32 4294901760, %v1275_v53  ;;  %v235_v53 = vld [vmem:[%s5525_s2 + $0x58] sm:$0xff] }
 0x266   : > { %v4462_v57 = vand.u32 4294901760, %v235_v53 }
 0x267   : > { %1277 = vmatmul.f32.gmra.mxu2 %v1276_v50  ;;  %1538 = vmatmul.f32.vlgmr.msra.gmra.mxu3 %v4331_v6 }
 0x268   : > { %v4473_v63 = vsub.f32 %v235_v53, %v4462_v57 }
 0x26a   : > { %v1975_v5 = vand.u32 4294901760, %v4473_v63 }
 0x26f   : > { %1497 = vmatmul.f32.vlgmr.msra.gmra.mxu2 %v4331_v6  ;;  %1542 = vmatmul.f32.gmra.mxu3 %v1256_v23  ;;  %v230_v6 = vld [vmem:[%s5525_s2 + $0x30] sm:$0xff] }
 0x270   : > { %v4398_v10 = vand.u32 4294901760, %v230_v6 }
 0x272   : > { %v1656_v16 = vsub.f32 %v230_v6, %v4398_v10  ;;  %1583 = vmatpush.msrb.mxu0 %v4398_v10  ;;  %1766 = vmatpush.msrb.mxu3 %v4398_v10 }
 0x274   : > { %1718 = vmatpush.msrb.mxu2 %v1656_v16  ;;  %v1657_v20 = vand.u32 4294901760, %v1656_v16  ;;  %1585 = vmatpush.msrb.mxu0 %v4408_v62 }
 0x275   : > { %1768 = vmatpush.msrb.mxu3 %v4408_v62 }
 0x276   : > { %v1658_v26 = vsub.f32 %v1656_v16, %v1657_v20  ;;  %1587 = vmatpush.msrb.mxu0 %v1586_v21 }
 0x277   : > { %1501 = vmatmul.f32.gmra.mxu2 %v1256_v23  ;;  %1546 = vmatmul.f32.gmra.mxu3 %v1264_v41  ;;  %v1662_v23 = vsub.f32 %v228_v11, %v4408_v62 }
 0x278   : > { %v1659_v35 = vand.u32 4294901760, %v1658_v26  ;;  %1770 = vmatpush.msrb.mxu3 %v1586_v21  ;;  %1589 = vmatpush.msrb.mxu0 %v1588_v28 }
 0x279   : > { %1721 = vmatpush.msrb.mxu2 %v1662_v23  ;;  %v1663_v29 = vand.u32 4294901760, %v1662_v23 }
 0x27a   : > { %1660 = vmatpush.msrb.mxu1 %v1659_v35  ;;  %1772 = vmatpush.msrb.mxu3 %v1588_v28 }
 0x27b   : > { %v1664_v14 = vsub.f32 %v1662_v23, %v1663_v29  ;;  %1724 = vmatpush.msrb.mxu2 %v1668_v27  ;;  %1809 = vmatpush.msra.mxu0 %v1633_v59 }
 0x27d   : > { %v1665_v31 = vand.u32 4294901760, %v1664_v14  ;;  %1727 = vmatpush.msrb.mxu2 %v1674_v38  ;;  %1813 = vmatpush.msra.mxu0 %v1639_v2 }
 0x27f   : > { %1505 = vmatmul.f32.gmra.mxu2 %v1264_v41  ;;  %1550 = vmatmul.f32.gmra.mxu3 %v1272_v40  ;;  %v1671_v41 = vand.u32 4294901760, %v1670_v39 }
 0x280   : > { %1666 = vmatpush.msrb.mxu1 %v1665_v31  ;;  %1817 = vmatpush.msra.mxu0 %v1645_v8 }
 0x281   : > { %1905 = vmatpush.msra.mxu2 %v4436_v47 }
 0x282   : > { %1672 = vmatpush.msrb.mxu1 %v1671_v41  ;;  %1821 = vmatpush.msra.mxu0 %v1651_v15 }
 0x284   : > { %1678 = vmatpush.msrb.mxu1 %v1677_v42  ;;  %1825 = vmatpush.msra.mxu0 %v1657_v20  ;;  %v4511_v20 = vsub.f32 %v229_v7, %v4497_v12 }
 0x286   : > { %1864 = vmatpush.msra.mxu1 %v4347_v55  ;;  %1829 = vmatpush.msra.mxu0 %v1663_v29  ;;  %v1963_v55 = vand.u32 4294901760, %v4443_v51 }
 0x287   : > { %1509 = vmatmul.f32.gmra.mxu2 %v1272_v40  ;;  %v237_v40 = vld [vmem:[%s5525_s2 + $0x68] sm:$0xff] }
 0x288   : > { %1866 = vmatpush.msra.mxu1 %v4357_v58  ;;  %1833 = vmatpush.msra.mxu0 %v1669_v36  ;;  %v4449_v22 = vand.u32 4294901760, %v237_v40  ;;  %v233_v58 = vld [vmem:[%s5525_s2 + $0x48] sm:$0xff]  ;;  %v1964_v59 = vsub.f32 %v4443_v51, %v1963_v55 }
 0x28a   : > { %1868 = vmatpush.msra.mxu1 %v4369_v60  ;;  %1837 = vmatpush.msra.mxu0 %v1675_v33  ;;  %v4460_v56 = vsub.f32 %v237_v40, %v4449_v22  ;;  %v4475_v60 = vand.u32 4294901760, %v233_v58  ;;  %v1965_v3 = vand.u32 4294901760, %v1964_v59 }
 0x28b   : > { %1907 = vmatpush.msra.mxu2 %v4449_v22 }
 0x28c   : > { %1870 = vmatpush.msra.mxu1 %v4383_v4  ;;  %v1969_v61 = vand.u32 4294901760, %v4460_v56  ;;  %v4486_v6 = vsub.f32 %v233_v58, %v4475_v60  ;;  %1966 = vmatpush.msra.mxu3 %v1965_v3 }
 0x28d   : > { %1909 = vmatpush.msra.mxu2 %v4462_v57 }
 0x28e   : > { %1872 = vmatpush.msra.mxu1 %v4398_v10  ;;  %v1970_v4 = vsub.f32 %v4460_v56, %v1969_v61  ;;  %v1976_v10 = vsub.f32 %v4473_v63, %v1975_v5  ;;  %v1981_v11 = vand.u32 4294901760, %v4486_v6 }
 0x28f   : > { %1911 = vmatpush.msra.mxu2 %v4475_v60 }
 0x290   : > { %1874 = vmatpush.msra.mxu1 %v4408_v62  ;;  %v1971_v9 = vand.u32 4294901760, %v1970_v4  ;;  %v227_v62 = vld [vmem:[%s5525_s2 + $0x18] sm:$0xff]  ;;  %v1977_v18 = vand.u32 4294901760, %v1976_v10  ;;  %v1982_v19 = vsub.f32 %v4486_v6, %v1981_v11 }
 0x292   : > { %1876 = vmatpush.msra.mxu1 %v1586_v21  ;;  %1972 = vmatpush.msra.mxu3 %v1971_v9  ;;  %v4513_v21 = vand.u32 4294901760, %v227_v62  ;;  %v1983_v27 = vand.u32 4294901760, %v1982_v19 }
 0x294   : > { %1878 = vmatpush.msra.mxu1 %v1588_v28  ;;  %1978 = vmatpush.msra.mxu3 %v1977_v18  ;;  %v1993_v28 = vand.u32 4294901760, %v4511_v20  ;;  %v4522_v29 = vsub.f32 %v227_v62, %v4513_v21 }
 0x296   : > { %1984 = vmatpush.msra.mxu3 %v1983_v27  ;;  %v1994_v38 = vsub.f32 %v4511_v20, %v1993_v28  ;;  %v1999_v14 = vand.u32 4294901760, %v4522_v29 }
 0x298   : > { %v1995_v42 = vand.u32 4294901760, %v1994_v38 }
 0x2c6   : > { %v1389_v49 = vpop.f32.mrf.mxu0 }
 0x2c8   : > { %v1435_v50 = vpop.f32.mrf.mxu1 }
 0x2ca   : > { %v4389_v48 = vpop.f32.mrf.mxu3 }
 0x2ce   : > { %v1394_v8 = vpop.f32.mrf.mxu0 }
 0x2d0   : > { %v1441_v26 = vpop.f32.mrf.mxu1 }
 0x2d2   : > { %v1254_v30 = vpop.f32.mrf.mxu2  ;;  %v4419_v32 = vpop.f32.mrf.mxu3 }
 0x2d3   : > { %v1340_v52 = vadd.f32 %v4389_v48, %v1254_v30  ;;  %v4488_v48 = vand.u32 4294901760, %v231_v1  ;;  %v4524_v30 = vand.u32 4294901760, %v225_v25 }
 0x2d5   : > { %v1390_v0 = vadd.f32 %v1389_v49, %v1340_v52  ;;  %1913 = vmatpush.msra.mxu2 %v4488_v48  ;;  %v4502_v16 = vsub.f32 %v231_v1, %v4488_v48  ;;  %v4535_v39 = vsub.f32 %v225_v25, %v4524_v30 }
 0x2d6   : > { %v1399_v52 = vpop.f32.mrf.mxu0 }
 0x2d7   : > { %v1436_v15 = vadd.f32 %v1435_v50, %v1390_v0  ;;  %v1987_v24 = vand.u32 4294901760, %v4502_v16  ;;  %1915 = vmatpush.msra.mxu2 %v4497_v12  ;;  %v2005_v46 = vand.u32 4294901760, %v4535_v39 }
 0x2d8   : > { %v1447_v3 = vpop.f32.mrf.mxu1 }
 0x2d9   : > { %v1988_v36 = vsub.f32 %v4502_v16, %v1987_v24  ;;  %1917 = vmatpush.msra.mxu2 %v4513_v21  ;;  %v2006_v59 = vsub.f32 %v4535_v39, %v2005_v46 }
 0x2da   : > { %v1262_v43 = vpop.f32.mrf.mxu2  ;;  %v4425_v44 = vpop.f32.mrf.mxu3 }
 0x2db   : > { %v1344_v13 = vadd.f32 %v4419_v32, %v1262_v43  ;;  %v1989_v31 = vand.u32 4294901760, %v1988_v36  ;;  %1919 = vmatpush.msra.mxu2 %v4524_v30  ;;  %v2000_v43 = vsub.f32 %v4522_v29, %v1999_v14 }
 0x2dd   : > { %v1395_v32 = vadd.f32 %v1394_v8, %v1344_v13  ;;  %1990 = vmatpush.msra.mxu3 %v1989_v31  ;;  %v2001_v58 = vand.u32 4294901760, %v2000_v43 }
 0x2df   : > { %v1442_v40 = vadd.f32 %v1441_v26, %v1395_v32  ;;  %1996 = vmatpush.msra.mxu3 %v1995_v42 }
 0x2e1   : > { %2002 = vmatpush.msra.mxu3 %v2001_v58 }
 0x2e2   : > { %v4430_v45 = vpop.f32.mrf.mxu2  ;;  %v4438_v34 = vpop.f32.mrf.mxu3 }
 0x2e3   : > { %v1348_v49 = vadd.f32 %v4425_v44, %v4430_v45  ;;  %v2007_v45 = vand.u32 4294901760, %v2006_v59 }
 0x2e5   : > { %v1400_v1 = vadd.f32 %v1399_v52, %v1348_v49  ;;  %2008 = vmatpush.msra.mxu3 %v2007_v45 }
 0x2e7   : > { %v1448_v10 = vadd.f32 %v1447_v3, %v1400_v1 }
 0x2ea   : > { %v4455_v54 = vpop.f32.mrf.mxu2  ;;  %v1539_v2 = vpop.f32.mrf.mxu3 }
 0x2f2   : > { %v1498_v17 = vpop.f32.mrf.mxu2  ;;  %v1543_v37 = vpop.f32.mrf.mxu3 }
 0x2f3   : > { %v1499_v23 = vadd.f32 %v1498_v17, %v1436_v15  ;;  %v1453_v17 = vpop.f32.mrf.mxu1 }
 0x2f5   : > { %v1540_v35 = vadd.f32 %v1539_v2, %v1499_v23 }
 0x2f7   : > { %v1555_v33 = vsel %vm498_vm1, %v1540_v35, 0 }
 0x2f8   : > { %v4539_v41 = vand.u32 4294901760, %v1555_v33 }
 0x2fa   : > { %v4548_v53 = vsub.f32 %v1555_v33, %v4539_v41  ;;  %v1502_v50 = vpop.f32.mrf.mxu2  ;;  %1680 = vmatmul.f32.vlgmr.msrb.gmra.mxu1 %v4539_v41  ;;  %v1547_v15 = vpop.f32.mrf.mxu3 }
 0x2fb   : > { %v1503_v0 = vadd.f32 %v1502_v50, %v1442_v40  ;;  %2088 = vmatpush.msrb.mxu1 %v4436_v47 }
 0x2fc   : > { %1730 = vmatmul.f32.vlgmr.msrb.gmra.mxu2 %v4548_v53  ;;  %v4557_v44 = vand.u32 4294901760, %v4548_v53 }
 0x2fd   : > { %v1544_v2 = vadd.f32 %v1543_v37, %v1503_v0  ;;  %2139 = vmatpush.msrb.mxu2 %v1963_v55  ;;  %2090 = vmatpush.msrb.mxu1 %v4449_v22  ;;  %v1352_v55 = vadd.f32 %v4438_v34, %v4455_v54 }
 0x2fe   : > { %1776 = vmatmul.f32.vlgmr.msrb.gmra.mxu3 %v4557_v44  ;;  %v1593_v4 = vsub.f32 %v4548_v53, %v4557_v44 }
 0x2ff   : > { %v1558_v7 = vsel %vm498_vm1, %v1544_v2, 0  ;;  %2143 = vmatpush.msrb.mxu2 %v1969_v61  ;;  %2194 = vmatpush.msrb.mxu3 %v4436_v47  ;;  %v1404_v47 = vpop.f32.mrf.mxu0 }
 0x300   : > { %v4568_v8 = vand.u32 4294901760, %v1558_v7  ;;  %v4570_v9 = vand.u32 4294901760, %v1593_v4  ;;  %2092 = vmatpush.msrb.mxu1 %v4462_v57  ;;  %v1405_v54 = vadd.f32 %v1404_v47, %v1352_v55 }
 0x301   : > { %2147 = vmatpush.msrb.mxu2 %v1975_v5  ;;  %2196 = vmatpush.msrb.mxu3 %v4449_v22 }
 0x302   : > { %v4579_v13 = vsub.f32 %v1558_v7, %v4568_v8  ;;  %v1506_v61 = vpop.f32.mrf.mxu2  ;;  %1595 = vmatmul.f32.vlgmr.msrb.gmra.mxu0 %v4570_v9  ;;  %1684 = vmatmul.f32.gmra.mxu1 %v4568_v8 }
 0x303   : > { %v1507_v62 = vadd.f32 %v1506_v61, %v1448_v10  ;;  %2036 = vmatpush.msrb.mxu0 %v4443_v51  ;;  %2094 = vmatpush.msrb.mxu1 %v4475_v60 }
 0x304   : > { %1735 = vmatmul.f32.gmra.mxu2 %v4579_v13  ;;  %v4587_v34 = vand.u32 4294901760, %v4579_v13  ;;  %2198 = vmatpush.msrb.mxu3 %v4462_v57  ;;  %v1454_v57 = vadd.f32 %v1453_v17, %v1405_v54 }
 0x305   : > { %v1548_v5 = vadd.f32 %v1547_v15, %v1507_v62  ;;  %2039 = vmatpush.msrb.mxu0 %v4460_v56  ;;  %2151 = vmatpush.msrb.mxu2 %v1981_v11 }
 0x306   : > { %1782 = vmatmul.f32.gmra.mxu3 %v4587_v34  ;;  %v1601_v51 = vsub.f32 %v4579_v13, %v4587_v34  ;;  %2096 = vmatpush.msrb.mxu1 %v4488_v48 }
 0x307   : > { %v1561_v22 = vsel %vm498_vm1, %v1548_v5, 0  ;;  %2042 = vmatpush.msrb.mxu0 %v4473_v63  ;;  %2200 = vmatpush.msrb.mxu3 %v4475_v60  ;;  %v1551_v60 = vpop.f32.mrf.mxu3 }
 0x308   : > { %v4600_v18 = vand.u32 4294901760, %v1561_v22  ;;  %v1602_v56 = vand.u32 4294901760, %v1601_v51  ;;  %2155 = vmatpush.msrb.mxu2 %v1987_v24  ;;  %2098 = vmatpush.msrb.mxu1 %v4497_v12 }
 0x309   : > { %2045 = vmatpush.msrb.mxu0 %v4486_v6  ;;  %2202 = vmatpush.msrb.mxu3 %v4488_v48 }
 0x30a   : > { %v1607_v11 = vsub.f32 %v1561_v22, %v4600_v18  ;;  %v1510_v19 = vpop.f32.mrf.mxu2  ;;  %1603 = vmatmul.f32.gmra.mxu0 %v1602_v56  ;;  %1688 = vmatmul.f32.gmra.mxu1 %v4600_v18 }
 0x30b   : > { %v1511_v63 = vadd.f32 %v1510_v19, %v1454_v57  ;;  %2048 = vmatpush.msrb.mxu0 %v4502_v16  ;;  %2159 = vmatpush.msrb.mxu2 %v1993_v28 }
 0x30c   : > { %1740 = vmatmul.f32.gmra.mxu2 %v1607_v11  ;;  %v1608_v23 = vand.u32 4294901760, %v1607_v11  ;;  %2204 = vmatpush.msrb.mxu3 %v4497_v12 }
 0x30d   : > { %v1552_v6 = vadd.f32 %v1551_v60, %v1511_v63  ;;  %2051 = vmatpush.msrb.mxu0 %v4511_v20  ;;  %2100 = vmatpush.msrb.mxu1 %v4513_v21 }
 0x30e   : > { %1788 = vmatmul.f32.gmra.mxu3 %v1608_v23  ;;  %v1609_v48 = vsub.f32 %v1607_v11, %v1608_v23  ;;  %2163 = vmatpush.msrb.mxu2 %v1999_v14 }
 0x30f   : > { %v1564_v24 = vsel %vm498_vm1, %v1552_v6, 0  ;;  %2054 = vmatpush.msrb.mxu0 %v4522_v29  ;;  %2102 = vmatpush.msrb.mxu1 %v4524_v30 }
 0x310   : > { %v1614_v16 = vand.u32 4294901760, %v1564_v24  ;;  %v1610_v25 = vand.u32 4294901760, %v1609_v48  ;;  %2206 = vmatpush.msrb.mxu3 %v4513_v21  ;;  %2167 = vmatpush.msrb.mxu2 %v2005_v46 }
 0x311   : > { %2057 = vmatpush.msrb.mxu0 %v4535_v39 }
 0x312   : > { %v1615_v12 = vsub.f32 %v1564_v24, %v1614_v16  ;;  %1611 = vmatmul.f32.gmra.mxu0 %v1610_v25  ;;  %1692 = vmatmul.f32.gmra.mxu1 %v1614_v16 }
 0x313   : > { %2208 = vmatpush.msrb.mxu3 %v4524_v30 }
 0x314   : > { %1745 = vmatmul.f32.gmra.mxu2 %v1615_v12  ;;  %v1616_v20 = vand.u32 4294901760, %v1615_v12 }
 0x316   : > { %1794 = vmatmul.f32.gmra.mxu3 %v1616_v20  ;;  %v1617_v26 = vsub.f32 %v1615_v12, %v1616_v20 }
 0x318   : > { %v1618_v27 = vand.u32 4294901760, %v1617_v26 }
 0x31a   : > { %1619 = vmatmul.f32.gmra.mxu0 %v1618_v27  ;;  %1880 = vmatmul.f32.vlgmr.msra.gmra.mxu1 %v4539_v41 }
 0x31c   : > { %1925 = vmatmul.f32.vlgmr.msra.gmra.mxu2 %v4570_v9 }
 0x31e   : > { %2010 = vmatmul.f32.vlgmr.msra.gmra.mxu3 %v4539_v41 }
 0x322   : > { %1839 = vmatmul.f32.vlgmr.msra.gmra.mxu0 %v4539_v41  ;;  %1884 = vmatmul.f32.gmra.mxu1 %v4568_v8 }
 0x324   : > { %1933 = vmatmul.f32.gmra.mxu2 %v1602_v56 }
 0x326   : > { %2014 = vmatmul.f32.gmra.mxu3 %v4568_v8 }
 0x32a   : > { %1843 = vmatmul.f32.gmra.mxu0 %v4568_v8  ;;  %1888 = vmatmul.f32.gmra.mxu1 %v4600_v18 }
 0x32c   : > { %1941 = vmatmul.f32.gmra.mxu2 %v1610_v25 }
 0x32e   : > { %2018 = vmatmul.f32.gmra.mxu3 %v4600_v18 }
 0x332   : > { %1847 = vmatmul.f32.gmra.mxu0 %v4600_v18  ;;  %1892 = vmatmul.f32.gmra.mxu1 %v1614_v16 }
 0x334   : > { %1949 = vmatmul.f32.gmra.mxu2 %v1618_v27 }
 0x336   : > { %2022 = vmatmul.f32.gmra.mxu3 %v1614_v16 }
 0x33a   : > { %1851 = vmatmul.f32.gmra.mxu0 %v1614_v16  ;;  %2106 = vmatmul.f32.vlgmr.msrb.gmra.mxu1 %v4557_v44 }
 0x33c   : > { %2169 = vmatmul.f32.vlgmr.msrb.gmra.mxu2 %v4539_v41 }
 0x33e   : > { %2210 = vmatmul.f32.vlgmr.msrb.gmra.mxu3 %v4539_v41 }
 0x342   : > { %2060 = vmatmul.f32.vlgmr.msrb.gmra.mxu0 %v4548_v53  ;;  %2112 = vmatmul.f32.gmra.mxu1 %v4587_v34 }
 0x344   : > { %2173 = vmatmul.f32.gmra.mxu2 %v4568_v8 }
 0x346   : > { %2214 = vmatmul.f32.gmra.mxu3 %v4568_v8 }
 0x34a   : > { %2065 = vmatmul.f32.gmra.mxu0 %v4579_v13  ;;  %2118 = vmatmul.f32.gmra.mxu1 %v1608_v23 }
 0x34c   : > { %2177 = vmatmul.f32.gmra.mxu2 %v4600_v18 }
 0x34e   : > { %2218 = vmatmul.f32.gmra.mxu3 %v4600_v18 }
 0x352   : > { %2070 = vmatmul.f32.gmra.mxu0 %v1607_v11  ;;  %2124 = vmatmul.f32.gmra.mxu1 %v1616_v20 }
 0x354   : > { %2181 = vmatmul.f32.gmra.mxu2 %v1614_v16 }
 0x356   : > { %2222 = vmatmul.f32.gmra.mxu3 %v1614_v16 }
 0x35a   : > { %2075 = vmatmul.f32.gmra.mxu0 %v1615_v12 }
 0x377   : > { %v1681_v21 = vpop.f32.mrf.mxu1 }
 0x37f   : > { %v1596_v28 = vpop.f32.mrf.mxu0  ;;  %v1685_v29 = vpop.f32.mrf.mxu1 }
 0x380   : > { %v1731_v30 = vpop.f32.mrf.mxu2  ;;  %v1682_v37 = vadd.f32 %v1681_v21, %v1596_v28 }
 0x381   : > { %v1777_v32 = vpop.f32.mrf.mxu3 }
 0x382   : > { %v1732_v40 = vadd.f32 %v1731_v30, %v1682_v37 }
 0x384   : > { %v1778_v52 = vadd.f32 %v1777_v32, %v1732_v40 }
 0x387   : > { %v1604_v35 = vpop.f32.mrf.mxu0  ;;  %v1689_v36 = vpop.f32.mrf.mxu1 }
 0x388   : > { %v1736_v38 = vpop.f32.mrf.mxu2  ;;  %v1686_v53 = vadd.f32 %v1685_v29, %v1604_v35 }
 0x389   : > { %v1783_v14 = vpop.f32.mrf.mxu3 }
 0x38a   : > { %v1737_v45 = vadd.f32 %v1736_v38, %v1686_v53 }
 0x38c   : > { %v1784_v2 = vadd.f32 %v1783_v14, %v1737_v45  ;;  %v215_v45 = vld [vmem:[%s5524_s1 + $0x148] sm:$0xff] }
 0x38f   : > { %v1612_v39 = vpop.f32.mrf.mxu0  ;;  %v4646_v33 = vpop.f32.mrf.mxu1 }
 0x390   : > { %v1741_v31 = vpop.f32.mrf.mxu2  ;;  %v1690_v23 = vadd.f32 %v1689_v36, %v1612_v39 }
 0x391   : > { %v1789_v41 = vpop.f32.mrf.mxu3 }
 0x392   : > { %v1742_v25 = vadd.f32 %v1741_v31, %v1690_v23 }
 0x394   : > { %v1790_v28 = vadd.f32 %v1789_v41, %v1742_v25 }
 0x397   : > { %v4648_v42 = vpop.f32.mrf.mxu0  ;;  %v1881_v43 = vpop.f32.mrf.mxu1 }
 0x398   : > { %v4650_v46 = vpop.f32.mrf.mxu2 }
 0x399   : > { %v4652_v49 = vpop.f32.mrf.mxu3 }
 0x39f   : > { %v1840_v50 = vpop.f32.mrf.mxu0  ;;  %v1885_v58 = vpop.f32.mrf.mxu1 }
 0x3a0   : > { %v1841_v59 = vadd.f32 %v1840_v50, %v1778_v52  ;;  %v1926_v0 = vpop.f32.mrf.mxu2 }
 0x3a1   : > { %v2011_v44 = vpop.f32.mrf.mxu3 }
 0x3a2   : > { %v4654_v1 = vadd.f32 %v1881_v43, %v1841_v59  ;;  %v2012_v5 = vadd.f32 %v2011_v44, %v1926_v0  ;;  %v1694_v43 = vadd.f32 %v4646_v33, %v4648_v42 }
 0x3a4   : > { %2732 = vrot.lane.b32.xlu2 %v4654_v1, %s3960_s30  ;;  %v1747_v50 = vadd.f32 %v4650_v46, %v1694_v43  ;;  %v214_v46 = vld [vmem:[%s5524_s1 + $0x140] sm:$0xff] }
 0x3a6   : > { %v1796_v44 = vadd.f32 %v4652_v49, %v1747_v50  ;;  %v213_v49 = vld [vmem:[%s5524_s1 + $0x138] sm:$0xff] }
 0x3a7   : > { %v1844_v3 = vpop.f32.mrf.mxu0  ;;  %v1889_v4 = vpop.f32.mrf.mxu1 }
 0x3a8   : > { %v1845_v7 = vadd.f32 %v1844_v3, %v1784_v2  ;;  %v1934_v8 = vpop.f32.mrf.mxu2  ;;  %v4699_v2 = vand.u32 4294901760, %v215_v45  ;;  %v4701_v3 = vand.u32 4294901760, %v214_v46 }
 0x3a9   : > { %v2015_v9 = vpop.f32.mrf.mxu3 }
 0x3aa   : > { %v4658_v55 = vadd.f32 %v1885_v58, %v1845_v7  ;;  %v2016_v19 = vadd.f32 %v2015_v9, %v1934_v8  ;;  %v212_v7 = vld [vmem:[%s5524_s1 + $0x130] sm:$0xff]  ;;  %v211_v8 = vld [vmem:[%s5524_s1 + $0x128] sm:$0xff]  ;;  %2283 = vmatpush.msra.mxu0 %v4699_v2  ;;  %2534 = vmatpush.msra.mxu3 %v4699_v2 }
 0x3ab   : > { %v4711_v9 = vand.u32 4294901760, %v212_v7 }
 0x3ac   : > { %2734 = vrot.lane.b32.xlu2 %v4658_v55, %s3960_s30  ;;  %2285 = vmatpush.msra.mxu0 %v4701_v3 }
 0x3ad   : > { %2536 = vmatpush.msra.mxu3 %v4701_v3 }
 0x3af   : > { %v1848_v10 = vpop.f32.mrf.mxu0  ;;  %v1893_v15 = vpop.f32.mrf.mxu1 }
 0x3b0   : > { %v1942_v13 = vpop.f32.mrf.mxu2  ;;  %v1849_v32 = vadd.f32 %v1848_v10, %v1790_v28  ;;  %v4713_v10 = vand.u32 4294901760, %v211_v8 }
 0x3b1   : > { %v2019_v61 = vpop.f32.mrf.mxu3 }
 0x3b2   : > { %v2020_v20 = vadd.f32 %v2019_v61, %v1942_v13  ;;  %v4670_v14 = vadd.f32 %v1889_v4, %v1849_v32  ;;  %v4703_v4 = vand.u32 4294901760, %v213_v49  ;;  %v4716_v13 = vsub.f32 %v215_v45, %v4699_v2 }
 0x3b4   : > { %v4724_v61 = vsub.f32 %v213_v49, %v4703_v4  ;;  %2462 = vmatpush.msra.mxu2 %v4716_v13  ;;  %2287 = vmatpush.msra.mxu0 %v4703_v4  ;;  %v205_v49 = vld [vmem:[%s5524_s1 + $0xf8] sm:$0xff] }
 0x3b5   : > { %2538 = vmatpush.msra.mxu3 %v4703_v4 }
 0x3b6   : > { %2289 = vmatpush.msra.mxu0 %v4711_v9 }
 0x3b7   : > { %v1852_v62 = vpop.f32.mrf.mxu0  ;;  %v2107_v54 = vpop.f32.mrf.mxu1  ;;  %2540 = vmatpush.msra.mxu3 %v4711_v9 }
 0x3b8   : > { %v1950_v47 = vpop.f32.mrf.mxu2  ;;  %v1853_v33 = vadd.f32 %v1852_v62, %v1796_v44  ;;  %v4727_v62 = vsub.f32 %v212_v7, %v4711_v9  ;;  %2291 = vmatpush.msra.mxu0 %v4713_v10  ;;  %v206_v44 = vld [vmem:[%s5524_s1 + $0x100] sm:$0xff] }
 0x3b9   : > { %v2023_v34 = vpop.f32.mrf.mxu3  ;;  %2542 = vmatpush.msra.mxu3 %v4713_v10 }
 0x3ba   : > { %v2024_v39 = vadd.f32 %v2023_v34, %v1950_v47  ;;  %v4686_v42 = vadd.f32 %v1893_v15, %v1853_v33  ;;  %v4721_v15 = vsub.f32 %v214_v46, %v4701_v3  ;;  %v4730_v47 = vsub.f32 %v211_v8, %v4713_v10 }
 0x3bb   : > { %v2373_v34 = vand.u32 4294901760, %v4716_v13  ;;  %v4785_v33 = vand.u32 4294901760, %v206_v44 }
 0x3bc   : > { %2465 = vmatpush.msra.mxu2 %v4721_v15 }
 0x3bd   : > { %v4789_v45 = vsub.f32 %v206_v44, %v4785_v33 }
 0x3be   : > { %2468 = vmatpush.msra.mxu2 %v4724_v61 }
 0x3bf   : > { %v2061_v51 = vpop.f32.mrf.mxu0  ;;  %v2113_v11 = vpop.f32.mrf.mxu1  ;;  %v2881_v46 = vand.u32 4294901760, %v4789_v45 }
 0x3c0   : > { %v2062_v22 = vadd.f32 %v2061_v51, %v2012_v5  ;;  %v2170_v17 = vpop.f32.mrf.mxu2  ;;  %v2385_v5 = vand.u32 4294901760, %v4724_v61  ;;  %v2391_v51 = vand.u32 4294901760, %v4727_v62  ;;  %2471 = vmatpush.msra.mxu2 %v4727_v62 }
 0x3c1   : > { %v2211_v18 = vpop.f32.mrf.mxu3 }
 0x3c2   : > { %v2108_v56 = vadd.f32 %v2107_v54, %v2062_v22  ;;  %v2379_v54 = vand.u32 4294901760, %v4721_v15  ;;  %v210_v22 = vld [vmem:[%s5524_s1 + $0x120] sm:$0xff]  ;;  %2474 = vmatpush.msra.mxu2 %v4730_v47 }
 0x3c3   : > { %v2292_v23 = vand.u32 4294901760, %v210_v22 }
 0x3c4   : > { %v2171_v57 = vadd.f32 %v2170_v17, %v2108_v56  ;;  %v2374_v17 = vsub.f32 %v4716_v13, %v2373_v34  ;;  %v2386_v56 = vsub.f32 %v4724_v61, %v2385_v5 }
 0x3c5   : > { %2293 = vmatpush.msra.mxu0 %v2292_v23  ;;  %2544 = vmatpush.msra.mxu3 %v2292_v23 }
 0x3c6   : > { %v4662_v63 = vadd.f32 %v2211_v18, %v2171_v57  ;;  %v2380_v18 = vsub.f32 %v4721_v15, %v2379_v54  ;;  %v2397_v57 = vand.u32 4294901760, %v4730_v47 }
 0x3c7   : > { %v2066_v60 = vpop.f32.mrf.mxu0  ;;  %v2119_v27 = vpop.f32.mrf.mxu1 }
 0x3c8   : > { %v2067_v6 = vadd.f32 %v2066_v60, %v2016_v19  ;;  %v2174_v48 = vpop.f32.mrf.mxu2  ;;  %2230 = vrot.lane.b32.xlu0 %v4662_v63, %s3960_s30  ;;  %v2381_v19 = vand.u32 4294901760, %v2380_v18  ;;  %v2392_v60 = vsub.f32 %v4727_v62, %v2391_v51 }
 0x3c9   : > { %v2215_v24 = vpop.f32.mrf.mxu3 }
 0x3ca   : > { %v2114_v16 = vadd.f32 %v2113_v11, %v2067_v6  ;;  %v2375_v11 = vand.u32 4294901760, %v2374_v17  ;;  %v2387_v6 = vand.u32 4294901760, %v2386_v56  ;;  %v203_v56 = vld [vmem:[%s5524_s1 + $0xe8] sm:$0xff] }
 0x3cc   : > { %v2175_v12 = vadd.f32 %v2174_v48, %v2114_v16  ;;  %2376 = vmatpush.msra.mxu1 %v2375_v11  ;;  %v2398_v48 = vsub.f32 %v4730_v47, %v2397_v57  ;;  %v2402_v16 = vsub.f32 %v210_v22, %v2292_v23 }
 0x3ce   : > { %v4666_v26 = vadd.f32 %v2215_v24, %v2175_v12  ;;  %2382 = vmatpush.msra.mxu1 %v2381_v19  ;;  %v2393_v24 = vand.u32 4294901760, %v2392_v60  ;;  %v2399_v25 = vand.u32 4294901760, %v2398_v48  ;;  %2477 = vmatpush.msra.mxu2 %v2402_v16  ;;  %v209_v12 = vld [vmem:[%s5524_s1 + $0x118] sm:$0xff]  ;;  %v4834_v19 = vand.u32 4294901760, %v203_v56 }
 0x3cf   : > { %v2071_v21 = vpop.f32.mrf.mxu0  ;;  %v2125_v41 = vpop.f32.mrf.mxu1 }
 0x3d0   : > { %v2072_v29 = vadd.f32 %v2071_v21, %v2020_v20  ;;  %2232 = vrot.lane.b32.xlu0 %v4666_v26, %s3960_s30  ;;  %v2178_v30 = vpop.f32.mrf.mxu2  ;;  %2388 = vmatpush.msra.mxu1 %v2387_v6  ;;  %v2294_v20 = vand.u32 4294901760, %v209_v12  ;;  %v2403_v21 = vand.u32 4294901760, %v2402_v16 }
 0x3d1   : > { %v2219_v36 = vpop.f32.mrf.mxu3 }
 0x3d2   : > { %v2120_v35 = vadd.f32 %v2119_v27, %v2072_v29  ;;  %2394 = vmatpush.msra.mxu1 %v2393_v24  ;;  %v208_v27 = vld [vmem:[%s5524_s1 + $0x110] sm:$0xff]  ;;  %v2408_v28 = vsub.f32 %v209_v12, %v2294_v20  ;;  %2295 = vmatpush.msra.mxu0 %v2294_v20 }
 0x3d3   : > { %v2296_v29 = vand.u32 4294901760, %v208_v27  ;;  %2546 = vmatpush.msra.mxu3 %v2294_v20 }
 0x3d4   : > { %v2179_v38 = vadd.f32 %v2178_v30, %v2120_v35  ;;  %2400 = vmatpush.msra.mxu1 %v2399_v25  ;;  %v2404_v30 = vsub.f32 %v2402_v16, %v2403_v21  ;;  %v2409_v32 = vand.u32 4294901760, %v2408_v28  ;;  %2480 = vmatpush.msra.mxu2 %v2408_v28  ;;  %v4847_v16 = vsub.f32 %v203_v56, %v4834_v19 }
 0x3d5   : > { %v2414_v35 = vsub.f32 %v208_v27, %v2296_v29  ;;  %2548 = vmatpush.msra.mxu3 %v2296_v29  ;;  %2297 = vmatpush.msra.mxu0 %v2296_v29 }
 0x3d6   : > { %v4672_v31 = vadd.f32 %v2219_v36, %v2179_v38  ;;  %v2405_v36 = vand.u32 4294901760, %v2404_v30  ;;  %v2410_v38 = vsub.f32 %v2408_v28, %v2409_v32  ;;  %v202_v28 = vld [vmem:[%s5524_s1 + $0xe0] sm:$0xff] }
 0x3d7   : > { %v2076_v37 = vpop.f32.mrf.mxu0  ;;  %2483 = vmatpush.msra.mxu2 %v2414_v35  ;;  %2609 = vmatpush.msrb.mxu0 %v2373_v34  ;;  %v204_v34 = vld [vmem:[%s5524_s1 + $0xf0] sm:$0xff] }
 0x3d8   : > { %v2077_v40 = vadd.f32 %v2076_v37, %v2024_v39  ;;  %2234 = vrot.lane.b32.xlu1 %v4672_v31, %s3960_s30  ;;  %2736 = vrot.lane.b32.xlu0 %v4670_v14, %s3960_s30  ;;  %v2182_v53 = vpop.f32.mrf.mxu2  ;;  %v2415_v39 = vand.u32 4294901760, %v2414_v35  ;;  %v2411_v37 = vand.u32 4294901760, %v2410_v38 }
 0x3d9   : > { %v2223_v59 = vpop.f32.mrf.mxu3  ;;  %2406 = vmatpush.msra.mxu1 %v2405_v36  ;;  %2613 = vmatpush.msrb.mxu0 %v2379_v54  ;;  %v4817_v54 = vand.u32 4294901760, %v204_v34  ;;  %v4867_v36 = vand.u32 4294901760, %v202_v28 }
 0x3da   : > { %v2126_v52 = vadd.f32 %v2125_v41, %v2077_v40  ;;  %v2416_v43 = vsub.f32 %v2414_v35, %v2415_v39  ;;  %v207_v41 = vld [vmem:[%s5524_s1 + $0x108] sm:$0xff] }
 0x3db   : > { %2412 = vmatpush.msra.mxu1 %v2411_v37  ;;  %2617 = vmatpush.msrb.mxu0 %v2385_v5  ;;  %v4826_v17 = vsub.f32 %v204_v34, %v4817_v54 }
 0x3dc   : > { %v2183_v58 = vadd.f32 %v2182_v53, %v2126_v52  ;;  %v2417_v40 = vand.u32 4294901760, %v2416_v43  ;;  %v4770_v52 = vand.u32 4294901760, %v207_v41  ;;  %v4874_v43 = vsub.f32 %v202_v28, %v4867_v36 }
 0x3dd   : > { %2621 = vmatpush.msrb.mxu0 %v2391_v51  ;;  %v2893_v11 = vand.u32 4294901760, %v4826_v17 }
 0x3de   : > { %v4681_v0 = vadd.f32 %v2223_v59, %v2183_v58  ;;  %2418 = vmatpush.msra.mxu1 %v2417_v40  ;;  %2785 = vmatpush.msrb.mxu2 %v4770_v52  ;;  %v4775_v53 = vsub.f32 %v207_v41, %v4770_v52 }
 0x3df   : > { %2625 = vmatpush.msrb.mxu0 %v2397_v57  ;;  %v2894_v6 = vsub.f32 %v4826_v17, %v2893_v11 }
 0x3e0   : > { %2236 = vrot.lane.b32.xlu1 %v4681_v0, %s3960_s30  ;;  %2680 = vmatpush.msrb.mxu1 %v4699_v2  ;;  %v2875_v50 = vand.u32 4294901760, %v4775_v53  ;;  %v2882_v2 = vsub.f32 %v4789_v45, %v2881_v46 }
 0x3e1   : > { %2629 = vmatpush.msrb.mxu0 %v2403_v21  ;;  %2787 = vmatpush.msrb.mxu2 %v4785_v33  ;;  %v2895_v24 = vand.u32 4294901760, %v2894_v6  ;;  %v2899_v21 = vand.u32 4294901760, %v4847_v16 }
 0x3e2   : > { %2682 = vmatpush.msrb.mxu1 %v4701_v3  ;;  %v2876_v58 = vsub.f32 %v4775_v53, %v2875_v50  ;;  %v4798_v3 = vand.u32 4294901760, %v205_v49 }
 0x3e3   : > { %2633 = vmatpush.msrb.mxu0 %v2409_v32  ;;  %v2900_v35 = vsub.f32 %v4847_v16, %v2899_v21 }
 0x3e4   : > { %2684 = vmatpush.msrb.mxu1 %v4703_v4  ;;  %v2877_v59 = vand.u32 4294901760, %v2876_v58  ;;  %v2883_v4 = vand.u32 4294901760, %v2882_v2  ;;  %2789 = vmatpush.msrb.mxu2 %v4798_v3  ;;  %v4802_v7 = vsub.f32 %v205_v49, %v4798_v3  ;;  %v201_v2 = vld [vmem:[%s5524_s1 + $0xd8] sm:$0xff] }
 0x3e5   : > { %2637 = vmatpush.msrb.mxu0 %v2415_v39  ;;  %v2901_v37 = vand.u32 4294901760, %v2900_v35 }
 0x3e6   : > { %2686 = vmatpush.msrb.mxu1 %v4711_v9  ;;  %2878 = vmatpush.msrb.mxu3 %v2877_v59  ;;  %v2905_v59 = vand.u32 4294901760, %v4874_v43 }
 0x3e7   : > { %2791 = vmatpush.msrb.mxu2 %v4817_v54 }
 0x3e8   : > { %2738 = vrot.lane.b32.xlu1 %v4686_v42, %s3960_s30  ;;  %2688 = vmatpush.msrb.mxu1 %v4713_v10  ;;  %v2887_v10 = vand.u32 4294901760, %v4802_v7 }
 0x3e9   : > { %2884 = vmatpush.msrb.mxu3 %v2883_v4  ;;  %2793 = vmatpush.msrb.mxu2 %v4834_v19 }
 0x3ea   : > { %2690 = vmatpush.msrb.mxu1 %v2292_v23  ;;  %v2888_v15 = vsub.f32 %v4802_v7, %v2887_v10 }
 0x3eb   : > { %2795 = vmatpush.msrb.mxu2 %v4867_v36 }
 0x3ec   : > { %2692 = vmatpush.msrb.mxu1 %v2294_v20  ;;  %v2889_v62 = vand.u32 4294901760, %v2888_v15 }
 0x3ee   : > { %2694 = vmatpush.msrb.mxu1 %v2296_v29  ;;  %2890 = vmatpush.msrb.mxu3 %v2889_v62 }
 0x3f0   : > { %2896 = vmatpush.msrb.mxu3 %v2895_v24 }
 0x3f2   : > { %2902 = vmatpush.msrb.mxu3 %v2901_v37 }
 0x3fe   : > { %v4928_v37 = vpop.permute.xlu2 %2732 }
 0x43a   : > { %v2231_v8 = vpop.permute.xlu0 %2230 }
 0x43b   : > { %v2242_v9 = vmul.f32 %v2231_v8, %v4654_v1  ;;  %v2246_v38 = vmul.f32 %v2231_v8, %v4662_v63  ;;  %v2906_v8 = vsub.f32 %v4874_v43, %v2905_v59 }
 0x43d   : > { %v2251_v13 = vsel %vm498_vm1, %v2242_v9, 0  ;;  %v2263_v44 = vsel %vm498_vm1, %v2246_v38, 0  ;;  %v4892_v9 = vand.u32 4294901760, %v201_v2 }
 0x43e   : > { %v4810_v61 = vand.u32 4294901760, %v2251_v13  ;;  %v4897_v62 = vand.u32 4294901760, %v2263_v44 }
 0x43f   : > { %2797 = vmatpush.msrb.mxu2 %v4892_v9 }
 0x440   : > { %v2299_v47 = vsub.f32 %v2251_v13, %v4810_v61  ;;  %2420 = vmatmul.f32.vlgmr.msra.gmra.mxu1 %v4810_v61 }
 0x441   : > { %3036 = vmatpush.msra.mxu1 %v4770_v52 }
 0x442   : > { %v2300_v5 = vand.u32 4294901760, %v2299_v47  ;;  %v4820_v51 = vpop.permute.xlu0 %2232  ;;  %2486 = vmatmul.f32.vlgmr.msra.gmra.mxu2 %v2299_v47 }
 0x443   : > { %v2243_v22 = vmul.f32 %v4820_v51, %v4658_v55  ;;  %3038 = vmatpush.msra.mxu1 %v4785_v33  ;;  %v2247_v34 = vmul.f32 %v4820_v51, %v4666_v26 }
 0x444   : > { %v2301_v18 = vsub.f32 %v2299_v47, %v2300_v5  ;;  %2552 = vmatmul.f32.vlgmr.msra.gmra.mxu3 %v2300_v5  ;;  %v2907_v47 = vand.u32 4294901760, %v2906_v8 }
 0x445   : > { %v2254_v57 = vsel %vm498_vm1, %v2243_v22, 0  ;;  %3040 = vmatpush.msra.mxu1 %v4798_v3  ;;  %v2910_v22 = vsub.f32 %v201_v2, %v4892_v9  ;;  %v2266_v51 = vsel %vm498_vm1, %v2247_v34, 0 }
 0x446   : > { %v2302_v60 = vand.u32 4294901760, %v2301_v18  ;;  %v4837_v23 = vand.u32 4294901760, %v2254_v57  ;;  %2908 = vmatpush.msrb.mxu3 %v2907_v47  ;;  %v200_v18 = vld [vmem:[%s5524_s1 + $0xd0] sm:$0xff] }
 0x447   : > { %3042 = vmatpush.msra.mxu1 %v4817_v54  ;;  %v2911_v6 = vand.u32 4294901760, %v2910_v22 }
 0x448   : > { %2303 = vmatmul.f32.vlgmr.msra.gmra.mxu0 %v2302_v60  ;;  %2424 = vmatmul.f32.gmra.mxu1 %v4837_v23  ;;  %v2307_v48 = vsub.f32 %v2254_v57, %v4837_v23  ;;  %v4909_v57 = vand.u32 4294901760, %v200_v18  ;;  %v2331_v60 = vsub.f32 %v2263_v44, %v4897_v62 }
 0x449   : > { %2964 = vmatpush.msra.mxu0 %v4775_v53  ;;  %3044 = vmatpush.msra.mxu1 %v4834_v19 }
 0x44a   : > { %v4851_v25 = vpop.permute.xlu1 %2234  ;;  %2491 = vmatmul.f32.gmra.mxu2 %v2307_v48  ;;  %v2308_v12 = vand.u32 4294901760, %v2307_v48  ;;  %v2916_v24 = vsub.f32 %v200_v18, %v4909_v57  ;;  %v2332_v28 = vand.u32 4294901760, %v2331_v60  ;;  %v4969_v44 = vpop.permute.xlu0 %2736 }
 0x44b   : > { %v2244_v20 = vmul.f32 %v4851_v25, %v4670_v14  ;;  %2967 = vmatpush.msra.mxu0 %v4789_v45  ;;  %3046 = vmatpush.msra.mxu1 %v4867_v36  ;;  %v2248_v35 = vmul.f32 %v4851_v25, %v4672_v31 }
 0x44c   : > { %2558 = vmatmul.f32.gmra.mxu3 %v2308_v12  ;;  %v2309_v27 = vsub.f32 %v2307_v48, %v2308_v12  ;;  %2799 = vmatpush.msrb.mxu2 %v4909_v57  ;;  %v2912_v12 = vsub.f32 %v2910_v22, %v2911_v6 }
 0x44d   : > { %v2257_v29 = vsel %vm498_vm1, %v2244_v20, 0  ;;  %2970 = vmatpush.msra.mxu0 %v4802_v7  ;;  %3048 = vmatpush.msra.mxu1 %v4892_v9  ;;  %v2269_v45 = vsel %vm498_vm1, %v2248_v35, 0 }
 0x44e   : > { %v4861_v30 = vand.u32 4294901760, %v2257_v29  ;;  %v2310_v32 = vand.u32 4294901760, %v2309_v27  ;;  %3111 = vmatpush.msra.mxu2 %v2875_v50  ;;  %v4918_v27 = vand.u32 4294901760, %v2266_v51  ;;  %v2333_v50 = vsub.f32 %v2331_v60, %v2332_v28 }
 0x44f   : > { %2973 = vmatpush.msra.mxu0 %v4826_v17  ;;  %3050 = vmatpush.msra.mxu1 %v4909_v57 }
 0x450   : > { %2428 = vmatmul.f32.gmra.mxu1 %v4861_v30  ;;  %v2315_v39 = vsub.f32 %v2257_v29, %v4861_v30  ;;  %2311 = vmatmul.f32.gmra.mxu0 %v2310_v32  ;;  %v2913_v29 = vand.u32 4294901760, %v2912_v12  ;;  %v2917_v32 = vand.u32 4294901760, %v2916_v24  ;;  %v2339_v38 = vsub.f32 %v2266_v51, %v4918_v27 }
 0x451   : > { %2976 = vmatpush.msra.mxu0 %v4847_v16  ;;  %3115 = vmatpush.msra.mxu2 %v2881_v46  ;;  %v4934_v46 = vand.u32 4294901760, %v2269_v45  ;;  %v2334_v25 = vand.u32 4294901760, %v2333_v50 }
 0x452   : > { %v4876_v40 = vpop.permute.xlu1 %2236  ;;  %2496 = vmatmul.f32.gmra.mxu2 %v2315_v39  ;;  %v2316_v41 = vand.u32 4294901760, %v2315_v39  ;;  %2914 = vmatpush.msrb.mxu3 %v2913_v29  ;;  %v2918_v53 = vsub.f32 %v2916_v24, %v2917_v32 }
 0x453   : > { %v2245_v58 = vmul.f32 %v4876_v40, %v4686_v42  ;;  %2979 = vmatpush.msra.mxu0 %v4874_v43  ;;  %3119 = vmatpush.msra.mxu2 %v2887_v10  ;;  %v2249_v7 = vmul.f32 %v4876_v40, %v4681_v0  ;;  %v2744_v10 = vmul.f32 %v4928_v37, %v4662_v63  ;;  %v4951_v63 = vpop.permute.xlu2 %2734 }
 0x454   : > { %2564 = vmatmul.f32.gmra.mxu3 %v2316_v41  ;;  %v2317_v49 = vsub.f32 %v2315_v39, %v2316_v41  ;;  %v2919_v39 = vand.u32 4294901760, %v2918_v53  ;;  %v2340_v41 = vand.u32 4294901760, %v2339_v38  ;;  %v2347_v17 = vsub.f32 %v2269_v45, %v4934_v46 }
 0x455   : > { %v2260_v4 = vsel %vm498_vm1, %v2245_v58, 0  ;;  %2982 = vmatpush.msra.mxu0 %v2910_v22  ;;  %3123 = vmatpush.msra.mxu2 %v2893_v11  ;;  %v2272_v11 = vsel %vm498_vm1, %v2249_v7, 0  ;;  %v2753_v16 = vsel %vm498_vm1, %v2744_v10, 0  ;;  %v2745_v40 = vmul.f32 %v4951_v63, %v4666_v26 }
 0x456   : > { %v4894_v13 = vand.u32 4294901760, %v2260_v4  ;;  %v2318_v15 = vand.u32 4294901760, %v2317_v49  ;;  %2920 = vmatpush.msrb.mxu3 %v2919_v39  ;;  %v2348_v43 = vand.u32 4294901760, %v2347_v17 }
 0x457   : > { %2985 = vmatpush.msra.mxu0 %v2916_v24  ;;  %3127 = vmatpush.msra.mxu2 %v2899_v21  ;;  %v2748_v24 = vmul.f32 %v4928_v37, %v4654_v1 }
 0x458   : > { %2432 = vmatmul.f32.gmra.mxu1 %v4894_v13  ;;  %v2323_v5 = vsub.f32 %v2260_v4, %v4894_v13  ;;  %2319 = vmatmul.f32.gmra.mxu0 %v2318_v15  ;;  %v2746_v4 = vmul.f32 %v4969_v44, %v4672_v31 }
 0x459   : > { %3182 = vmatpush.msra.mxu3 %v4770_v52  ;;  %3131 = vmatpush.msra.mxu2 %v2905_v59  ;;  %v2341_v52 = vsub.f32 %v2339_v38, %v2340_v41 }
 0x45a   : > { %2501 = vmatmul.f32.gmra.mxu2 %v2323_v5  ;;  %v2324_v56 = vand.u32 4294901760, %v2323_v5  ;;  %v2759_v47 = vsel %vm498_vm1, %v2746_v4, 0  ;;  %v4984_v34 = vpop.permute.xlu1 %2738 }
 0x45b   : > { %3184 = vmatpush.msra.mxu3 %v4785_v33  ;;  %3135 = vmatpush.msra.mxu2 %v2911_v6  ;;  %v4953_v33 = vand.u32 4294901760, %v2272_v11  ;;  %v2342_v21 = vand.u32 4294901760, %v2341_v52  ;;  %v4986_v22 = vand.u32 4294901760, %v2759_v47 }
 0x45c   : > { %2570 = vmatmul.f32.gmra.mxu3 %v2324_v56  ;;  %v2325_v48 = vsub.f32 %v2323_v5, %v2324_v56  ;;  %v2747_v56 = vmul.f32 %v4984_v34, %v4681_v0 }
 0x45d   : > { %3186 = vmatpush.msra.mxu3 %v4798_v3  ;;  %3139 = vmatpush.msra.mxu2 %v2917_v32  ;;  %v4956_v3 = vand.u32 4294901760, %v2753_v16  ;;  %v2355_v58 = vsub.f32 %v2272_v11, %v4953_v33 }
 0x45e   : > { %v2326_v20 = vand.u32 4294901760, %v2325_v48  ;;  %v2762_v6 = vsel %vm498_vm1, %v2747_v56, 0 }
 0x45f   : > { %3188 = vmatpush.msra.mxu3 %v4817_v54  ;;  %v2349_v54 = vsub.f32 %v2347_v17, %v2348_v43  ;;  %v4965_v59 = vsub.f32 %v2753_v16, %v4956_v3  ;;  %v2356_v49 = vand.u32 4294901760, %v2355_v58  ;;  %v5000_v51 = vand.u32 4294901760, %v2762_v6 }
 0x460   : > { %2436 = vmatmul.f32.gmra.mxu1 %v4897_v62  ;;  %2327 = vmatmul.f32.gmra.mxu0 %v2326_v20 }
 0x461   : > { %3190 = vmatpush.msra.mxu3 %v4834_v19  ;;  %v2756_v19 = vsel %vm498_vm1, %v2745_v40, 0  ;;  %v2350_v26 = vand.u32 4294901760, %v2349_v54  ;;  %v2357_v8 = vsub.f32 %v2355_v58, %v2356_v49  ;;  %v5008_v12 = vsub.f32 %v2762_v6, %v5000_v51 }
 0x462   : > { %2506 = vmatmul.f32.gmra.mxu2 %v2331_v60  ;;  %v4972_v2 = vand.u32 4294901760, %v2756_v19 }
 0x463   : > { %3192 = vmatpush.msra.mxu3 %v4867_v36  ;;  %v2802_v36 = vand.u32 4294901760, %v4965_v59  ;;  %v2358_v5 = vand.u32 4294901760, %v2357_v8  ;;  %v2826_v1 = vand.u32 4294901760, %v5008_v12 }
 0x464   : > { %2576 = vmatmul.f32.gmra.mxu3 %v2332_v28  ;;  %v2765_v28 = vsel %vm498_vm1, %v2748_v24, 0 }
 0x465   : > { %3194 = vmatpush.msra.mxu3 %v4892_v9  ;;  %v4978_v9 = vsub.f32 %v2756_v19, %v4972_v2  ;;  %v2803_v15 = vsub.f32 %v4965_v59, %v2802_v36  ;;  %v5015_v29 = vand.u32 4294901760, %v2765_v28  ;;  %v2827_v53 = vsub.f32 %v5008_v12, %v2826_v1 }
 0x467   : > { %3196 = vmatpush.msra.mxu3 %v4909_v57  ;;  %v2804_v31 = vand.u32 4294901760, %v2803_v15  ;;  %v2810_v18 = vand.u32 4294901760, %v4978_v9  ;;  %v4993_v57 = vsub.f32 %v2759_v47, %v4986_v22  ;;  %v5023_v35 = vsub.f32 %v2765_v28, %v5015_v29  ;;  %v223_v28 = vld [vmem:[%s5524_s1 + $0x188] sm:$0xff] }
 0x468   : > { %2440 = vmatmul.f32.gmra.mxu1 %v4918_v27  ;;  %2335 = vmatmul.f32.gmra.mxu0 %v2334_v25  ;;  %v2828_v39 = vand.u32 4294901760, %v2827_v53 }
 0x469   : > { %v2811_v60 = vsub.f32 %v4978_v9, %v2810_v18  ;;  %v2818_v0 = vand.u32 4294901760, %v4993_v57 }
 0x46a   : > { %2511 = vmatmul.f32.gmra.mxu2 %v2339_v38 }
 0x46b   : > { %v2812_v48 = vand.u32 4294901760, %v2811_v60  ;;  %v2819_v20 = vsub.f32 %v4993_v57, %v2818_v0 }
 0x46c   : > { %2582 = vmatmul.f32.gmra.mxu3 %v2340_v41 }
 0x46d   : > { %v2820_v32 = vand.u32 4294901760, %v2819_v20 }
 0x470   : > { %2444 = vmatmul.f32.gmra.mxu1 %v4934_v46  ;;  %2343 = vmatmul.f32.gmra.mxu0 %v2342_v21 }
 0x472   : > { %2516 = vmatmul.f32.gmra.mxu2 %v2347_v17 }
 0x474   : > { %2588 = vmatmul.f32.gmra.mxu3 %v2348_v43 }
 0x478   : > { %2448 = vmatmul.f32.gmra.mxu1 %v4953_v33  ;;  %2351 = vmatmul.f32.gmra.mxu0 %v2350_v26 }
 0x47a   : > { %2521 = vmatmul.f32.gmra.mxu2 %v2355_v58 }
 0x47c   : > { %2594 = vmatmul.f32.gmra.mxu3 %v2356_v49 }
 0x480   : > { %2696 = vmatmul.f32.vlgmr.msrb.gmra.mxu1 %v4810_v61  ;;  %2359 = vmatmul.f32.gmra.mxu0 %v2358_v5 }
 0x482   : > { %2805 = vmatmul.f32.vlgmr.msrb.gmra.mxu2 %v2804_v31 }
 0x484   : > { %2922 = vmatmul.f32.vlgmr.msrb.gmra.mxu3 %v4956_v3 }
 0x488   : > { %2700 = vmatmul.f32.gmra.mxu1 %v4837_v23  ;;  %2639 = vmatmul.f32.vlgmr.msrb.gmra.mxu0 %v4810_v61  ;;  %v2749_v61 = vmul.f32 %v4951_v63, %v4658_v55  ;;  %v2834_v55 = vand.u32 4294901760, %v5023_v35 }
 0x48a   : > { %2813 = vmatmul.f32.gmra.mxu2 %v2812_v48  ;;  %v2768_v50 = vsel %vm498_vm1, %v2749_v61, 0  ;;  %v2835_v25 = vsub.f32 %v5023_v35, %v2834_v55 }
 0x48b   : > { %v5030_v38 = vand.u32 4294901760, %v2768_v50 }
 0x48c   : > { %2926 = vmatmul.f32.gmra.mxu3 %v4972_v2  ;;  %v2836_v10 = vand.u32 4294901760, %v2835_v25 }
 0x48d   : > { %v5038_v45 = vsub.f32 %v2768_v50, %v5030_v38 }
 0x490   : > { %2704 = vmatmul.f32.gmra.mxu1 %v4861_v30  ;;  %2643 = vmatmul.f32.gmra.mxu0 %v4837_v23  ;;  %v2750_v23 = vmul.f32 %v4969_v44, %v4670_v14  ;;  %v2842_v14 = vand.u32 4294901760, %v5038_v45 }
 0x492   : > { %2821 = vmatmul.f32.gmra.mxu2 %v2820_v32  ;;  %v2771_v41 = vsel %vm498_vm1, %v2750_v23, 0  ;;  %v2843_v17 = vsub.f32 %v5038_v45, %v2842_v14 }
 0x493   : > { %v5045_v7 = vand.u32 4294901760, %v2771_v41 }
 0x494   : > { %2930 = vmatmul.f32.gmra.mxu3 %v4986_v22  ;;  %v2844_v21 = vand.u32 4294901760, %v2843_v17 }
 0x495   : > { %v5053_v52 = vsub.f32 %v2771_v41, %v5045_v7 }
 0x498   : > { %2708 = vmatmul.f32.gmra.mxu1 %v4894_v13  ;;  %2647 = vmatmul.f32.gmra.mxu0 %v4861_v30  ;;  %v2751_v30 = vmul.f32 %v4984_v34, %v4686_v42  ;;  %v2850_v42 = vand.u32 4294901760, %v5053_v52 }
 0x49a   : > { %2829 = vmatmul.f32.gmra.mxu2 %v2828_v39  ;;  %v2774_v11 = vsel %vm498_vm1, %v2751_v30, 0  ;;  %v2851_v43 = vsub.f32 %v5053_v52, %v2850_v42 }
 0x49b   : > { %v5060_v16 = vand.u32 4294901760, %v2774_v11 }
 0x49c   : > { %2934 = vmatmul.f32.gmra.mxu3 %v5000_v51  ;;  %v2852_v40 = vand.u32 4294901760, %v2851_v43 }
 0x4a0   : > { %2712 = vmatmul.f32.gmra.mxu1 %v4897_v62  ;;  %2651 = vmatmul.f32.gmra.mxu0 %v4894_v13  ;;  %v5066_v13 = vsub.f32 %v2774_v11, %v5060_v16 }
 0x4a2   : > { %2837 = vmatmul.f32.gmra.mxu2 %v2836_v10  ;;  %v2858_v54 = vand.u32 4294901760, %v5066_v13 }
 0x4a4   : > { %2938 = vmatmul.f32.gmra.mxu3 %v5015_v29 }
 0x4a8   : > { %2716 = vmatmul.f32.gmra.mxu1 %v4918_v27  ;;  %2655 = vmatmul.f32.gmra.mxu0 %v4897_v62  ;;  %v2859_v62 = vsub.f32 %v5066_v13, %v2858_v54 }
 0x4aa   : > { %2845 = vmatmul.f32.gmra.mxu2 %v2844_v21  ;;  %v2860_v58 = vand.u32 4294901760, %v2859_v62 }
 0x4ac   : > { %2942 = vmatmul.f32.gmra.mxu3 %v5030_v38 }
 0x4b0   : > { %2720 = vmatmul.f32.gmra.mxu1 %v4934_v46  ;;  %2659 = vmatmul.f32.gmra.mxu0 %v4918_v27 }
 0x4b2   : > { %2853 = vmatmul.f32.gmra.mxu2 %v2852_v40  ;;  %v220_v40 = vld [vmem:[%s5524_s1 + $0x170] sm:$0xff] }
 0x4b4   : > { %2946 = vmatmul.f32.gmra.mxu3 %v5045_v7 }
 0x4b8   : > { %2724 = vmatmul.f32.gmra.mxu1 %v4953_v33  ;;  %2663 = vmatmul.f32.gmra.mxu0 %v4934_v46 }
 0x4ba   : > { %2861 = vmatmul.f32.gmra.mxu2 %v2860_v58 }
 0x4bc   : > { %2950 = vmatmul.f32.gmra.mxu3 %v5060_v16 }
 0x4bd   : > { %v5082_v19 = vpop.f32.mrf.mxu1 }
 0x4c0   : > { %3054 = vmatmul.f32.vlgmr.msra.gmra.mxu1 %v2802_v36  ;;  %2667 = vmatmul.f32.gmra.mxu0 %v4953_v33 }
 0x4c2   : > { %3141 = vmatmul.f32.vlgmr.msra.gmra.mxu2 %v4956_v3 }
 0x4c4   : > { %3198 = vmatmul.f32.vlgmr.msra.gmra.mxu3 %v4956_v3 }
 0x4c5   : > { %v5089_v27 = vpop.f32.mrf.mxu0  ;;  %v5091_v26 = vpop.f32.mrf.mxu1 }
 0x4c6   : > { %v5093_v49 = vpop.f32.mrf.mxu2 }
 0x4c7   : > { %v5095_v46 = vpop.f32.mrf.mxu3 }
 0x4c8   : > { %3060 = vmatmul.f32.gmra.mxu1 %v2810_v18  ;;  %2988 = vmatmul.f32.vlgmr.msra.gmra.mxu0 %v4965_v59 }
 0x4ca   : > { %3145 = vmatmul.f32.gmra.mxu2 %v4972_v2 }
 0x4cc   : > { %3202 = vmatmul.f32.gmra.mxu3 %v4972_v2 }
 0x4cd   : > { %v5102_v33 = vpop.f32.mrf.mxu1  ;;  %v5104_v3 = vpop.f32.mrf.mxu0 }
 0x4ce   : > { %5532 = vst [vmem:[#allocation3_spill] sm:$0xff] %v5102_v33  ;;  %v5106_v36 = vpop.f32.mrf.mxu2 }
 0x4cf   : > { %v5108_v4 = vpop.f32.mrf.mxu3 }
 0x4d0   : > { %5533 = vst [vmem:[#allocation4_spill] sm:$0xff] %v5108_v4  ;;  %3066 = vmatmul.f32.gmra.mxu1 %v2818_v0  ;;  %2993 = vmatmul.f32.gmra.mxu0 %v4978_v9 }
 0x4d2   : > { %3149 = vmatmul.f32.gmra.mxu2 %v4986_v22 }
 0x4d4   : > { %3206 = vmatmul.f32.gmra.mxu3 %v4986_v22 }
 0x4d5   : > { %v5115_v59 = vpop.f32.mrf.mxu1  ;;  %v5117_v2 = vpop.f32.mrf.mxu0 }
 0x4d6   : > { %5534 = vst [vmem:[#allocation5_spill] sm:$0xff] %v5115_v59  ;;  %v5119_v8 = vpop.f32.mrf.mxu2 }
 0x4d7   : > { %5535 = vst [vmem:[#allocation6_spill] sm:$0xff] %v5117_v2  ;;  %v5121_v15 = vpop.f32.mrf.mxu3 }
 0x4d8   : > { %5536 = vst [vmem:[#allocation7_spill] sm:$0xff] %v5119_v8  ;;  %3072 = vmatmul.f32.gmra.mxu1 %v2826_v1  ;;  %2998 = vmatmul.f32.gmra.mxu0 %v4993_v57 }
 0x4d9   : > { %5537 = vst [vmem:[#allocation8_spill] sm:$0xff] %v5121_v15 }
 0x4da   : > { %3153 = vmatmul.f32.gmra.mxu2 %v5000_v51 }
 0x4dc   : > { %3210 = vmatmul.f32.gmra.mxu3 %v5000_v51 }
 0x4dd   : > { %v5128_v9 = vpop.f32.mrf.mxu1  ;;  %v5130_v47 = vpop.f32.mrf.mxu0 }
 0x4de   : > { %5538 = vst [vmem:[#allocation9_spill] sm:$0xff] %v5130_v47  ;;  %v5132_v5 = vpop.f32.mrf.mxu2 }
 0x4df   : > { %5539 = vst [vmem:[#allocation10_spill] sm:$0xff] %v5132_v5  ;;  %v5134_v22 = vpop.f32.mrf.mxu3 }
 0x4e0   : > { %5540 = vst [vmem:[#allocation11_spill] sm:$0xff] %v5134_v22  ;;  %3078 = vmatmul.f32.gmra.mxu1 %v2834_v55  ;;  %3003 = vmatmul.f32.gmra.mxu0 %v5008_v12 }
 0x4e2   : > { %3157 = vmatmul.f32.gmra.mxu2 %v5015_v29 }
 0x4e4   : > { %3214 = vmatmul.f32.gmra.mxu3 %v5015_v29  ;;  %v5182_v29 = vand.u32 4294901760, %v223_v28 }
 0x4e5   : > { %v5141_v31 = vpop.f32.mrf.mxu1  ;;  %v5143_v18 = vpop.f32.mrf.mxu0 }
 0x4e6   : > { %v5145_v56 = vpop.f32.mrf.mxu2  ;;  %3271 = vmatpush.msrb.mxu0 %v5182_v29  ;;  %v5187_v32 = vsub.f32 %v223_v28, %v5182_v29  ;;  %3522 = vmatpush.msrb.mxu3 %v5182_v29 }
 0x4e7   : > { %v5147_v57 = vpop.f32.mrf.mxu3 }
 0x4e8   : > { %3084 = vmatmul.f32.gmra.mxu1 %v2842_v14  ;;  %3008 = vmatmul.f32.gmra.mxu0 %v5023_v35  ;;  %v5528_v50 = vand.u32 4294901760, %v5187_v32  ;;  %v221_v14 = vld [vmem:[%s5524_s1 + $0x178] sm:$0xff]  ;;  %v5547_v2 = vand.u32 4294901760, %v5187_v32 }
 0x4e9   : > { %3450 = vmatpush.msrb.mxu2 %v5187_v32  ;;  %v5225_v30 = vand.u32 4294901760, %v221_v14 }
 0x4ea   : > { %3161 = vmatmul.f32.gmra.mxu2 %v5030_v38  ;;  %v3362_v55 = vsub.f32 %v5187_v32, %v5528_v50  ;;  %v2438_v50 = vadd.f32 %v5128_v9, %v5143_v18 }
 0x4eb   : > { %v5243_v43 = vsub.f32 %v221_v14, %v5225_v30 }
 0x4ec   : > { %3218 = vmatmul.f32.gmra.mxu3 %v5030_v38  ;;  %v222_v38 = vld [vmem:[%s5524_s1 + $0x180] sm:$0xff]  ;;  %v2508_v9 = vadd.f32 %v5145_v56, %v2438_v50 }
 0x4ed   : > { %v5154_v60 = vpop.f32.mrf.mxu1  ;;  %v5156_v6 = vpop.f32.mrf.mxu0  ;;  %v5204_v39 = vand.u32 4294901760, %v222_v38  ;;  %v5529_v58 = vand.u32 4294901760, %v5243_v43 }
 0x4ee   : > { %v5158_v51 = vpop.f32.mrf.mxu2  ;;  %v2442_v5 = vadd.f32 %v5141_v31, %v5156_v6 }
 0x4ef   : > { %v5160_v48 = vpop.f32.mrf.mxu3  ;;  %3273 = vmatpush.msrb.mxu0 %v5204_v39  ;;  %3524 = vmatpush.msrb.mxu3 %v5204_v39  ;;  %v5220_v10 = vsub.f32 %v222_v38, %v5204_v39 }
 0x4f0   : > { %3090 = vmatmul.f32.gmra.mxu1 %v2850_v42  ;;  %3013 = vmatmul.f32.gmra.mxu0 %v5038_v45  ;;  %v3363_v45 = vand.u32 4294901760, %v3362_v55  ;;  %v2513_v6 = vadd.f32 %v5158_v51, %v2442_v5 }
 0x4f1   : > { %v5527_v17 = vand.u32 4294901760, %v5220_v10  ;;  %3453 = vmatpush.msrb.mxu2 %v5220_v10  ;;  %3275 = vmatpush.msrb.mxu0 %v5225_v30  ;;  %v5548_v4 = vand.u32 4294901760, %v5220_v10 }
 0x4f2   : > { %3165 = vmatmul.f32.gmra.mxu2 %v5045_v7  ;;  %3364 = vmatpush.msrb.mxu1 %v3363_v45  ;;  %v3374_v45 = vsub.f32 %v5243_v43, %v5529_v58 }
 0x4f3   : > { %3526 = vmatpush.msrb.mxu3 %v5225_v30  ;;  %v3368_v42 = vsub.f32 %v5220_v10, %v5527_v17  ;;  %3456 = vmatpush.msrb.mxu2 %v5243_v43 }
 0x4f4   : > { %3222 = vmatmul.f32.gmra.mxu3 %v5045_v7  ;;  %v3375_v14 = vand.u32 4294901760, %v3374_v45 }
 0x4f5   : > { %v5167_v0 = vpop.f32.mrf.mxu1  ;;  %v5169_v24 = vpop.f32.mrf.mxu0 }
 0x4f6   : > { %v5171_v12 = vpop.f32.mrf.mxu2 }
 0x4f7   : > { %v5173_v20 = vpop.f32.mrf.mxu3 }
 0x4f8   : > { %3096 = vmatmul.f32.gmra.mxu1 %v2858_v54  ;;  %3018 = vmatmul.f32.gmra.mxu0 %v5053_v52  ;;  %v5248_v54 = vand.u32 4294901760, %v220_v40 }
 0x4fa   : > { %3169 = vmatmul.f32.gmra.mxu2 %v5060_v16  ;;  %3277 = vmatpush.msrb.mxu0 %v5248_v54 }
 0x4fb   : > { %3528 = vmatpush.msrb.mxu3 %v5248_v54 }
 0x4fc   : > { %3226 = vmatmul.f32.gmra.mxu3 %v5060_v16 }
 0x4fd   : > { %v5189_v1 = vpop.f32.mrf.mxu1  ;;  %v5192_v61 = vpop.f32.mrf.mxu0 }
 0x4fe   : > { %v5194_v35 = vpop.f32.mrf.mxu2 }
 0x4ff   : > { %v5197_v53 = vpop.f32.mrf.mxu3 }
 0x500   : > { %3023 = vmatmul.f32.gmra.mxu0 %v5066_v13  ;;  %v3369_v13 = vand.u32 4294901760, %v3368_v42  ;;  %v5266_v42 = vsub.f32 %v220_v40, %v5248_v54 }
 0x502   : > { %3370 = vmatpush.msrb.mxu1 %v3369_v13  ;;  %v219_v13 = vld [vmem:[%s5524_s1 + $0x168] sm:$0xff]  ;;  %v5530_v22 = vand.u32 4294901760, %v5266_v42  ;;  %3459 = vmatpush.msrb.mxu2 %v5266_v42 }
 0x503   : > { %v5271_v17 = vand.u32 4294901760, %v219_v13 }
 0x504   : > { %3376 = vmatpush.msrb.mxu1 %v3375_v14  ;;  %v3380_v58 = vsub.f32 %v5266_v42, %v5530_v22  ;;  %v2578_v22 = vadd.f32 %v5147_v57, %v2508_v9  ;;  %v217_v57 = vld [vmem:[%s5524_s1 + $0x158] sm:$0xff] }
 0x505   : > { %v5211_v23 = vpop.f32.mrf.mxu1  ;;  %v5213_v25 = vpop.f32.mrf.mxu0  ;;  %3279 = vmatpush.msrb.mxu0 %v5271_v17  ;;  %3530 = vmatpush.msrb.mxu3 %v5271_v17 }
 0x506   : > { %5541 = vst [vmem:[#allocation12_spill] sm:$0xff] %v5211_v23  ;;  %v5215_v41 = vpop.f32.mrf.mxu2  ;;  %v3381_v18 = vand.u32 4294901760, %v3380_v58  ;;  %v5315_v23 = vand.u32 4294901760, %v217_v57 }
 0x507   : > { %v5217_v7 = vpop.f32.mrf.mxu3 }
 0x508   : > { %3382 = vmatpush.msrb.mxu1 %v3381_v18  ;;  %v3396_v51 = vsub.f32 %v217_v57, %v5315_v23 }
 0x50d   : > { %v5227_v52 = vpop.f32.mrf.mxu1  ;;  %v5231_v11 = vpop.f32.mrf.mxu0 }
 0x50e   : > { %5542 = vst [vmem:[#allocation13_spill] sm:$0xff] %v5227_v52  ;;  %v5233_v16 = vpop.f32.mrf.mxu2  ;;  %v5291_v52 = vsub.f32 %v219_v13, %v5271_v17 }
 0x50f   : > { %5543 = vst [vmem:[#allocation14_spill] sm:$0xff] %v5231_v11  ;;  %v5237_v21 = vpop.f32.mrf.mxu3 }
 0x510   : > { %v3385_v56 = vand.u32 4294901760, %v5291_v52  ;;  %3462 = vmatpush.msrb.mxu2 %v5291_v52 }
 0x512   : > { %v3386_v31 = vsub.f32 %v5291_v52, %v3385_v56 }
 0x514   : > { %v3387_v47 = vand.u32 4294901760, %v3386_v31  ;;  %v3397_v31 = vand.u32 4294901760, %v3396_v51 }
 0x515   : > { %v5250_v62 = vpop.f32.mrf.mxu1  ;;  %v5254_v28 = vpop.f32.mrf.mxu0 }
 0x516   : > { %5544 = vst [vmem:[#allocation15_spill] sm:$0xff] %v5250_v62  ;;  %v5256_v38 = vpop.f32.mrf.mxu2  ;;  %3388 = vmatpush.msrb.mxu1 %v3387_v47 }
 0x517   : > { %5545 = vst [vmem:[#allocation16_spill] sm:$0xff] %v5254_v28  ;;  %v5260_v55 = vpop.f32.mrf.mxu3 }
 0x51d   : > { %v2713_v62 = vpop.f32.mrf.mxu1  ;;  %v5277_v45 = vpop.f32.mrf.mxu0 }
 0x51e   : > { %5546 = vst [vmem:[#allocation17_spill] sm:$0xff] %v5277_v45  ;;  %v5279_v14 = vpop.f32.mrf.mxu2  ;;  %v218_v45 = vld [vmem:[%s5524_s1 + $0x160] sm:$0xff] }
 0x51f   : > { %v5283_v40 = vpop.f32.mrf.mxu3  ;;  %v5298_v28 = vand.u32 4294901760, %v218_v45 }
 0x521   : > { %3281 = vmatpush.msrb.mxu0 %v5298_v28  ;;  %3532 = vmatpush.msrb.mxu3 %v5298_v28  ;;  %v3390_v15 = vsub.f32 %v218_v45, %v5298_v28  ;;  %v2446_v45 = vadd.f32 %v5154_v60, %v5169_v24 }
 0x523   : > { %v3391_v5 = vand.u32 4294901760, %v3390_v15  ;;  %3283 = vmatpush.msrb.mxu0 %v5315_v23  ;;  %3465 = vmatpush.msrb.mxu2 %v3390_v15 }
 0x524   : > { %3534 = vmatpush.msrb.mxu3 %v5315_v23 }
 0x525   : > { %v2717_v59 = vpop.f32.mrf.mxu1  ;;  %v2656_v50 = vpop.f32.mrf.mxu0  ;;  %3468 = vmatpush.msrb.mxu2 %v3396_v51 }
 0x526   : > { %v5303_v58 = vpop.f32.mrf.mxu2  ;;  %v2657_v13 = vadd.f32 %v2656_v50, %v2578_v22  ;;  %v216_v22 = vld [vmem:[%s5524_s1 + $0x150] sm:$0xff] }
 0x527   : > { %v5307_v18 = vpop.f32.mrf.mxu3  ;;  %v3284_v52 = vand.u32 4294901760, %v216_v22 }
 0x528   : > { %v2714_v9 = vadd.f32 %v2713_v62, %v2657_v13  ;;  %v2584_v62 = vadd.f32 %v5160_v48, %v2513_v6  ;;  %v3392_v13 = vsub.f32 %v3390_v15, %v3391_v5  ;;  %v3398_v6 = vsub.f32 %v3396_v51, %v3397_v31 }
 0x529   : > { %v3402_v8 = vsub.f32 %v216_v22, %v3284_v52  ;;  %3285 = vmatpush.msrb.mxu0 %v3284_v52  ;;  %3536 = vmatpush.msrb.mxu3 %v3284_v52  ;;  %v2518_v15 = vadd.f32 %v5171_v12, %v2446_v45  ;;  %v5549_v51 = vand.u32 4294901760, %v5243_v43 }
 0x52a   : > { %3878 = vst.msk [vmem:[%s5320_s11 + $0x20] sm:$0xff] %vm241_vm0, %v2714_v9  ;;  %v3393_v48 = vand.u32 4294901760, %v3392_v13  ;;  %v3399_v24 = vand.u32 4294901760, %v3398_v6 }
 0x52b   : > { %v3403_v33 = vand.u32 4294901760, %v3402_v8  ;;  %3597 = vmatpush.msra.mxu0 %v5547_v2  ;;  %3471 = vmatpush.msrb.mxu2 %v3402_v8  ;;  %v2590_v32 = vadd.f32 %v5173_v20, %v2518_v15  ;;  %v2450_v2 = vadd.f32 %v5167_v0, %v5192_v61 }
 0x52c   : > { %3394 = vmatpush.msrb.mxu1 %v3393_v48 }
 0x52d   : > { %v2721_v50 = vpop.f32.mrf.mxu1  ;;  %v2660_v47 = vpop.f32.mrf.mxu0  ;;  %v3404_v22 = vsub.f32 %v3402_v8, %v3403_v33  ;;  %3601 = vmatpush.msra.mxu0 %v5548_v4  ;;  %v5550_v8 = vand.u32 4294901760, %v5266_v42  ;;  %v2523_v20 = vadd.f32 %v5194_v35, %v2450_v2 }
 0x52e   : > { %v5330_v9 = vpop.f32.mrf.mxu2  ;;  %v2661_v57 = vadd.f32 %v2660_v47, %v2584_v62  ;;  %3400 = vmatpush.msrb.mxu1 %v3399_v24 }
 0x52f   : > { %v5332_v11 = vpop.f32.mrf.mxu3  ;;  %v3405_v62 = vand.u32 4294901760, %v3404_v22  ;;  %3605 = vmatpush.msra.mxu0 %v5549_v51  ;;  %v2596_v0 = vadd.f32 %v5197_v53, %v2523_v20  ;;  %v2924_v53 = vadd.f32 %v5217_v7, %v5215_v41 }
 0x530   : > { %v2718_v60 = vadd.f32 %v2717_v59, %v2661_v57 }
 0x531   : > { %3406 = vmatpush.msrb.mxu1 %v3405_v62  ;;  %3609 = vmatpush.msra.mxu0 %v5550_v8 }
 0x532   : > { %3879 = vst.msk [vmem:[%s5320_s11 + $0x28] sm:$0xff] %vm241_vm0, %v2718_v60 }
 0x533   : > { %3668 = vmatpush.msra.mxu1 %v5182_v29  ;;  %3613 = vmatpush.msra.mxu0 %v3385_v56 }
 0x535   : > { %v2725_v59 = vpop.f32.mrf.mxu1  ;;  %v2664_v12 = vpop.f32.mrf.mxu0  ;;  %3670 = vmatpush.msra.mxu1 %v5204_v39  ;;  %3617 = vmatpush.msra.mxu0 %v3391_v5 }
 0x536   : > { %v5348_v4 = vpop.f32.mrf.mxu2  ;;  %v2665_v10 = vadd.f32 %v2664_v12, %v2590_v32 }
 0x537   : > { %v5351_v45 = vpop.f32.mrf.mxu3  ;;  %3672 = vmatpush.msra.mxu1 %v5225_v30  ;;  %3621 = vmatpush.msra.mxu0 %v3397_v31  ;;  %v2928_v31 = vadd.f32 %v5237_v21, %v5233_v16  ;;  %v2932_v16 = vadd.f32 %v5260_v55, %v5256_v38  ;;  %v2936_v55 = vadd.f32 %v5283_v40, %v5279_v14 }
 0x538   : > { %v2722_v43 = vadd.f32 %v2721_v50, %v2665_v10  ;;  %v2940_v40 = vadd.f32 %v5307_v18, %v5303_v58  ;;  %v2944_v18 = vadd.f32 %v5332_v11, %v5330_v9  ;;  %v2948_v9 = vadd.f32 %v5351_v45, %v5348_v4 }
 0x539   : > { %3674 = vmatpush.msra.mxu1 %v5248_v54  ;;  %3625 = vmatpush.msra.mxu0 %v3403_v33 }
 0x53a   : > { %3880 = vst.msk [vmem:[%s5320_s11 + $0x30] sm:$0xff] %vm241_vm0, %v2722_v43 }
 0x53b   : > { %3676 = vmatpush.msra.mxu1 %v5271_v17 }
 0x53d   : > { %v3055_v29 = vpop.f32.mrf.mxu1  ;;  %v2668_v61 = vpop.f32.mrf.mxu0  ;;  %3678 = vmatpush.msra.mxu1 %v5298_v28 }
 0x53e   : > { %v5360_v42 = vpop.f32.mrf.mxu2  ;;  %v2669_v35 = vadd.f32 %v2668_v61, %v2596_v0 }
 0x53f   : > { %v5363_v39 = vpop.f32.mrf.mxu3  ;;  %3680 = vmatpush.msra.mxu1 %v5315_v23 }
 0x540   : > { %v2726_v30 = vadd.f32 %v2725_v59, %v2669_v35  ;;  %v2952_v45 = vadd.f32 %v5363_v39, %v5360_v42 }
 0x541   : > { %3682 = vmatpush.msra.mxu1 %v3284_v52 }
 0x542   : > { %3881 = vst.msk [vmem:[%s5320_s11 + $0x38] sm:$0xff] %vm241_vm0, %v2726_v30 }
 0x545   : > { %v3061_v33 = vpop.f32.mrf.mxu1  ;;  %v2989_v54 = vpop.f32.mrf.mxu0 }
 0x546   : > { %v3142_v56 = vpop.f32.mrf.mxu2  ;;  %v2990_v5 = vadd.f32 %v2989_v54, %v2924_v53 }
 0x547   : > { %v3199_v50 = vpop.f32.mrf.mxu3 }
 0x548   : > { %v3056_v17 = vadd.f32 %v3055_v29, %v2990_v5 }
 0x54a   : > { %v3143_v13 = vadd.f32 %v3142_v56, %v3056_v17 }
 0x54c   : > { %v3200_v28 = vadd.f32 %v3199_v50, %v3143_v13 }
 0x54d   : > { %v3067_v47 = vpop.f32.mrf.mxu1  ;;  %v2994_v57 = vpop.f32.mrf.mxu0 }
 0x54e   : > { %v3146_v23 = vpop.f32.mrf.mxu2  ;;  %v3230_v48 = vmul.f32 %v3200_v28, %v4928_v37  ;;  %v2995_v52 = vadd.f32 %v2994_v57, %v2928_v31 }
 0x54f   : > { %v3203_v6 = vpop.f32.mrf.mxu3 }
 0x550   : > { %v3239_v41 = vsel %vm498_vm1, %v3230_v48, 0  ;;  %v3062_v7 = vadd.f32 %v3061_v33, %v2995_v52 }
 0x551   : > { %v5375_v15 = vand.u32 4294901760, %v3239_v41 }
 0x552   : > { %v3147_v60 = vadd.f32 %v3146_v23, %v3062_v7 }
 0x553   : > { %v3287_v24 = vsub.f32 %v3239_v41, %v5375_v15  ;;  %3408 = vmatmul.f32.vlgmr.msrb.gmra.mxu1 %v5375_v15 }
 0x554   : > { %v3204_v21 = vadd.f32 %v3203_v6, %v3147_v60 }
 0x555   : > { %v3288_v22 = vand.u32 4294901760, %v3287_v24  ;;  %v2999_v62 = vpop.f32.mrf.mxu0  ;;  %3474 = vmatmul.f32.vlgmr.msrb.gmra.mxu2 %v3287_v24  ;;  %v3073_v12 = vpop.f32.mrf.mxu1 }
 0x556   : > { %v3150_v51 = vpop.f32.mrf.mxu2  ;;  %v3231_v32 = vmul.f32 %v3204_v21, %v4951_v63  ;;  %v3000_v2 = vadd.f32 %v2999_v62, %v2932_v16 }
 0x557   : > { %v3207_v59 = vpop.f32.mrf.mxu3  ;;  %v3289_v8 = vsub.f32 %v3287_v24, %v3288_v22  ;;  %3540 = vmatmul.f32.vlgmr.msrb.gmra.mxu3 %v3288_v22 }
 0x558   : > { %v3242_v10 = vsel %vm498_vm1, %v3231_v32, 0  ;;  %v3068_v20 = vadd.f32 %v3067_v47, %v3000_v2 }
 0x559   : > { %v3290_v43 = vand.u32 4294901760, %v3289_v8  ;;  %v5383_v0 = vand.u32 4294901760, %v3242_v10 }
 0x55a   : > { %v3151_v29 = vadd.f32 %v3150_v51, %v3068_v20 }
 0x55b   : > { %3291 = vmatmul.f32.vlgmr.msrb.gmra.mxu0 %v3290_v43  ;;  %3412 = vmatmul.f32.gmra.mxu1 %v5383_v0  ;;  %v3295_v38 = vsub.f32 %v3242_v10, %v5383_v0 }
 0x55c   : > { %v3208_v61 = vadd.f32 %v3207_v59, %v3151_v29 }
 0x55d   : > { %v3004_v35 = vpop.f32.mrf.mxu0  ;;  %3479 = vmatmul.f32.gmra.mxu2 %v3295_v38  ;;  %v3296_v53 = vand.u32 4294901760, %v3295_v38  ;;  %v3079_v31 = vpop.f32.mrf.mxu1 }
 0x55e   : > { %v3154_v30 = vpop.f32.mrf.mxu2  ;;  %v3232_v33 = vmul.f32 %v3208_v61, %v4969_v44  ;;  %v3005_v54 = vadd.f32 %v3004_v35, %v2936_v55 }
 0x55f   : > { %v3211_v56 = vpop.f32.mrf.mxu3  ;;  %3546 = vmatmul.f32.gmra.mxu3 %v3296_v53  ;;  %v3297_v5 = vsub.f32 %v3295_v38, %v3296_v53 }
 0x560   : > { %v3245_v50 = vsel %vm498_vm1, %v3232_v33, 0  ;;  %v3074_v17 = vadd.f32 %v3073_v12, %v3005_v54 }
 0x561   : > { %v5391_v13 = vand.u32 4294901760, %v3245_v50  ;;  %v3298_v28 = vand.u32 4294901760, %v3297_v5 }
 0x562   : > { %v3155_v47 = vadd.f32 %v3154_v30, %v3074_v17 }
 0x563   : > { %3299 = vmatmul.f32.gmra.mxu0 %v3298_v28  ;;  %3416 = vmatmul.f32.gmra.mxu1 %v5391_v13  ;;  %v3303_v14 = vsub.f32 %v3245_v50, %v5391_v13 }
 0x564   : > { %v3212_v57 = vadd.f32 %v3211_v56, %v3155_v47 }
 0x565   : > { %v3009_v23 = vpop.f32.mrf.mxu0  ;;  %3484 = vmatmul.f32.gmra.mxu2 %v3303_v14  ;;  %v3304_v52 = vand.u32 4294901760, %v3303_v14  ;;  %v3085_v51 = vpop.f32.mrf.mxu1 }
 0x566   : > { %v3158_v48 = vpop.f32.mrf.mxu2  ;;  %v3233_v6 = vmul.f32 %v3212_v57, %v4984_v34  ;;  %v3010_v41 = vadd.f32 %v3009_v23, %v2940_v40 }
 0x567   : > { %v3215_v7 = vpop.f32.mrf.mxu3  ;;  %3552 = vmatmul.f32.gmra.mxu3 %v3304_v52  ;;  %v3305_v60 = vsub.f32 %v3303_v14, %v3304_v52 }
 0x568   : > { %v3248_v24 = vsel %vm498_vm1, %v3233_v6, 0  ;;  %v3080_v16 = vadd.f32 %v3079_v31, %v3010_v41 }
 0x569   : > { %v5399_v21 = vand.u32 4294901760, %v3248_v24  ;;  %v3306_v22 = vand.u32 4294901760, %v3305_v60 }
 0x56a   : > { %v3159_v62 = vadd.f32 %v3158_v48, %v3080_v16 }
 0x56b   : > { %3307 = vmatmul.f32.gmra.mxu0 %v3306_v22  ;;  %3420 = vmatmul.f32.gmra.mxu1 %v5399_v21  ;;  %v3311_v58 = vsub.f32 %v3248_v24, %v5399_v21 }
 0x56c   : > { %v3216_v32 = vadd.f32 %v3215_v7, %v3159_v62 }
 0x56d   : > { %v3014_v2 = vpop.f32.mrf.mxu0  ;;  %3489 = vmatmul.f32.gmra.mxu2 %v3311_v58  ;;  %v3312_v8 = vand.u32 4294901760, %v3311_v58  ;;  %v3091_v30 = vpop.f32.mrf.mxu1 }
 0x56e   : > { %v3162_v59 = vpop.f32.mrf.mxu2  ;;  %v3234_v12 = vmul.f32 %v3216_v32, %v4928_v37  ;;  %v3015_v10 = vadd.f32 %v3014_v2, %v2944_v18 }
 0x56f   : > { %v3219_v20 = vpop.f32.mrf.mxu3  ;;  %3558 = vmatmul.f32.gmra.mxu3 %v3312_v8  ;;  %v3313_v43 = vsub.f32 %v3311_v58, %v3312_v8 }
 0x570   : > { %v3251_v29 = vsel %vm498_vm1, %v3234_v12, 0  ;;  %v3086_v38 = vadd.f32 %v3085_v51, %v3015_v10 }
 0x571   : > { %v5407_v55 = vand.u32 4294901760, %v3251_v29  ;;  %v3314_v61 = vand.u32 4294901760, %v3313_v43 }
 0x572   : > { %v3163_v35 = vadd.f32 %v3162_v59, %v3086_v38 }
 0x573   : > { %3315 = vmatmul.f32.gmra.mxu0 %v3314_v61  ;;  %3424 = vmatmul.f32.gmra.mxu1 %v5407_v55  ;;  %v3319_v11 = vsub.f32 %v3251_v29, %v5407_v55 }
 0x574   : > { %v3220_v37 = vadd.f32 %v3219_v20, %v3163_v35 }
 0x575   : > { %v3019_v53 = vpop.f32.mrf.mxu0  ;;  %3494 = vmatmul.f32.gmra.mxu2 %v3319_v11  ;;  %v3320_v33 = vand.u32 4294901760, %v3319_v11  ;;  %v3097_v6 = vpop.f32.mrf.mxu1 }
 0x576   : > { %v3235_v54 = vmul.f32 %v3220_v37, %v4951_v63  ;;  %v3020_v56 = vadd.f32 %v3019_v53, %v2948_v9  ;;  %v3166_v5 = vpop.f32.mrf.mxu2 }
 0x577   : > { %3564 = vmatmul.f32.gmra.mxu3 %v3320_v33  ;;  %v3321_v50 = vsub.f32 %v3319_v11, %v3320_v33  ;;  %v3223_v47 = vpop.f32.mrf.mxu3 }
 0x578   : > { %v3254_v17 = vsel %vm498_vm1, %v3235_v54, 0  ;;  %v3092_v31 = vadd.f32 %v3091_v30, %v3020_v56  ;;  %v2422_v54 = vadd.f32 %v5082_v19, %v5089_v27 }
 0x579   : > { %v3326_v28 = vand.u32 4294901760, %v3254_v17  ;;  %v3322_v14 = vand.u32 4294901760, %v3321_v50 }
 0x57a   : > { %v3167_v40 = vadd.f32 %v3166_v5, %v3092_v31  ;;  %v2488_v31 = vadd.f32 %v5093_v49, %v2422_v54 }
 0x57b   : > { %3323 = vmatmul.f32.gmra.mxu0 %v3322_v14  ;;  %3428 = vmatmul.f32.gmra.mxu1 %v3326_v28  ;;  %v3327_v4 = vsub.f32 %v3254_v17, %v3326_v28 }
 0x57c   : > { %v3224_v57 = vadd.f32 %v3223_v47, %v3167_v40  ;;  %v2554_v14 = vadd.f32 %v5095_v46, %v2488_v31  ;;  %v2426_v40 = vadd.f32 %v5091_v26, %v5104_v3  ;;  %v5551_v46 = vld [vmem:[#allocation4_spill] sm:$0xff]  ;;  %v5553_v26 = vld [vmem:[#allocation3_spill] sm:$0xff] }
 0x57d   : > { %v3024_v23 = vpop.f32.mrf.mxu0  ;;  %3499 = vmatmul.f32.gmra.mxu2 %v3327_v4  ;;  %v3328_v63 = vand.u32 4294901760, %v3327_v4 }
 0x57e   : > { %v3236_v48 = vmul.f32 %v3224_v57, %v4969_v44  ;;  %v3025_v52 = vadd.f32 %v3024_v23, %v2952_v45  ;;  %v3170_v16 = vpop.f32.mrf.mxu2 }
 0x57f   : > { %3570 = vmatmul.f32.gmra.mxu3 %v3328_v63  ;;  %v3329_v41 = vsub.f32 %v3327_v4, %v3328_v63  ;;  %v3227_v51 = vpop.f32.mrf.mxu3  ;;  %v2641_v4 = vadd.f32 %v5213_v25, %v2554_v14  ;;  %v2493_v63 = vadd.f32 %v5106_v36, %v2426_v40  ;;  %v5563_v40 = vld [vmem:[#allocation11_spill] sm:$0xff] }
 0x580   : > { %v3257_v7 = vsel %vm498_vm1, %v3236_v48, 0  ;;  %v3098_v60 = vadd.f32 %v3097_v6, %v3025_v52 }
 0x581   : > { %v3334_v24 = vand.u32 4294901760, %v3257_v7  ;;  %v3330_v22 = vand.u32 4294901760, %v3329_v41  ;;  %v2698_v49 = vadd.f32 %v5189_v1, %v2641_v4 }
 0x582   : > { %v3171_v62 = vadd.f32 %v3170_v16, %v3098_v60  ;;  %v5552_v60 = vld [vmem:[#allocation6_spill] sm:$0xff] }
 0x583   : > { %3331 = vmatmul.f32.gmra.mxu0 %v3330_v22  ;;  %3432 = vmatmul.f32.gmra.mxu1 %v3334_v24  ;;  %v3335_v42 = vsub.f32 %v3257_v7, %v3334_v24  ;;  %v2560_v7 = vadd.f32 %v5551_v46, %v2493_v63  ;;  %v2430_v3 = vadd.f32 %v5553_v26, %v5552_v60 }
 0x584   : > { %v3228_v39 = vadd.f32 %v3227_v51, %v3171_v62 }
 0x585   : > { %3504 = vmatmul.f32.gmra.mxu2 %v3335_v42  ;;  %v3336_v58 = vand.u32 4294901760, %v3335_v42 }
 0x586   : > { %v3237_v44 = vmul.f32 %v3228_v39, %v4984_v34 }
 0x587   : > { %3576 = vmatmul.f32.gmra.mxu3 %v3336_v58  ;;  %v3337_v18 = vsub.f32 %v3335_v42, %v3336_v58  ;;  %v5555_v42 = vld [vmem:[#allocation7_spill] sm:$0xff] }
 0x588   : > { %v3260_v32 = vsel %vm498_vm1, %v3237_v44, 0  ;;  %v2498_v1 = vadd.f32 %v5555_v42, %v2430_v3  ;;  %v5556_v44 = vld [vmem:[#allocation12_spill] sm:$0xff] }
 0x589   : > { %v3342_v2 = vand.u32 4294901760, %v3260_v32  ;;  %v3338_v59 = vand.u32 4294901760, %v3337_v18 }
 0x58b   : > { %3339 = vmatmul.f32.gmra.mxu0 %v3338_v59  ;;  %3436 = vmatmul.f32.gmra.mxu1 %v3342_v2  ;;  %v3343_v8 = vsub.f32 %v3260_v32, %v3342_v2  ;;  %v5557_v59 = vld [vmem:[#allocation8_spill] sm:$0xff] }
 0x58d   : > { %3509 = vmatmul.f32.gmra.mxu2 %v3343_v8  ;;  %v3344_v12 = vand.u32 4294901760, %v3343_v8 }
 0x58f   : > { %3582 = vmatmul.f32.gmra.mxu3 %v3344_v12  ;;  %v3345_v10 = vsub.f32 %v3343_v8, %v3344_v12  ;;  %v2566_v8 = vadd.f32 %v5557_v59, %v2498_v1  ;;  %v5558_v12 = vld [vmem:[#allocation9_spill] sm:$0xff] }
 0x591   : > { %v3346_v20 = vand.u32 4294901760, %v3345_v10  ;;  %v5559_v10 = vld [vmem:[#allocation5_spill] sm:$0xff] }
 0x593   : > { %3347 = vmatmul.f32.gmra.mxu0 %v3346_v20  ;;  %3684 = vmatmul.f32.vlgmr.msra.gmra.mxu1 %v5375_v15  ;;  %v2434_v20 = vadd.f32 %v5559_v10, %v5558_v12 }
 0x59b   : > { %3627 = vmatmul.f32.vlgmr.msra.gmra.mxu0 %v5375_v15  ;;  %3688 = vmatmul.f32.gmra.mxu1 %v5383_v0 }
 0x5a3   : > { %3631 = vmatmul.f32.gmra.mxu0 %v5383_v0  ;;  %3692 = vmatmul.f32.gmra.mxu1 %v5391_v13 }
 0x5ab   : > { %3635 = vmatmul.f32.gmra.mxu0 %v5391_v13  ;;  %3696 = vmatmul.f32.gmra.mxu1 %v5399_v21 }
 0x5b3   : > { %3639 = vmatmul.f32.gmra.mxu0 %v5399_v21  ;;  %3700 = vmatmul.f32.gmra.mxu1 %v5407_v55 }
 0x5bb   : > { %3643 = vmatmul.f32.gmra.mxu0 %v5407_v55  ;;  %3704 = vmatmul.f32.gmra.mxu1 %v3326_v28 }
 0x5c3   : > { %3647 = vmatmul.f32.gmra.mxu0 %v3326_v28  ;;  %3708 = vmatmul.f32.gmra.mxu1 %v3334_v24 }
 0x5cb   : > { %3651 = vmatmul.f32.gmra.mxu0 %v3334_v24  ;;  %3712 = vmatmul.f32.gmra.mxu1 %v3342_v2  ;;  %v5554_v24 = vld [vmem:[#allocation14_spill] sm:$0xff] }
 0x5cc   : > { %v2645_v16 = vadd.f32 %v5554_v24, %v2560_v7 }
 0x5ce   : > { %v2702_v18 = vadd.f32 %v5556_v44, %v2645_v16 }
 0x5d0   : > { %v3409_v34 = vpop.f32.mrf.mxu1 }
 0x5d3   : > { %3655 = vmatmul.f32.gmra.mxu0 %v3342_v2 }
 0x5d8   : > { %v3292_v15 = vpop.f32.mrf.mxu0  ;;  %v3413_v0 = vpop.f32.mrf.mxu1 }
 0x5d9   : > { %v3475_v37 = vpop.f32.mrf.mxu2  ;;  %v3410_v5 = vadd.f32 %v3409_v34, %v3292_v15 }
 0x5da   : > { %v3541_v30 = vpop.f32.mrf.mxu3 }
 0x5db   : > { %v3476_v47 = vadd.f32 %v3475_v37, %v3410_v5 }
 0x5dd   : > { %v3542_v45 = vadd.f32 %v3541_v30, %v3476_v47  ;;  %v5561_v30 = vld [vmem:[#allocation10_spill] sm:$0xff] }
 0x5de   : > { %v2503_v54 = vadd.f32 %v5561_v30, %v2434_v20 }
 0x5e0   : > { %v3300_v43 = vpop.f32.mrf.mxu0  ;;  %v3417_v29 = vpop.f32.mrf.mxu1  ;;  %v2572_v4 = vadd.f32 %v5563_v40, %v2503_v54 }
 0x5e1   : > { %v3480_v56 = vpop.f32.mrf.mxu2  ;;  %v3414_v57 = vadd.f32 %v3413_v0, %v3300_v43  ;;  %v5560_v0 = vld [vmem:[#allocation16_spill] sm:$0xff] }
 0x5e2   : > { %v3547_v28 = vpop.f32.mrf.mxu3  ;;  %v2649_v43 = vadd.f32 %v5560_v0, %v2566_v8 }
 0x5e3   : > { %v3481_v52 = vadd.f32 %v3480_v56, %v3414_v57  ;;  %v5564_v57 = vld [vmem:[#allocation17_spill] sm:$0xff] }
 0x5e5   : > { %v3548_v22 = vadd.f32 %v3547_v28, %v3481_v52 }
 0x5e8   : > { %v3308_v13 = vpop.f32.mrf.mxu0  ;;  %v3421_v38 = vpop.f32.mrf.mxu1 }
 0x5e9   : > { %v3485_v19 = vpop.f32.mrf.mxu2  ;;  %v3418_v62 = vadd.f32 %v3417_v29, %v3308_v13 }
 0x5ea   : > { %v3553_v41 = vpop.f32.mrf.mxu3 }
 0x5eb   : > { %v3486_v32 = vadd.f32 %v3485_v19, %v3418_v62  ;;  %v2653_v19 = vadd.f32 %v5564_v57, %v2572_v4 }
 0x5ed   : > { %v3554_v29 = vadd.f32 %v3553_v41, %v3486_v32 }
 0x5f0   : > { %v3316_v61 = vpop.f32.mrf.mxu0  ;;  %v5431_v35 = vpop.f32.mrf.mxu1 }
 0x5f1   : > { %v3490_v58 = vpop.f32.mrf.mxu2  ;;  %v3422_v13 = vadd.f32 %v3421_v38, %v3316_v61 }
 0x5f2   : > { %v3559_v15 = vpop.f32.mrf.mxu3 }
 0x5f3   : > { %v3491_v28 = vadd.f32 %v3490_v58, %v3422_v13  ;;  %v3806_v13 = vld [vmem:[%s5320_s11 + $0x30] sm:$0xff] (%p4006_p4) }
 0x5f4   : > { %3807 = vst [vmem:[%s3743_s21 + $0x50] sm:$0xff] (%p4006_p4), %v3806_v13 }
 0x5f8   : > { %v5433_v21 = vpop.f32.mrf.mxu0  ;;  %v5435_v11 = vpop.f32.mrf.mxu1 }
 0x5f9   : > { %v3495_v14 = vpop.f32.mrf.mxu2  ;;  %v3426_v38 = vadd.f32 %v5431_v35, %v5433_v21 }
 0x5fa   : > { %v3565_v61 = vpop.f32.mrf.mxu3 }
 0x5fb   : > { %v3496_v52 = vadd.f32 %v3495_v14, %v3426_v38 }
 0x5fd   : > { %v3566_v60 = vadd.f32 %v3565_v61, %v3496_v52 }
 0x600   : > { %v5437_v55 = vpop.f32.mrf.mxu0  ;;  %v5439_v9 = vpop.f32.mrf.mxu1 }
 0x601   : > { %v3500_v7 = vpop.f32.mrf.mxu2  ;;  %v3430_v26 = vadd.f32 %v5435_v11, %v5437_v55 }
 0x602   : > { %v3571_v3 = vpop.f32.mrf.mxu3 }
 0x608   : > { %v5441_v53 = vpop.f32.mrf.mxu0  ;;  %v5443_v33 = vpop.f32.mrf.mxu1 }
 0x609   : > { %v3434_v62 = vadd.f32 %v5439_v9, %v5441_v53 }
 0x60a   : > { %v3577_v1 = vpop.f32.mrf.mxu3 }
 0x610   : > { %v5447_v50 = vpop.f32.mrf.mxu0  ;;  %v3685_v17 = vpop.f32.mrf.mxu1 }
 0x611   : > { %v3438_v58 = vadd.f32 %v5443_v33, %v5447_v50 }
 0x612   : > { %v3583_v53 = vpop.f32.mrf.mxu3 }
 0x618   : > { %v3628_v27 = vpop.f32.mrf.mxu0  ;;  %v3689_v23 = vpop.f32.mrf.mxu1 }
 0x619   : > { %v3629_v48 = vadd.f32 %v3628_v27, %v3542_v45  ;;  %v3560_v27 = vadd.f32 %v3559_v15, %v3491_v28 }
 0x61b   : > { %v3686_v6 = vadd.f32 %v3685_v17, %v3629_v48  ;;  %v5562_v17 = vld [vmem:[#allocation13_spill] sm:$0xff]  ;;  %v5565_v48 = vld [vmem:[#allocation15_spill] sm:$0xff] }
 0x61c   : > { %v2706_v31 = vadd.f32 %v5562_v17, %v2649_v43  ;;  %v3802_v43 = vld [vmem:[%s5320_s11 + $0x20] sm:$0xff] (%p4006_p4) }
 0x61d   : > { %v3716_v25 = vadd.f32 %v3686_v6, %v2698_v49  ;;  %v2710_v49 = vadd.f32 %v5565_v48, %v2653_v19  ;;  %3803 = vst [vmem:[%s3743_s21 + $0x40] sm:$0xff] (%p4006_p4), %v3802_v43 }
 0x61f   : > { %3720 = vst.msk [vmem:[%s5320_s11] sm:$0xff] %vm241_vm0, %v3716_v25  ;;  %v3501_v25 = vadd.f32 %v3500_v7, %v3430_v26 }
 0x620   : > { %v3632_v36 = vpop.f32.mrf.mxu0  ;;  %v3693_v51 = vpop.f32.mrf.mxu1 }
 0x621   : > { %v3633_v39 = vadd.f32 %v3632_v36, %v3548_v22  ;;  %v3572_v22 = vadd.f32 %v3571_v3, %v3501_v25  ;;  %v3505_v36 = vpop.f32.mrf.mxu2 }
 0x622   : > { %v3506_v11 = vadd.f32 %v3505_v36, %v3434_v62 }
 0x623   : > { %v3690_v2 = vadd.f32 %v3689_v23, %v3633_v39 }
 0x624   : > { %v3578_v39 = vadd.f32 %v3577_v1, %v3506_v11 }
 0x625   : > { %v3717_v34 = vadd.f32 %v3690_v2, %v2702_v18 }
 0x626   : > { %v3794_v33 = vld [vmem:[%s5320_s11] sm:$0xff] (%p4006_p4) }
 0x627   : > { %3721 = vst.msk [vmem:[%s5320_s11 + $0x8] sm:$0xff] %vm241_vm0, %v3717_v34 }
 0x628   : > { %v3636_v37 = vpop.f32.mrf.mxu0  ;;  %v3697_v5 = vpop.f32.mrf.mxu1  ;;  %3795 = vst [vmem:[%s3743_s21] sm:$0xff] (%p4006_p4), %v3794_v33 }
 0x629   : > { %v3637_v56 = vadd.f32 %v3636_v37, %v3554_v29  ;;  %v3510_v2 = vpop.f32.mrf.mxu2  ;;  %v3804_v29 = vld [vmem:[%s5320_s11 + $0x28] sm:$0xff] (%p4006_p4)  ;;  %v3808_v37 = vld [vmem:[%s5320_s11 + $0x38] sm:$0xff] (%p4006_p4) }
 0x62a   : > { %v3511_v59 = vadd.f32 %v3510_v2, %v3438_v58  ;;  %3805 = vst [vmem:[%s3743_s21 + $0x48] sm:$0xff] (%p4006_p4), %v3804_v29 }
 0x62b   : > { %v3694_v47 = vadd.f32 %v3693_v51, %v3637_v56  ;;  %3809 = vst [vmem:[%s3743_s21 + $0x58] sm:$0xff] (%p4006_p4), %v3808_v37 }
 0x62c   : > { %v3584_v8 = vadd.f32 %v3583_v53, %v3511_v59 }
 0x62d   : > { %v3718_v45 = vadd.f32 %v3694_v47, %v2706_v31 }
 0x62e   : > { %v3796_v50 = vld [vmem:[%s5320_s11 + $0x8] sm:$0xff] (%p4006_p4) }
 0x62f   : > { %3722 = vst.msk [vmem:[%s5320_s11 + $0x10] sm:$0xff] %vm241_vm0, %v3718_v45 }
 0x630   : > { %v3640_v23 = vpop.f32.mrf.mxu0  ;;  %v3701_v41 = vpop.f32.mrf.mxu1  ;;  %3797 = vst [vmem:[%s3743_s21 + $0x8] sm:$0xff] (%p4006_p4), %v3796_v50 }
 0x631   : > { %v3641_v63 = vadd.f32 %v3640_v23, %v3560_v27 }
 0x633   : > { %v3698_v6 = vadd.f32 %v3697_v5, %v3641_v63 }
 0x635   : > { %v3719_v46 = vadd.f32 %v3698_v6, %v2710_v49 }
 0x636   : > { %v3798_v15 = vld [vmem:[%s5320_s11 + $0x10] sm:$0xff] (%p4006_p4) }
 0x637   : > { %3723 = vst.msk [vmem:[%s5320_s11 + $0x18] sm:$0xff] %vm241_vm0, %v3719_v46 }
 0x638   : > { %v3644_v35 = vpop.f32.mrf.mxu0  ;;  %v3705_v16 = vpop.f32.mrf.mxu1  ;;  %3799 = vst [vmem:[%s3743_s21 + $0x10] sm:$0xff] (%p4006_p4), %v3798_v15 }
 0x639   : > { %v3645_v21 = vadd.f32 %v3644_v35, %v3566_v60 }
 0x63b   : > { %v3702_v24 = vadd.f32 %v3701_v41, %v3645_v21 }
 0x63d   : > { %3882 = vst.msk [vmem:[%s5320_s11 + $0x40] sm:$0xff] %vm241_vm0, %v3702_v24 }
 0x63e   : > { %v3800_v0 = vld [vmem:[%s5320_s11 + $0x18] sm:$0xff] (%p4006_p4) }
 0x63f   : > { %3801 = vst [vmem:[%s3743_s21 + $0x18] sm:$0xff] (%p4006_p4), %v3800_v0 }
 0x640   : > { %v3648_v51 = vpop.f32.mrf.mxu0  ;;  %v3709_v44 = vpop.f32.mrf.mxu1 }
 0x641   : > { %v3649_v42 = vadd.f32 %v3648_v51, %v3572_v22 }
 0x643   : > { %v3706_v55 = vadd.f32 %v3705_v16, %v3649_v42 }
 0x644   : > { %v3810_v30 = vld [vmem:[%s5320_s11 + $0x40] sm:$0xff] (%p4006_p4) }
 0x645   : > { %3883 = vst.msk [vmem:[%s5320_s11 + $0x48] sm:$0xff] %vm241_vm0, %v3706_v55 }
 0x646   : > { %3811 = vst [vmem:[%s3743_s21 + $0x80] sm:$0xff] (%p4006_p4), %v3810_v30 }
 0x648   : > { %v3652_v18 = vpop.f32.mrf.mxu0  ;;  %v3713_v20 = vpop.f32.mrf.mxu1 }
 0x649   : > { %v3653_v32 = vadd.f32 %v3652_v18, %v3578_v39 }
 0x64b   : > { %v3710_v9 = vadd.f32 %v3709_v44, %v3653_v32 }
 0x64c   : > { %v3812_v54 = vld [vmem:[%s5320_s11 + $0x48] sm:$0xff] (%p4006_p4) }
 0x64d   : > { %3884 = vst.msk [vmem:[%s5320_s11 + $0x50] sm:$0xff] %vm241_vm0, %v3710_v9 }
 0x64e   : > { %3813 = vst [vmem:[%s3743_s21 + $0x88] sm:$0xff] (%p4006_p4), %v3812_v54 }
 0x650   : > { %v3656_v12 = vpop.f32.mrf.mxu0 }
 0x651   : > { %v3657_v10 = vadd.f32 %v3656_v12, %v3584_v8  ;;  %3740 = sbr.rel (!%p4006_p4) target bundleno = 1630 (0x65e), region = 36 }
 0x653   : > { %v3714_v34 = vadd.f32 %v3713_v20, %v3657_v10 }
 0x654   : > { %v3814_v56 = vld [vmem:[%s5320_s11 + $0x50] sm:$0xff] (%p4006_p4) }
 0x655   : > { %3885 = vst.msk [vmem:[%s5320_s11 + $0x58] sm:$0xff] %vm241_vm0, %v3714_v34 }
 0x656   : > { %3815 = vst [vmem:[%s3743_s21 + $0x90] sm:$0xff] %v3814_v56 }
 0x65c   : > { %v3816_v5 = vld [vmem:[%s5320_s11 + $0x58] sm:$0xff] }
 0x65d   : > { %3817 = vst [vmem:[%s3743_s21 + $0x98] sm:$0xff] %v3816_v5 }
 0x65e PF: > { %p10_p8 = scmp.ge.s32.totalorder %s3996_s16, 4   ;;  %s5566_s12 = smov %s3954_s13 }
 0x65f   : > { %s5567_s13 = smov %s4004_s19  ;;  %s5568_s14 = smov %s3996_s16 }
 0x660   :  { %12 = sbr.rel (!%p10_p8) target bundleno = 2 (0x2), region = 102 }

</bundles_post_ra>
